<compile_context>
chip_gen: v6e
topology: v6e:2x2x1
jax: 0.10.0
libtpu: 0.0.40
codegen_flags: <defaults>
</compile_context>

<pallas_src>
import functools

import jax
import jax.numpy as jnp
from jax import lax
from jax.experimental import pallas as pl
from jax.experimental.pallas import tpu as pltpu

# ----- model dims (fixed by the module) -----
EMB_DIM = 300       # word_embedding_dim
CONV_DIM = 400      # conv1d out channels
KERNEL = 3          # conv1d kernel size
QUERY_DIM = 200     # query_vector_dim

# ----- lane-aligned padded dims (multiples of 128) -----
E_PAD = 384
C_PAD = 512
Q_PAD = 256


def text_encoder_kernel(x_ref, wconv_ref, bconv_ref, wa_ref, ba_ref, qv_ref,
                        out_ref, *, lout):
    """One batch tile (TB sequences) per grid step.

    x_ref:     (TB, L_pad, E_PAD)  embedded text, bf16 (time tail is junk)
    wconv_ref: (K, E_PAD, C_PAD)   conv weights, bf16 (zero padded)
    bconv_ref: (1, C_PAD)          conv bias, f32 (zero padded)
    wa_ref:    (C_PAD, Q_PAD)      attention linear weight^T, bf16 (zero pad)
    ba_ref:    (1, Q_PAD)          attention linear bias, f32 (zero pad)
    qv_ref:    (1, Q_PAD)          attention query vector, f32 (zero pad)
    out_ref:   (TB, C_PAD)         pooled text vectors, f32
    lout:      number of valid conv output positions (= L - K + 1), static
    """
    TB, L_pad, E = x_ref.shape
    C = wconv_ref.shape[2]
    Q = wa_ref.shape[1]
    Lc = L_pad - (KERNEL - 1)        # sublane-aligned compute window (mult of 8)

    # ---- Conv1d (valid, k=3): slice the bf16 INPUT per tap; M = TB*Lc ----
    acc = jnp.zeros((TB * Lc, C), jnp.float32)
    for k in range(KERNEL):                                   # static unroll
        # Layout-free reshape: Lc % 8 == 0, E % 128 == 0.
        xk = x_ref[:, k:k + Lc, :].reshape(TB * Lc, E)        # bf16 operand
        acc = acc + jnp.dot(xk, wconv_ref[k],
                            preferred_element_type=jnp.float32)
    ctx = jnp.maximum(acc + bconv_ref[...], 0.0)              # ReLU f32 (TB*Lc, C)

    # ---- Additive attention: tanh(ctx @ Wa + ba) . q -> softmax over time ----
    # ctx is cast to bf16 for the MXU; accumulation stays f32.
    proj = jnp.dot(ctx.astype(wa_ref.dtype), wa_ref[...],
                   preferred_element_type=jnp.float32)        # (TB*Lc, Q)
    proj = jnp.tanh(proj.reshape(TB, Lc, Q) + ba_ref[...])
    scores = jnp.sum(proj * qv_ref[...], axis=-1, keepdims=True)  # (TB, Lc, 1)

    # Mask conv-tail / padded time positions (t >= lout) out of the softmax.
    t_idx = lax.broadcasted_iota(jnp.int32, (TB, Lc, 1), 1)
    scores = jnp.where(t_idx < lout, scores, -jnp.inf)
    m = jnp.max(scores, axis=1, keepdims=True)
    e = jnp.exp(scores - m)                                   # exactly 0 where masked
    alpha = e / jnp.sum(e, axis=1, keepdims=True)             # exact softmax

    # ---- Weighted time pooling on the VPU (masked alpha == 0 kills tail) ----
    pooled = jnp.sum(alpha * ctx.reshape(TB, Lc, C), axis=1)  # (TB, C) f32
    out_ref[...] = pooled.astype(out_ref.dtype)


def _choose_batch_tile(B):
    """Batch rows processed per grid step.

    - Small B: one grid step (TB = B) maximizes M = TB*L for MXU fill; extra
      grid steps on single-TC parts (v5e/v6e) are pure serial-loop overhead.
    - Large B: sublane-aligned TB giving >= 4 grid steps (>= 2 per TensorCore
      on dual-TC v7x, so BlockSpec double-buffering hides the input DMA),
      capped at 32 to stay inside v5e's 16 MiB scoped-VMEM default.  On
      single-TC v6e pass a larger `batch_tile` (64-128) explicitly.
    """
    if B <= 16:
        return B
    return max(8, min(32, (B // 32) * 8))


def prepare_text_encoder_params(embedding_matrix, conv_w, conv_b, attn_w,
                                attn_b, attn_q):
    """One-time parameter prep (hoisted out of the per-call path)."""
    # Embedding table: pre-cast to bf16 and pre-pad lanes -> gather pulls
    # already-padded rows (halves gather read BW, removes cast/pad passes).
    emb = jnp.pad(embedding_matrix.astype(jnp.bfloat16),
                  ((0, 0), (0, E_PAD - EMB_DIM)))                  # (V, 384)
    # Conv weight: PyTorch (C_out, C_in, K) -> (K, C_in, C_out), zero padded.
    wconv = jnp.transpose(conv_w, (2, 1, 0)).astype(jnp.bfloat16)
    wconv = jnp.pad(wconv, ((0, 0), (0, E_PAD - EMB_DIM),
                            (0, C_PAD - CONV_DIM)))                # (3, 384, 512)
    bconv = jnp.pad(conv_b.astype(jnp.float32),
                    (0, C_PAD - CONV_DIM)).reshape(1, C_PAD)
    wa = jnp.pad(attn_w.T.astype(jnp.bfloat16),
                 ((0, C_PAD - CONV_DIM), (0, Q_PAD - QUERY_DIM)))  # (512, 256)
    ba = jnp.pad(attn_b.astype(jnp.float32),
                 (0, Q_PAD - QUERY_DIM)).reshape(1, Q_PAD)
    qv = jnp.pad(attn_q.astype(jnp.float32),
                 (0, Q_PAD - QUERY_DIM)).reshape(1, Q_PAD)
    return dict(emb=emb, wconv=wconv, bconv=bconv, wa=wa, ba=ba, qv=qv)


def text_encoder_forward(text, params, *, batch_tile=None):
    """text: (B, L) int token ids.  Returns (B, CONV_DIM) float32."""
    B, L = text.shape
    lout = L - (KERNEL - 1)                     # valid conv output positions
    lc = pl.cdiv(lout, 8) * 8                   # sublane-aligned compute window
    l_pad = pl.cdiv(lc + KERNEL - 1, 8) * 8     # padded time extent of input

    TB = batch_tile if batch_tile is not None else _choose_batch_tile(B)
    Bp = pl.cdiv(B, TB) * TB

    # Pad the (tiny) token-id matrix instead of the activation: values in the
    # padded time/batch rows never reach an un-masked output.  Dropout: eval
    # mode -> identity.
    text_p = jnp.pad(text.astype(jnp.int32), ((0, Bp - B), (0, l_pad - L)))
    x = jnp.take(params["emb"], text_p, axis=0)        # (Bp, l_pad, E_PAD) bf16

    flops = (2 * Bp * lc * E_PAD * C_PAD * KERNEL      # conv taps
             + 2 * Bp * lc * C_PAD * Q_PAD)            # attention projection
    transcendentals = Bp * lc * (Q_PAD + 1)            # tanh + exp
    bytes_accessed = (Bp * l_pad * E_PAD * 2           # x (bf16)
                      + KERNEL * E_PAD * C_PAD * 2     # conv weight
                      + C_PAD * Q_PAD * 2              # attention weight
                      + (C_PAD + 2 * Q_PAD) * 4        # biases + query
                      + Bp * C_PAD * 4)                # output

    out = pl.pallas_call(
        functools.partial(text_encoder_kernel, lout=lout),
        out_shape=jax.ShapeDtypeStruct((Bp, C_PAD), jnp.float32),
        grid_spec=pltpu.PrefetchScalarGridSpec(
            num_scalar_prefetch=0,
            grid=(Bp // TB,),
            in_specs=[
                pl.BlockSpec((TB, l_pad, E_PAD), lambda b: (b, 0, 0)),
                pl.BlockSpec((KERNEL, E_PAD, C_PAD), lambda b: (0, 0, 0)),
                pl.BlockSpec((1, C_PAD), lambda b: (0, 0)),
                pl.BlockSpec((C_PAD, Q_PAD), lambda b: (0, 0)),
                pl.BlockSpec((1, Q_PAD), lambda b: (0, 0)),
                pl.BlockSpec((1, Q_PAD), lambda b: (0, 0)),
            ],
            out_specs=pl.BlockSpec((TB, C_PAD), lambda b: (b, 0)),
        ),
        compiler_params=pltpu.CompilerParams(
            dimension_semantics=("parallel",)),
        cost_estimate=pl.CostEstimate(
            flops=flops, transcendentals=transcendentals,
            bytes_accessed=bytes_accessed),
    )(x, params["wconv"], params["bconv"], params["wa"], params["ba"],
      params["qv"])
    return out[:B, :CONV_DIM]


def reference_forward(text, embedding_matrix, conv_w, conv_b, attn_w, attn_b,
                      attn_q):
    """Pure-JAX f32 reference mirroring the PyTorch module (eval mode)."""
    x = jnp.take(embedding_matrix, text, axis=0).astype(jnp.float32)  # (B,L,E)
    B, L, _ = x.shape
    Lout = L - (KERNEL - 1)
    wconv = jnp.transpose(conv_w, (2, 1, 0))                          # (K,E,C)
    ctx = jnp.zeros((B, Lout, CONV_DIM), jnp.float32)
    for k in range(KERNEL):
        ctx = ctx + jnp.einsum("ble,ec->blc", x[:, k:k + Lout, :], wconv[k])
    ctx = jax.nn.relu(ctx + conv_b[None, None, :])
    proj = jnp.tanh(jnp.einsum("blc,qc->blq", ctx, attn_w) + attn_b)
    scores = jnp.einsum("blq,q->bl", proj, attn_q)
    alpha = jax.nn.softmax(scores, axis=1)
    return jnp.einsum("bl,blc->bc", alpha, ctx)


if __name__ == "__main__":
    key = jax.random.PRNGKey(0)
    k_emb, k_txt, k_cw, k_cb, k_aw, k_ab, k_aq = jax.random.split(key, 7)

    VOCAB, B, L = 50, 2, 16

    embedding_matrix = jax.random.normal(k_emb, (VOCAB, EMB_DIM),
                                         jnp.float32) * 0.1
    text = jax.random.randint(k_txt, (B, L), 0, VOCAB, jnp.int32)

    # Deterministic synthetic parameters (shapes match nn.Conv1d / nn.Linear).
    conv_w = jax.random.normal(k_cw, (CONV_DIM, EMB_DIM, KERNEL),
                               jnp.float32) * 0.02
    conv_b = jax.random.normal(k_cb, (CONV_DIM,), jnp.float32) * 0.02
    attn_w = jax.random.normal(k_aw, (QUERY_DIM, CONV_DIM),
                               jnp.float32) * 0.02
    attn_b = jax.random.normal(k_ab, (QUERY_DIM,), jnp.float32) * 0.02
    attn_q = jax.random.uniform(k_aq, (QUERY_DIM,), jnp.float32, -0.1, 0.1)

    # One-time parameter preparation (hoisted out of the per-call path).
    params = prepare_text_encoder_params(embedding_matrix, conv_w, conv_b,
                                         attn_w, attn_b, attn_q)

    out = text_encoder_forward(text, params)
    out = jax.block_until_ready(out)

    ref = reference_forward(text, embedding_matrix, conv_w, conv_b,
                            attn_w, attn_b, attn_q)
    assert out.shape == (B, CONV_DIM)
    # bf16 embeddings / matmul operands -> loosened tolerance vs f32 reference.
    assert jnp.allclose(out, ref, atol=2e-2, rtol=2e-2), "mismatch vs reference"

    print("KERNEL_OK")
</pallas_src>

<mosaic_0001>
module attributes {stable_mosaic.version = 11 : i64} {
  func.func @text_encoder_kernel(%arg0: i32, %arg1: memref<2x24x384xbf16, #tpu.memory_space<vmem>>, %arg2: memref<3x384x512xbf16, #tpu.memory_space<vmem>>, %arg3: memref<1x512xf32, #tpu.memory_space<vmem>>, %arg4: memref<512x256xbf16, #tpu.memory_space<vmem>>, %arg5: memref<1x256xf32, #tpu.memory_space<vmem>>, %arg6: memref<1x256xf32, #tpu.memory_space<vmem>>, %arg7: memref<2x512xf32, #tpu.memory_space<vmem>>) attributes {dimension_semantics = [#tpu.dimension_semantics<parallel>], iteration_bounds = array<i64: 1>, scalar_prefetch = 0 : i64, scratch_operands = 0 : i64, tpu.core_type = #tpu.core_type<tc>, window_params = [{transform_indices = @transform_0, window_bounds = array<i64: 2, 24, 384>}, {pipeline_mode = #tpu.pipeline_mode<synchronous>, transform_indices = @transform_1, window_bounds = array<i64: 3, 384, 512>}, {pipeline_mode = #tpu.pipeline_mode<synchronous>, transform_indices = @transform_2, window_bounds = array<i64: 1, 512>}, {pipeline_mode = #tpu.pipeline_mode<synchronous>, transform_indices = @transform_3, window_bounds = array<i64: 512, 256>}, {pipeline_mode = #tpu.pipeline_mode<synchronous>, transform_indices = @transform_4, window_bounds = array<i64: 1, 256>}, {pipeline_mode = #tpu.pipeline_mode<synchronous>, transform_indices = @transform_5, window_bounds = array<i64: 1, 256>}, {transform_indices = @transform_6, window_bounds = array<i64: 2, 512>}]} {
    %cst = arith.constant 0.000000e+00 : f32
    %0 = vector.broadcast %cst : f32 to vector<44x512xf32>
    %c0 = arith.constant 0 : index
    %c0_0 = arith.constant 0 : index
    %c0_1 = arith.constant 0 : index
    %1 = vector.load %arg1[%c0, %c0_0, %c0_1] : memref<2x24x384xbf16, #tpu.memory_space<vmem>>, vector<2x22x384xbf16>
    %2 = vector.shape_cast %1 : vector<2x22x384xbf16> to vector<44x384xbf16>
    %c0_2 = arith.constant 0 : index
    %c0_3 = arith.constant 0 : index
    %c0_4 = arith.constant 0 : index
    %3 = vector.load %arg2[%c0_2, %c0_3, %c0_4] : memref<3x384x512xbf16, #tpu.memory_space<vmem>>, vector<1x384x512xbf16>
    %4 = vector.shape_cast %3 : vector<1x384x512xbf16> to vector<384x512xbf16>
    %cst_5 = arith.constant dense<0.000000e+00> : vector<44x512xf32>
    %5 = tpu.matmul %2, %4, %cst_5 {dimension_numbers = #tpu.dot_dimension_numbers<[1], [0], [0], [1], [0, 0, 1, 1], [], []>} : vector<44x384xbf16>, vector<384x512xbf16>, vector<44x512xf32> -> vector<44x512xf32>
    %6 = arith.addf %0, %5 : vector<44x512xf32>
    %c0_6 = arith.constant 0 : index
    %c1 = arith.constant 1 : index
    %c0_7 = arith.constant 0 : index
    %7 = vector.load %arg1[%c0_6, %c1, %c0_7] : memref<2x24x384xbf16, #tpu.memory_space<vmem>>, vector<2x22x384xbf16>
    %8 = vector.shape_cast %7 : vector<2x22x384xbf16> to vector<44x384xbf16>
    %c1_8 = arith.constant 1 : index
    %c0_9 = arith.constant 0 : index
    %c0_10 = arith.constant 0 : index
    %9 = vector.load %arg2[%c1_8, %c0_9, %c0_10] : memref<3x384x512xbf16, #tpu.memory_space<vmem>>, vector<1x384x512xbf16>
    %10 = vector.shape_cast %9 : vector<1x384x512xbf16> to vector<384x512xbf16>
    %cst_11 = arith.constant dense<0.000000e+00> : vector<44x512xf32>
    %11 = tpu.matmul %8, %10, %cst_11 {dimension_numbers = #tpu.dot_dimension_numbers<[1], [0], [0], [1], [0, 0, 1, 1], [], []>} : vector<44x384xbf16>, vector<384x512xbf16>, vector<44x512xf32> -> vector<44x512xf32>
    %12 = arith.addf %6, %11 : vector<44x512xf32>
    %c0_12 = arith.constant 0 : index
    %c2 = arith.constant 2 : index
    %c0_13 = arith.constant 0 : index
    %13 = vector.load %arg1[%c0_12, %c2, %c0_13] : memref<2x24x384xbf16, #tpu.memory_space<vmem>>, vector<2x22x384xbf16>
    %14 = vector.shape_cast %13 : vector<2x22x384xbf16> to vector<44x384xbf16>
    %c2_14 = arith.constant 2 : index
    %c0_15 = arith.constant 0 : index
    %c0_16 = arith.constant 0 : index
    %15 = vector.load %arg2[%c2_14, %c0_15, %c0_16] : memref<3x384x512xbf16, #tpu.memory_space<vmem>>, vector<1x384x512xbf16>
    %16 = vector.shape_cast %15 : vector<1x384x512xbf16> to vector<384x512xbf16>
    %cst_17 = arith.constant dense<0.000000e+00> : vector<44x512xf32>
    %17 = tpu.matmul %14, %16, %cst_17 {dimension_numbers = #tpu.dot_dimension_numbers<[1], [0], [0], [1], [0, 0, 1, 1], [], []>} : vector<44x384xbf16>, vector<384x512xbf16>, vector<44x512xf32> -> vector<44x512xf32>
    %18 = arith.addf %12, %17 : vector<44x512xf32>
    %c0_18 = arith.constant 0 : index
    %c0_19 = arith.constant 0 : index
    %19 = vector.load %arg3[%c0_18, %c0_19] : memref<1x512xf32, #tpu.memory_space<vmem>>, vector<1x512xf32>
    %20 = vector.broadcast %19 : vector<1x512xf32> to vector<44x512xf32>
    %21 = arith.addf %18, %20 : vector<44x512xf32>
    %cst_20 = arith.constant 0.000000e+00 : f32
    %22 = vector.broadcast %cst_20 : f32 to vector<44x512xf32>
    %23 = arith.maximumf %21, %22 : vector<44x512xf32>
    %24 = arith.truncf %23 : vector<44x512xf32> to vector<44x512xbf16>
    %c0_21 = arith.constant 0 : index
    %c0_22 = arith.constant 0 : index
    %25 = vector.load %arg4[%c0_21, %c0_22] : memref<512x256xbf16, #tpu.memory_space<vmem>>, vector<512x256xbf16>
    %cst_23 = arith.constant dense<0.000000e+00> : vector<44x256xf32>
    %26 = tpu.matmul %24, %25, %cst_23 {dimension_numbers = #tpu.dot_dimension_numbers<[1], [0], [0], [1], [0, 0, 1, 1], [], []>} : vector<44x512xbf16>, vector<512x256xbf16>, vector<44x256xf32> -> vector<44x256xf32>
    %27 = vector.shape_cast %26 : vector<44x256xf32> to vector<2x22x256xf32>
    %c0_24 = arith.constant 0 : index
    %c0_25 = arith.constant 0 : index
    %28 = vector.load %arg5[%c0_24, %c0_25] : memref<1x256xf32, #tpu.memory_space<vmem>>, vector<1x256xf32>
    %29 = vector.shape_cast %28 : vector<1x256xf32> to vector<1x1x256xf32>
    %30 = vector.broadcast %29 : vector<1x1x256xf32> to vector<2x22x256xf32>
    %31 = arith.addf %27, %30 : vector<2x22x256xf32>
    %32 = math.tanh %31 : vector<2x22x256xf32>
    %c0_26 = arith.constant 0 : index
    %c0_27 = arith.constant 0 : index
    %33 = vector.load %arg6[%c0_26, %c0_27] : memref<1x256xf32, #tpu.memory_space<vmem>>, vector<1x256xf32>
    %34 = vector.shape_cast %33 : vector<1x256xf32> to vector<1x1x256xf32>
    %35 = vector.broadcast %34 : vector<1x1x256xf32> to vector<2x22x256xf32>
    %36 = arith.mulf %32, %35 : vector<2x22x256xf32>
    %cst_28 = arith.constant dense<0.000000e+00> : vector<2x22xf32>
    %37 = vector.multi_reduction <add>, %36, %cst_28 [2] : vector<2x22x256xf32> to vector<2x22xf32>
    %38 = vector.shape_cast %37 : vector<2x22xf32> to vector<2x22x1xf32>
    %39 = tpu.iota {dimensions = array<i32: 1>} : vector<2x22x1xi32>
    %c14_i32 = arith.constant 14 : i32
    %40 = vector.broadcast %c14_i32 : i32 to vector<2x22x1xi32>
    %41 = arith.cmpi slt, %39, %40 : vector<2x22x1xi32>
    %cst_29 = arith.constant 0xFF800000 : f32
    %42 = vector.broadcast %cst_29 : f32 to vector<2x22x1xf32>
    %43 = arith.select %41, %38, %42 : vector<2x22x1xi1>, vector<2x22x1xf32>
    %cst_30 = arith.constant dense<0xFF800000> : vector<2x1xf32>
    %44 = vector.multi_reduction <maximumf>, %43, %cst_30 [1] : vector<2x22x1xf32> to vector<2x1xf32>
    %45 = vector.shape_cast %44 : vector<2x1xf32> to vector<2x1x1xf32>
    %46 = vector.broadcast %45 : vector<2x1x1xf32> to vector<2x22x1xf32>
    %47 = arith.subf %43, %46 : vector<2x22x1xf32>
    %48 = math.exp %47 : vector<2x22x1xf32>
    %cst_31 = arith.constant dense<0.000000e+00> : vector<2x1xf32>
    %49 = vector.multi_reduction <add>, %48, %cst_31 [1] : vector<2x22x1xf32> to vector<2x1xf32>
    %50 = vector.shape_cast %49 : vector<2x1xf32> to vector<2x1x1xf32>
    %51 = vector.broadcast %50 : vector<2x1x1xf32> to vector<2x22x1xf32>
    %52 = arith.divf %48, %51 : vector<2x22x1xf32>
    %53 = vector.shape_cast %23 : vector<44x512xf32> to vector<2x22x512xf32>
    %54 = vector.broadcast %52 : vector<2x22x1xf32> to vector<2x22x512xf32>
    %55 = arith.mulf %54, %53 : vector<2x22x512xf32>
    %cst_32 = arith.constant dense<0.000000e+00> : vector<2x512xf32>
    %56 = vector.multi_reduction <add>, %55, %cst_32 [1] : vector<2x22x512xf32> to vector<2x512xf32>
    %c0_33 = arith.constant 0 : index
    %c0_34 = arith.constant 0 : index
    %57 = vector.load %arg7[%c0_33, %c0_34] : memref<2x512xf32, #tpu.memory_space<vmem>>, vector<2x512xf32>
    tpu.vector_store %arg7[%c0_33, %c0_34], %56 {strides = array<i32>} : memref<2x512xf32, #tpu.memory_space<vmem>>, vector<2x512xf32>,
    return
  }
  func.func @transform_0(%arg0: i32) -> (i32, i32, i32) {
    %c0_i32 = arith.constant 0 : i32
    %c0_i32_0 = arith.constant 0 : i32
    %c0_i32_1 = arith.constant 0 : i32
    return %arg0, %c0_i32, %c0_i32_0 : i32, i32, i32
  }
  func.func @transform_1(%arg0: i32) -> (i32, i32, i32) {
    %c0_i32 = arith.constant 0 : i32
    %c0_i32_0 = arith.constant 0 : i32
    %c0_i32_1 = arith.constant 0 : i32
    %c0_i32_2 = arith.constant 0 : i32
    return %c0_i32, %c0_i32_0, %c0_i32_1 : i32, i32, i32
  }
  func.func @transform_2(%arg0: i32) -> (i32, i32) {
    %c0_i32 = arith.constant 0 : i32
    %c0_i32_0 = arith.constant 0 : i32
    %c0_i32_1 = arith.constant 0 : i32
    return %c0_i32, %c0_i32_0 : i32, i32
  }
  func.func @transform_3(%arg0: i32) -> (i32, i32) {
    %c0_i32 = arith.constant 0 : i32
    %c0_i32_0 = arith.constant 0 : i32
    %c0_i32_1 = arith.constant 0 : i32
    return %c0_i32, %c0_i32_0 : i32, i32
  }
  func.func @transform_4(%arg0: i32) -> (i32, i32) {
    %c0_i32 = arith.constant 0 : i32
    %c0_i32_0 = arith.constant 0 : i32
    %c0_i32_1 = arith.constant 0 : i32
    return %c0_i32, %c0_i32_0 : i32, i32
  }
  func.func @transform_5(%arg0: i32) -> (i32, i32) {
    %c0_i32 = arith.constant 0 : i32
    %c0_i32_0 = arith.constant 0 : i32
    %c0_i32_1 = arith.constant 0 : i32
    return %c0_i32, %c0_i32_0 : i32, i32
  }
  func.func @transform_6(%arg0: i32) -> (i32, i32) {
    %c0_i32 = arith.constant 0 : i32
    %c0_i32_0 = arith.constant 0 : i32
    return %arg0, %c0_i32 : i32, i32
  }
}

</mosaic_0001>

<bundles_post_ra>
// kernel: tpu_custom_call.1
= control target key start
LH: loop header
LB: loop body
LE: loop exit
PB: predicated region body
PF: predicated region fallthrough
CT: control target
= control target key end

     0   :  { %11 = vsyncpa [#allocation3], 0  ;;  %s8046_s0 = inlined_call_operand.hbm [shape: bf16[2,24,384], index: 0, kind: input, shape index: {}]   ;;  %s8047_s1 = inlined_call_operand.hbm [shape: bf16[3,384,512], index: 1, kind: input, shape index: {}]   ;;  %s8048_s2 = inlined_call_operand.hbm [shape: f32[1,512], index: 2, kind: input, shape index: {}]   ;;  %s8049_s3 = inlined_call_operand.hbm [shape: bf16[512,256], index: 3, kind: input, shape index: {}]   ;;  %s8050_s4 = inlined_call_operand.hbm [shape: f32[1,256], index: 4, kind: input, shape index: {}]   ;;  %s8051_s5 = inlined_call_operand.hbm [shape: f32[1,256], index: 5, kind: input, shape index: {}]   ;;  %s8052_s6 = inlined_call_operand.hbm [shape: f32[2,512], index: 6, kind: output, shape index: {}]  }
   0x1   :  { %12 = vsyncpa [#allocation6], 0 }
   0x2   :  { %13 = vsyncpa [#allocation9], 0 }
   0x3   :  { %14 = vsyncpa [#allocation12], 0 }
   0x4   :  { %15 = vsyncpa [#allocation4], 0  ;;  %s6794_s21 = smov [#allocation5]  }
   0x5   :  { %s33_s22 = sshll.u32 %s6794_s21, 4  ;;  %s34_s22 = int_to_ptr.vmem [resolvable:$true] %s33_s22 }
   0x6   :  { %s6652_s23 = scalar_lea.vmem %s34_s22, 36864  ;;  %p6657_p1 = scmp.lt.s32.totalorder %s34_s22, %s34_s22 }
   0x7   :  { %p6653_p0 = scmp.ne.s32.totalorder %s34_s22, %s6652_s23  ;;  %p6658_p2 = scmp.lt.s32.totalorder %s6652_s23, %s6652_s23 }
   0x9   :  { %p6659_p3 = por %p6658_p2, %p6657_p1 }
   0xb   :  { %p6660_p4 = pnand %p6659_p3, %p6653_p0 }
   0xd   :  { %6663 = shalt.err (!%p6660_p4)
}
   0xe   :  { %s6795_s24 = smov 256   ;;  %s6796_s25 = smov 16  }
   0xf   :  { %39 = dma.hbm_to_vmem [thread:$0]  %s8047_s1, 36864, %s34_s22, [#allocation6], %s6795_s24, %s6795_s24, %s6796_s25  }
  0x10   :  { %s6797_s28 = smov [#allocation8]  }
  0x11   :  { %s55_s29 = sshll.u32 %s6797_s28, 4  ;;  %s56_s29 = int_to_ptr.vmem [resolvable:$true] %s55_s29 }
  0x12   :  { %s6672_s30 = scalar_lea.vmem %s56_s29, 8192  ;;  %p6677_p6 = scmp.lt.s32.totalorder %s56_s29, %s56_s29 }
  0x13   :  { %p6673_p5 = scmp.ne.s32.totalorder %s56_s29, %s6672_s30  ;;  %p6678_p7 = scmp.lt.s32.totalorder %s6672_s30, %s6672_s30 }
  0x15   :  { %p6679_p8 = por %p6678_p7, %p6677_p6 }
  0x17   :  { %p6680_p9 = pnand %p6679_p8, %p6673_p5 }
  0x19   :  { %6683 = shalt.err (!%p6680_p9)
}
  0x1a   :  { %s6798_s7 = smov 128   ;;  %s6799_s8 = smov 8  }
  0x1b   :  { %61 = dma.hbm_to_vmem [thread:$0]  %s8049_s3, 8192, %s56_s29, [#allocation9], %s6798_s7, %s6798_s7, %s6799_s8  }
  0x1c   :  { %s6800_s11 = smov [#allocation2]  }
  0x1d   :  { %s21_s12 = sshll.u32 %s6800_s11, 4  ;;  %s22_s12 = int_to_ptr.vmem [resolvable:$true] %s21_s12 }
  0x1e   :  { %s6692_s1 = scalar_lea.vmem %s22_s12, 1152  ;;  %p6697_p11 = scmp.lt.s32.totalorder %s22_s12, %s22_s12 }
  0x1f   :  { %p6693_p10 = scmp.ne.s32.totalorder %s22_s12, %s6692_s1  ;;  %p6698_p12 = scmp.lt.s32.totalorder %s6692_s1, %s6692_s1 }
  0x21   :  { %p6699_p13 = por %p6698_p12, %p6697_p11 }
  0x23   :  { %p6700_p0 = pnand %p6699_p13, %p6693_p10 }
  0x25   :  { %6703 = shalt.err (!%p6700_p0)
}
  0x26   :  { %s6801_s13 = smov 192   ;;  %s6802_s14 = smov 12  }
  0x27   :  { %27 = dma.hbm_to_vmem [thread:$0]  %s8046_s0, 1152, %s22_s12, [#allocation3], %s6801_s13, %s6801_s13, %s6802_s14  }
  0x28   :  { %s6803_s17 = smov [#allocation7]   ;;  %s6804_s3 = smov [#allocation10]  }
  0x29   :  { %s46_s18 = sshll.u32 %s6803_s17, 4  ;;  %s68_s19 = sshll.u32 %s6804_s3, 4  ;;  %s47_s18 = int_to_ptr.vmem [resolvable:$true] %s46_s18  ;;  %s69_s19 = int_to_ptr.vmem [resolvable:$true] %s68_s19 }
  0x2a   :  { %s6712_s20 = scalar_lea.vmem %s47_s18, 64  ;;  %p6717_p2 = scmp.lt.s32.totalorder %s47_s18, %s47_s18 }
  0x2b   :  { %p6713_p1 = scmp.ne.s32.totalorder %s47_s18, %s6712_s20  ;;  %p6718_p3 = scmp.lt.s32.totalorder %s6712_s20, %s6712_s20 }
  0x2d   :  { %p6719_p4 = por %p6718_p3, %p6717_p2 }
  0x2f   :  { %p6720_p5 = pnand %p6719_p4, %p6713_p1 }
  0x31   :  { %6723 = shalt.err (!%p6720_p5)
}
  0x32   :  { %49 = dma.hbm_to_vmem [thread:$0]  %s8048_s2, 64, %s47_s18, [#allocation6]  }
  0x33   :  { %s6732_s23 = scalar_lea.vmem %s69_s19, 32  ;;  %p6737_p7 = scmp.lt.s32.totalorder %s69_s19, %s69_s19 }
  0x34   :  { %p6733_p6 = scmp.ne.s32.totalorder %s69_s19, %s6732_s23  ;;  %p6738_p8 = scmp.lt.s32.totalorder %s6732_s23, %s6732_s23 }
  0x36   :  { %p6739_p9 = por %p6738_p8, %p6737_p7 }
  0x38   :  { %p6740_p10 = pnand %p6739_p9, %p6733_p6 }
  0x3a   :  { %6743 = shalt.err (!%p6740_p10)
}
  0x3b   :  { %71 = dma.hbm_to_vmem [thread:$0]  %s8050_s4, 32, %s69_s19, [#allocation9]  }
  0x3c   :  { %s6805_s25 = smov [#allocation11]  }
  0x3d   :  { %s78_s26 = sshll.u32 %s6805_s25, 4  ;;  %s79_s26 = int_to_ptr.vmem [resolvable:$true] %s78_s26 }
  0x3e   :  { %s6752_s27 = scalar_lea.vmem %s79_s26, 32  ;;  %p6757_p12 = scmp.lt.s32.totalorder %s79_s26, %s79_s26 }
  0x3f   :  { %p6753_p11 = scmp.ne.s32.totalorder %s79_s26, %s6752_s27  ;;  %p6758_p13 = scmp.lt.s32.totalorder %s6752_s27, %s6752_s27 }
  0x41   :  { %p6759_p0 = por %p6758_p13, %p6757_p12 }
  0x43   :  { %p6760_p1 = pnand %p6759_p0, %p6753_p11 }
  0x45   :  { %6763 = shalt.err (!%p6760_p1)
}
  0x46   :  { %81 = dma.hbm_to_vmem [thread:$0]  %s8051_s5, 32, %s79_s26, [#allocation12]  }
  0x47   :  { %6784 = dma.done.wait [#allocation3], 1152  }
  0x48   :  { %6785 = vsyncadd [#allocation3], 4294966144 }
  0x49   :  { %6786 = dma.done.wait [#allocation6], 36928  }
  0x4a   :  { %6787 = vsyncadd [#allocation6], 4294930368 }
  0x4b   :  { %6788 = dma.done.wait [#allocation9], 8224  }
  0x4c   :  { %6789 = vsyncadd [#allocation9], 4294959072 }
  0x4d   :  { %6790 = dma.done.wait [#allocation12], 32  }
  0x4e   :  { %6791 = vsyncadd [#allocation12], 4294967264  ;;  %v6806_v0 = vmov 0   ;;  %vm483_vm0 = vsmask.f32 256  ;;  %v144_v23 = vlaneseq  ;;  %s6809_s4 = smov [#allocation13]  }
  0x4f   :  { %1549 = vmatprep.mubr.bf16.mxu1 %v6806_v0  ;;  %vm484_vm1 = vsmask.f32 1284  ;;  %vm486_vm3 = vsmask.f32 2312  ;;  %v6068_v2 = vld [vmem:[#allocation5 + $0x3e4] ss:$16 sps:$4 sm:$0xff]  }
  0x50   :  { %vm485_vm2 = vmor %vm483_vm0, %vm484_vm1  ;;  %v6070_v3 = vld [vmem:[#allocation5 + $0x5e4] ss:$16 sps:$4 sm:$0xff]   ;;  %1454 = vmatprep.subr.bf16.mxu0 %v6068_v2  ;;  %v6072_v4 = vld [vmem:[#allocation5 + $0x3e0] ss:$16 sps:$4 sm:$0xff]   ;;  %vm488_vm5 = vsmask.f32 3340 }
  0x51   :  { %vm6864_vm4 = vmor %vm485_vm2, %vm486_vm3  ;;  %v6073_v5 = vld [vmem:[#allocation5 + $0x5e0] ss:$16 sps:$4 sm:$0xff]   ;;  %1517 = vmatprep.subr.bf16.mxu1 %v6070_v3  ;;  %v6074_v6 = vld [vmem:[#allocation5 + $0x3c4] ss:$16 sps:$4 sm:$0xff]   ;;  %1455 = vmatpush1.bf16.msra.mxu0 %v6072_v4  ;;  %vm490_vm7 = vsmask.f32 4368 }
  0x52   :  { %1518 = vmatpush1.bf16.msra.mxu1 %v6073_v5  ;;  %v6076_v7 = vld [vmem:[#allocation5 + $0x5c4] ss:$16 sps:$4 sm:$0xff]   ;;  %v6078_v8 = vld [vmem:[#allocation5 + $0x3c0] ss:$16 sps:$4 sm:$0xff]   ;;  %1456 = vmatprep.subr.bf16.mxu0 %v6074_v6  ;;  %vm6870_vm6 = vmor %vm6864_vm4, %vm488_vm5  ;;  %v6807_v21 = vmov 1966171168  }
  0x53   :  { %v6079_v9 = vld [vmem:[#allocation5 + $0x5c0] ss:$16 sps:$4 sm:$0xff]   ;;  %1519 = vmatprep.subr.bf16.mxu1 %v6076_v7  ;;  %v6080_v10 = vld [vmem:[#allocation5 + $0x3a4] ss:$16 sps:$4 sm:$0xff]   ;;  %v142_v22 = vunpack.c.l.s4 %v6807_v21  ;;  %vm491_vm8 = vmor %vm6870_vm6, %vm490_vm7  ;;  %vm492_vm9 = vsmask.f32 5396 }
  0x54   :  { %v6082_v11 = vld [vmem:[#allocation5 + $0x5a4] ss:$16 sps:$4 sm:$0xff]   ;;  %v6084_v12 = vld [vmem:[#allocation5 + $0x3a0] ss:$16 sps:$4 sm:$0xff]   ;;  %v6876_v29 = vshrl.u32 %v144_v23, 7  ;;  %vm6878_vm10 = vmor %vm491_vm8, %vm492_vm9  ;;  %vm4910_vm0 = vcmask 1045504  }
  0x55   :  { %v6085_v13 = vld [vmem:[#allocation5 + $0x5a0] ss:$16 sps:$4 sm:$0xff]   ;;  %1457 = vmatpush1.bf16.msra.mxu0 %v6078_v8  ;;  %v6086_v14 = vld [vmem:[#allocation5 + $0x384] ss:$16 sps:$4 sm:$0xff]   ;;  %v143_v28 = vunpack.c.0.s8 %v142_v22  ;;  %vm494_vm11 = vsmask.f32 6424 }
  0x56   :  { %1520 = vmatpush1.bf16.msra.mxu1 %v6079_v9  ;;  %1458 = vmatprep.subr.bf16.mxu0 %v6080_v10  ;;  %v6088_v15 = vld [vmem:[#allocation5 + $0x584] ss:$16 sps:$4 sm:$0xff]   ;;  %v6090_v17 = vld [vmem:[#allocation5 + $0x380] ss:$16 sps:$4 sm:$0xff]   ;;  %vm496_vm12 = vsmask.f32 7452  ;;  %vm6890_vm13 = vmor %vm6878_vm10, %vm494_vm11 }
  0x57   :  { %1521 = vmatprep.subr.bf16.mxu1 %v6082_v11  ;;  %v6091_v18 = vld [vmem:[#allocation5 + $0x580] ss:$16 sps:$4 sm:$0xff]   ;;  %v6092_v19 = vld [vmem:[#allocation5 + $0x364] ss:$16 sps:$4 sm:$0xff]   ;;  %v6883_v38 = vsub.s32 %v143_v28, %v6876_v29  ;;  %vm6914_vm14 = vmor %vm6890_vm13, %vm496_vm12  ;;  %vm5605_vm1 = vcmask 1041409   ;;  %vm5607_vm2 = vcmask 1043459  }
  0x58   :  { %v6094_v20 = vld [vmem:[#allocation5 + $0x564] ss:$16 sps:$4 sm:$0xff]   ;;  %v6096_v24 = vld [vmem:[#allocation5 + $0x360] ss:$16 sps:$4 sm:$0xff]   ;;  %v6120_v3 = vld [vmem:[#allocation5 + $0x3ec] ss:$16 sps:$4 sm:$0xff]  }
  0x59   :  { %1459 = vmatpush1.bf16.msra.mxu0 %v6084_v12  ;;  %v6097_v25 = vld [vmem:[#allocation5 + $0x560] ss:$16 sps:$4 sm:$0xff]   ;;  %v6098_v26 = vld [vmem:[#allocation5 + $0x344] ss:$16 sps:$4 sm:$0xff]   ;;  %v6191_v59 = vld [vmem:[#allocation5 + $0x568] ss:$16 sps:$4 sm:$0xff]  }
  0x5a   :  { %1522 = vmatpush1.bf16.msra.mxu1 %v6085_v13  ;;  %1460 = vmatprep.subr.bf16.mxu0 %v6086_v14  ;;  %v6100_v27 = vld [vmem:[#allocation5 + $0x544] ss:$16 sps:$4 sm:$0xff]   ;;  %v6102_v31 = vld [vmem:[#allocation5 + $0x340] ss:$16 sps:$4 sm:$0xff]   ;;  %vm5609_vm3 = vcmask 1045509   ;;  %s5621_s5 = sshll.u32 %s6809_s4, 4  ;;  %s5622_s5 = int_to_ptr.vmem [resolvable:$true] %s5621_s5 }
  0x5b   :  { %1523 = vmatprep.subr.bf16.mxu1 %v6088_v15  ;;  %v6103_v32 = vld [vmem:[#allocation5 + $0x540] ss:$16 sps:$4 sm:$0xff]   ;;  %v6104_v33 = vld [vmem:[#allocation5 + $0x324] ss:$16 sps:$4 sm:$0xff]   ;;  %vm5611_vm4 = vcmask 1047559   ;;  %s6764_s29 = scalar_lea.vmem %s5622_s5, 128  ;;  %p6769_p3 = scmp.lt.s32.totalorder %s5622_s5, %s5622_s5 }
  0x5c   :  { %v6106_v34 = vld [vmem:[#allocation5 + $0x524] ss:$16 sps:$4 sm:$0xff]   ;;  %v6108_v35 = vld [vmem:[#allocation5 + $0x320] ss:$16 sps:$4 sm:$0xff]   ;;  %p6765_p2 = scmp.ne.s32.totalorder %s5622_s5, %s6764_s29  ;;  %p6770_p4 = scmp.lt.s32.totalorder %s6764_s29, %s6764_s29 }
  0x5d   :  { %1461 = vmatpush1.bf16.msra.mxu0 %v6090_v17  ;;  %v6109_v36 = vld [vmem:[#allocation5 + $0x520] ss:$16 sps:$4 sm:$0xff]   ;;  %v5633_v37 = vld.sshfl [vmem:[#allocation2] sm:$0xff pattern:$0x75316420] }
  0x5e   :  { %1524 = vmatpush1.bf16.msra.mxu1 %v6091_v18  ;;  %1462 = vmatprep.subr.bf16.mxu0 %v6092_v19  ;;  %v6110_v39 = vld [vmem:[#allocation5 + $0x304] ss:$16 sps:$4 sm:$0xff]   ;;  %v5634_v41 = vld.sshfl [vmem:[#allocation2 + $0x8] sm:$0x33 pattern:$0x75316420]  ;;  %p6771_p5 = por %p6770_p4, %p6769_p3 }
  0x5f   :  { %1525 = vmatprep.subr.bf16.mxu1 %v6094_v20  ;;  %v6112_v40 = vld [vmem:[#allocation5 + $0x504] ss:$16 sps:$4 sm:$0xff]   ;;  %v139_v43 = vcombine.low %v5633_v37, %v5634_v41  ;;  %v140_v44 = vcombine.high %v5633_v37, %v5634_v41  ;;  %v5636_v47 = vld.sshfl [vmem:[#allocation2 + $0x14] sm:$0x33 pattern:$0x75316420] }
  0x60   :  { %v5635_v42 = vld.sshfl [vmem:[#allocation2 + $0xc] sm:$0xff pattern:$0x75316420]  ;;  %v6885_v45 = vld.sshfl [vmem:[#allocation2 + $0x18] sm:$0xff pattern:$0x75316420]  ;;  %p6772_p6 = pnand %p6771_p5, %p6765_p2 }
  0x61   :  { %1463 = vmatpush1.bf16.msra.mxu0 %v6096_v24  ;;  %v6895_v48 = vrot.slane %v139_v43, %v6883_v38  ;;  %v6898_v49 = vrot.slane %v140_v44, %v6883_v38  ;;  %v171_v50 = vcombine.low %v5635_v42, %v5636_v47  ;;  %v172_v51 = vcombine.high %v5635_v42, %v5636_v47  ;;  %v6900_v52 = vld.sshfl [vmem:[#allocation2 + $0x20] sm:$0x33 pattern:$0x75316420]  ;;  %v6114_v53 = vld [vmem:[#allocation5 + $0x300] ss:$16 sps:$4 sm:$0xff]  }
  0x62   :  { %1526 = vmatpush1.bf16.msra.mxu1 %v6097_v25  ;;  %1464 = vmatprep.subr.bf16.mxu0 %v6098_v26  ;;  %v6115_v54 = vld [vmem:[#allocation5 + $0x500] ss:$16 sps:$4 sm:$0xff]   ;;  %v433_v55 = vcombine.low %v6885_v45, %v6900_v52  ;;  %v6116_v61 = vld [vmem:[#allocation5 + $0x4e4] ss:$16 sps:$4 sm:$0xff]   ;;  %v434_v47 = vcombine.high %v6885_v45, %v6900_v52 }
  0x63   :  { %1527 = vmatprep.subr.bf16.mxu1 %v6100_v27  ;;  %v155_v56 = vcombine.high %v6895_v48, %v6895_v48  ;;  %v156_v57 = vcombine.high %v6898_v49, %v6898_v49  ;;  %v6909_v58 = vrot.slane %v171_v50, %v6883_v38  ;;  %v499_v60 = vshrl.u32 %v6895_v48, 16  ;;  %v6121_v16 = vld [vmem:[#allocation5 + $0x4e0] ss:$16 sps:$4 sm:$0xff]   ;;  %v6122_v21 = vld [vmem:[#allocation5 + $0x4c4] ss:$16 sps:$4 sm:$0xff]  }
  0x64   :  { %v6920_v62 = vrot.slane %v172_v51, %v6883_v38  ;;  %v6923_v63 = vrot.slane %v433_v55, %v6883_v38  ;;  %v504_v1 = vshll.u32 %v6898_v49, 16  ;;  %v507_v2 = vshrl.u32 %v6898_v49, 16  ;;  %v6128_v37 = vld [vmem:[#allocation5 + $0x4a4] ss:$16 sps:$4 sm:$0xff]   ;;  %v6133_v46 = vld [vmem:[#allocation5 + $0x4a0] ss:$16 sps:$4 sm:$0xff]  }
  0x65   :  { %1465 = vmatpush1.bf16.msra.mxu0 %v6102_v31  ;;  %v187_v4 = vcombine.high %v6909_v58, %v6909_v58  ;;  %v512_v5 = vshll.u32 %v155_v56, 16  ;;  %v515_v6 = vshrl.u32 %v155_v56, 16  ;;  %v520_v7 = vshll.u32 %v156_v57, 16 }
  0x66   :  { %1528 = vmatpush1.bf16.msra.mxu1 %v6103_v32  ;;  %1466 = vmatprep.subr.bf16.mxu0 %v6104_v33  ;;  %v188_v8 = vcombine.high %v6920_v62, %v6920_v62  ;;  %v506_v9 = vsel %vm6914_vm14, %v499_v60, %v504_v1  ;;  %v523_v10 = vshrl.u32 %v156_v57, 16  ;;  %v528_v11 = vshll.u32 %v6909_v58, 16  ;;  %v6127_v33 = vld [vmem:[#allocation5 + $0x4c0] ss:$16 sps:$4 sm:$0xff]   ;;  %v6118_v57 = vld [vmem:[#allocation5 + $0x3e8] ss:$16 sps:$4 sm:$0xff]  }
  0x67   :  { %1529 = vmatprep.subr.bf16.mxu1 %v6106_v34  ;;  %v514_v12 = vsel %vm6914_vm14, %v507_v2, %v512_v5  ;;  %v522_v13 = vsel %vm6914_vm14, %v515_v6, %v520_v7  ;;  %v531_v14 = vshrl.u32 %v6909_v58, 16  ;;  %v536_v15 = vshll.u32 %v6920_v62, 16  ;;  %v6126_v60 = vld [vmem:[#allocation5 + $0x3cc] ss:$16 sps:$4 sm:$0xff]  }
  0x68   :  { %v530_v17 = vsel %vm6914_vm14, %v523_v10, %v528_v11  ;;  %v539_v18 = vshrl.u32 %v6920_v62, 16  ;;  %v544_v19 = vshll.u32 %v187_v4, 16  ;;  %v547_v20 = vshrl.u32 %v187_v4, 16  ;;  %v6124_v11 = vld [vmem:[#allocation5 + $0x3c8] ss:$16 sps:$4 sm:$0xff]  }
  0x69   :  { %1467 = vmatpush1.bf16.msra.mxu0 %v6108_v35  ;;  %v538_v22 = vsel %vm6914_vm14, %v531_v14, %v536_v15  ;;  %v552_v23 = vshll.u32 %v188_v8, 16  ;;  %v555_v24 = vshrl.u32 %v188_v8, 16  ;;  %v560_v25 = vshll.u32 %v6923_v63, 16 }
  0x6a   :  { %1530 = vmatpush1.bf16.msra.mxu1 %v6109_v36  ;;  %1468 = vmatprep.subr.bf16.mxu0 %v6110_v39  ;;  %v546_v26 = vsel %vm6914_vm14, %v539_v18, %v544_v19  ;;  %v773_v27 = vcombine.low %v506_v9, %v514_v12  ;;  %v774_v28 = vcombine.low %v522_v13, %v530_v17  ;;  %v6145_v12 = vld [vmem:[#allocation5 + $0x460] ss:$16 sps:$4 sm:$0xff]   ;;  %v6146_v17 = vld [vmem:[#allocation5 + $0x444] ss:$16 sps:$4 sm:$0xff]  }
  0x6b   :  { %1531 = vmatprep.subr.bf16.mxu1 %v6112_v40  ;;  %v554_v30 = vsel %vm6914_vm14, %v547_v20, %v552_v23  ;;  %v562_v31 = vsel %vm6914_vm14, %v555_v24, %v560_v25  ;;  %v775_v32 = vcombine.low %v538_v22, %v546_v26  ;;  %v1706_v40 = vcombine.low %v6895_v48, %v6898_v49 }
  0x6c   :  { %v776_v34 = vcombine.low %v554_v30, %v562_v31  ;;  %v783_v35 = vrot.slane %v773_v27, %v6883_v38  ;;  %v790_v36 = vrot.slane %v774_v28, %v6883_v38  ;;  %v5767_v41 = vcombine.high %v6895_v48, %v6898_v49  ;;  %v6134_v48 = vld [vmem:[#allocation5 + $0x484] ss:$16 sps:$4 sm:$0xff]   ;;  %v6130_v27 = vld [vmem:[#allocation5 + $0x3a8] ss:$16 sps:$4 sm:$0xff]   ;;  %v6151_v28 = vld [vmem:[#allocation5 + $0x440] ss:$16 sps:$4 sm:$0xff]  }
  0x6d   :  { %1469 = vmatpush1.bf16.msra.mxu0 %v6114_v53  ;;  %v797_v39 = vrot.slane %v775_v32, %v6883_v38  ;;  %v1708_v50 = vcombine.low %v6909_v58, %v6920_v62  ;;  %v5768_v51 = vcombine.high %v6909_v58, %v6920_v62  ;;  %v1716_v52 = vrot.slane %v1706_v40, %v6883_v38  ;;  %v6139_v58 = vld [vmem:[#allocation5 + $0x480] ss:$16 sps:$4 sm:$0xff]   ;;  %v6138_v30 = vld [vmem:[#allocation5 + $0x38c] ss:$16 sps:$4 sm:$0xff]   ;;  %v6152_v31 = vld [vmem:[#allocation5 + $0x424] ss:$16 sps:$4 sm:$0xff]  }
  0x6e   :  { %1532 = vmatpush1.bf16.msra.mxu1 %v6115_v54  ;;  %1470 = vmatprep.subr.bf16.mxu0 %v6116_v61  ;;  %v804_v42 = vrot.slane %v776_v34, %v6883_v38  ;;  %v805_v43 = vcombine.low %v783_v35, %v790_v36  ;;  %v806_v44 = vcombine.high %v783_v35, %v790_v36  ;;  %v563_v20 = vshrl.u32 %v6923_v63, 16  ;;  %v6144_v34 = vld [vmem:[#allocation5 + $0x36c] ss:$16 sps:$4 sm:$0xff]   ;;  %v6157_v35 = vld [vmem:[#allocation5 + $0x420] ss:$16 sps:$4 sm:$0xff]  }
  0x6f   :  { %1580 = vmatprep.subr.bf16.mxu1 %v6120_v3  ;;  %v1723_v61 = vrot.slane %v5767_v41, %v6883_v38  ;;  %v1730_v62 = vrot.slane %v1708_v50, %v6883_v38  ;;  %v1737_v1 = vrot.slane %v5768_v51, %v6883_v38  ;;  %v6140_v3 = vld [vmem:[#allocation5 + $0x464] ss:$16 sps:$4 sm:$0xff]   ;;  %v448_v5 = vrot.slane %v434_v47, %v6883_v38  ;;  %v5639_v36 = vld.sshfl [vmem:[#allocation2 + $0x24] sm:$0xff pattern:$0x75316420] }
  0x70   :  { %v807_v53 = vcombine.low %v797_v39, %v804_v42  ;;  %v6967_v54 = vrot.slane %v805_v43, %v6883_v38  ;;  %v808_v49 = vcombine.high %v797_v39, %v804_v42  ;;  %v822_v55 = vrot.slane %v806_v44, %v6883_v38  ;;  %v5640_v40 = vld.sshfl [vmem:[#allocation2 + $0x2c] sm:$0x33 pattern:$0x75316420]  ;;  %v6142_v50 = vld [vmem:[#allocation5 + $0x368] ss:$16 sps:$4 sm:$0xff]  }
  0x71   :  { %1471 = vmatpush2.bf16.msra.mxu0 %v6121_v16  ;;  %v1738_v6 = vcombine.low %v1716_v52, %v1723_v61  ;;  %v1740_v7 = vcombine.low %v1730_v62, %v1737_v1  ;;  %v1739_v8 = vcombine.high %v1716_v52, %v1723_v61  ;;  %v1741_v9 = vcombine.high %v1730_v62, %v1737_v1  ;;  %v6132_v16 = vld [vmem:[#allocation5 + $0x3ac] ss:$16 sps:$4 sm:$0xff]   ;;  %v6158_v41 = vld [vmem:[#allocation5 + $0x404] ss:$16 sps:$4 sm:$0xff]   ;;  %v6167_v1 = vld [vmem:[#allocation5 + $0x5e8] ss:$16 sps:$4 sm:$0xff]  }
  0x72   :  { %1472 = vmatprep.subr.bf16.mxu0 %v6122_v21  ;;  %v6971_v56 = vrot.slane %v807_v53, %v6883_v38  ;;  %v836_v45 = vrot.slane %v808_v49, %v6883_v38  ;;  %v449_v10 = vcombine.high %v6923_v63, %v6923_v63  ;;  %v450_v19 = vcombine.high %v448_v5, %v448_v5  ;;  %v6136_v63 = vld [vmem:[#allocation5 + $0x388] ss:$16 sps:$4 sm:$0xff]  }
  0x73   :  { %v1748_v13 = vrot.slane %v1738_v6, %v6883_v38  ;;  %v1762_v14 = vrot.slane %v1740_v7, %v6883_v38  ;;  %v1755_v15 = vrot.slane %v1739_v8, %v6883_v38  ;;  %v1769_v18 = vrot.slane %v1741_v9, %v6883_v38  ;;  %v5641_v42 = vld.sshfl [vmem:[#allocation2 + $0x30] sm:$0xff pattern:$0x75316420] }
  0x74   :  { %v6980_v2 = vcombine.high %v6967_v54, %v6971_v56  ;;  %v6982_v4 = vcombine.low %v822_v55, %v836_v45  ;;  %v568_v23 = vshll.u32 %v448_v5, 16  ;;  %v571_v24 = vshrl.u32 %v448_v5, 16  ;;  %v6150_v55 = vld [vmem:[#allocation5 + $0x34c] ss:$16 sps:$4 sm:$0xff]  }
  0x75   :  { %1473 = vmatpush2.bf16.msra.mxu0 %v6127_v33  ;;  %v6995_v21 = vcombine.high %v1748_v13, %v1762_v14  ;;  %v6997_v22 = vcombine.low %v1748_v13, %v1762_v14  ;;  %v576_v25 = vshll.u32 %v449_v10, 16  ;;  %v6999_v26 = vcombine.low %v1755_v15, %v1769_v18  ;;  %v6156_v8 = vld [vmem:[#allocation5 + $0x32c] ss:$16 sps:$4 sm:$0xff]   ;;  %v5647_v18 = vld.sshfl [vmem:[#allocation2 + $0x3c] sm:$0xff pattern:$0x75316420] }
  0x76   :  { %1474 = vmatprep.subr.bf16.mxu0 %v6128_v37  ;;  %1550 = vmatmul.mubr.bf16.vlgmr.msra.gmra.mxu1 %v6980_v2  ;;  %v579_v32 = vshrl.u32 %v449_v10, 16  ;;  %v584_v33 = vshll.u32 %v450_v19, 16  ;;  %v570_v37 = vsel %vm6914_vm14, %v563_v20, %v568_v23  ;;  %v234_v43 = vcombine.low %v5639_v36, %v5640_v40  ;;  %v6175_v9 = vld [vmem:[#allocation5 + $0x5cc] ss:$16 sps:$4 sm:$0xff]  }
  0x77   :  { %1486 = vmatprep.mubr.bf16.mxu0 %v6982_v4  ;;  %1581 = vmatpush1.bf16.msra.mxu1 %v6118_v57  ;;  %v578_v39 = vsel %vm6914_vm14, %v571_v24, %v576_v25  ;;  %v235_v44 = vcombine.high %v5639_v36, %v5640_v40  ;;  %v6163_v57 = vld [vmem:[#allocation5 + $0x400] ss:$16 sps:$4 sm:$0xff]   ;;  %v7013_v45 = vcombine.low %v6967_v54, %v6971_v56  ;;  %v6148_v56 = vld [vmem:[#allocation5 + $0x348] ss:$16 sps:$4 sm:$0xff]   ;;  %v6162_v36 = vld [vmem:[#allocation5 + $0x30c] ss:$16 sps:$4 sm:$0xff]  }
  0x78   :  { %1582 = vmatprep.subr.bf16.mxu1 %v6126_v60  ;;  %1559 = vmatprep.mubr.bf16.mxu1 %v6806_v0  ;;  %v840_v47 = vcombine.low %v570_v37, %v578_v39  ;;  %v7006_v51 = vrot.slane %v234_v43, %v6883_v38  ;;  %v586_v52 = vsel %vm6914_vm14, %v579_v32, %v584_v33  ;;  %v6169_v60 = vld [vmem:[#allocation5 + $0x5ec] ss:$16 sps:$4 sm:$0xff]   ;;  %v6173_v37 = vld [vmem:[#allocation5 + $0x5c8] ss:$16 sps:$4 sm:$0xff]  }
  0x79   :  { %1475 = vmatpush2.bf16.msra.mxu0 %v6133_v46  ;;  %v5642_v46 = vld.sshfl [vmem:[#allocation2 + $0x38] sm:$0x33 pattern:$0x75316420]  ;;  %v7009_v53 = vrot.slane %v235_v44, %v6883_v38  ;;  %v6181_v43 = vld [vmem:[#allocation5 + $0x5ac] ss:$16 sps:$4 sm:$0xff]  }
  0x7a   :  { %1476 = vmatprep.subr.bf16.mxu0 %v6134_v48  ;;  %v266_v48 = vcombine.low %v5641_v42, %v5642_v46  ;;  %v267_v49 = vcombine.high %v5641_v42, %v5642_v46  ;;  %v588_v54 = vshrl.u32 %v7006_v51, 16  ;;  %v850_v7 = vrot.slane %v840_v47, %v6883_v38  ;;  %v5648_v24 = vld.sshfl [vmem:[#allocation2 + $0x44] sm:$0x33 pattern:$0x75316420] }
  0x7b   :  { %1583 = vmatpush1.bf16.msra.mxu1 %v6124_v11  ;;  %v7023_v61 = vcombine.high %v7009_v53, %v7009_v53  ;;  %v593_v5 = vshll.u32 %v7009_v53, 16  ;;  %v596_v6 = vshrl.u32 %v7009_v53, 16  ;;  %v466_v40 = vcombine.high %v5647_v18, %v5648_v24 }
  0x7c   :  { %1584 = vmatprep.subr.bf16.mxu1 %v6132_v16  ;;  %v7026_v62 = vrot.slane %v266_v48, %v6883_v38 }
  0x7d   :  { %1477 = vmatpush2.bf16.msra.mxu0 %v6139_v58  ;;  %v7019_v58 = vcombine.high %v7006_v51, %v7006_v51  ;;  %v612_v13 = vshrl.u32 %v7023_v61, 16  ;;  %v595_v14 = vsel %vm6914_vm14, %v588_v54, %v593_v5  ;;  %v6179_v5 = vld [vmem:[#allocation5 + $0x5a8] ss:$16 sps:$4 sm:$0xff]  }
  0x7e   :  { %1478 = vmatprep.subr.bf16.mxu0 %v6140_v3  ;;  %v7030_v3 = vrot.slane %v267_v49, %v6883_v38  ;;  %v617_v15 = vshll.u32 %v7026_v62, 16  ;;  %v620_v16 = vshrl.u32 %v7026_v62, 16  ;;  %v841_v23 = vcombine.low %v586_v52, %v595_v14 }
  0x7f   :  { %1585 = vmatpush1.bf16.msra.mxu1 %v6130_v27  ;;  %v601_v10 = vshll.u32 %v7019_v58, 16  ;;  %v604_v11 = vshrl.u32 %v7019_v58, 16  ;;  %v480_v49 = vrot.slane %v466_v40, %v6883_v38 }
  0x80   :  { %1586 = vmatprep.subr.bf16.mxu1 %v6138_v30  ;;  %v628_v25 = vshrl.u32 %v7030_v3, 16  ;;  %v619_v27 = vsel %vm6914_vm14, %v612_v13, %v617_v15  ;;  %v857_v33 = vrot.slane %v841_v23, %v6883_v38  ;;  %v6164_v15 = vld [vmem:[#allocation5 + $0x4e8] ss:$16 sps:$4 sm:$0xff]  }
  0x81   :  { %1479 = vmatpush2.bf16.msra.mxu0 %v6145_v12  ;;  %v609_v12 = vshll.u32 %v7023_v61, 16  ;;  %v603_v19 = vsel %vm6914_vm14, %v596_v6, %v601_v10  ;;  %v6166_v10 = vld [vmem:[#allocation5 + $0x4ec] ss:$16 sps:$4 sm:$0xff]   ;;  %v657_v14 = vshll.u32 %v480_v49, 16 }
  0x82   :  { %1480 = vmatprep.subr.bf16.mxu0 %v6146_v17  ;;  %v625_v17 = vshll.u32 %v7030_v3, 16  ;;  %v873_v46 = vcombine.high %v850_v7, %v857_v33  ;;  %v872_v47 = vcombine.low %v850_v7, %v857_v33  ;;  %v482_v7 = vcombine.high %v480_v49, %v480_v49 }
  0x83   :  { %1587 = vmatpush1.bf16.msra.mxu1 %v6136_v63  ;;  %v611_v20 = vsel %vm6914_vm14, %v604_v11, %v609_v12  ;;  %v6154_v63 = vld [vmem:[#allocation5 + $0x328] ss:$16 sps:$4 sm:$0xff]  }
  0x84   :  { %1588 = vmatprep.subr.bf16.mxu1 %v6144_v34  ;;  %v842_v30 = vcombine.low %v603_v19, %v611_v20  ;;  %v7061_v34 = vcombine.high %v7030_v3, %v7030_v3  ;;  %v6172_v20 = vld [vmem:[#allocation5 + $0x4cc] ss:$16 sps:$4 sm:$0xff]  }
  0x85   :  { %1481 = vmatpush2.bf16.msra.mxu0 %v6151_v28  ;;  %v627_v28 = vsel %vm6914_vm14, %v620_v16, %v625_v17  ;;  %v660_v17 = vshrl.u32 %v480_v49, 16 }
  0x86   :  { %1482 = vmatprep.subr.bf16.mxu0 %v6152_v31  ;;  %v7055_v31 = vcombine.high %v7026_v62, %v7026_v62  ;;  %v843_v32 = vcombine.low %v619_v27, %v627_v28  ;;  %v864_v39 = vrot.slane %v842_v30, %v6883_v38  ;;  %v6187_v27 = vld [vmem:[#allocation5 + $0x58c] ss:$16 sps:$4 sm:$0xff]   ;;  %v6185_v30 = vld [vmem:[#allocation5 + $0x588] ss:$16 sps:$4 sm:$0xff]  }
  0x87   :  { %1589 = vmatpush1.bf16.msra.mxu1 %v6142_v50  ;;  %v641_v50 = vshll.u32 %v7061_v34, 16 }
  0x88   :  { %1590 = vmatprep.subr.bf16.mxu1 %v6150_v55  ;;  %v636_v42 = vshrl.u32 %v7055_v31, 16  ;;  %v871_v44 = vrot.slane %v843_v32, %v6883_v38  ;;  %v673_v32 = vshll.u32 %v482_v7, 16  ;;  %v1840_v40 = vcombine.low %v7030_v3, %v7055_v31  ;;  %v6292_v3 = vld [vmem:[#allocation5 + $0x144] ss:$16 sps:$4 sm:$0xff]  }
  0x89   :  { %1483 = vmatpush2.bf16.msra.mxu0 %v6157_v35  ;;  %v465_v35 = vcombine.low %v5647_v18, %v5648_v24 }
  0x8a   :  { %1484 = vmatprep.subr.bf16.mxu0 %v6158_v41  ;;  %v633_v41 = vshll.u32 %v7055_v31, 16  ;;  %v875_v52 = vcombine.high %v864_v39, %v871_v44  ;;  %v874_v54 = vcombine.low %v864_v39, %v871_v44  ;;  %v1776_v39 = vcombine.low %v7023_v61, %v7026_v62  ;;  %v6170_v44 = vld [vmem:[#allocation5 + $0x4c8] ss:$16 sps:$4 sm:$0xff]  }
  0x8b   :  { %1591 = vmatpush1.bf16.msra.mxu1 %v6148_v56  ;;  %v473_v48 = vrot.slane %v465_v35, %v6883_v38  ;;  %v882_v56 = vrot.slane %v872_v47, %v6883_v38 }
  0x8c   :  { %1592 = vmatprep.subr.bf16.mxu1 %v6156_v8  ;;  %v635_v55 = vsel %vm6914_vm14, %v628_v25, %v633_v41  ;;  %v643_v8 = vsel %vm6914_vm14, %v636_v42, %v641_v50  ;;  %v903_v11 = vrot.slane %v875_v52, %v6883_v38  ;;  %v896_v12 = vrot.slane %v874_v54, %v6883_v38  ;;  %v6176_v52 = vld [vmem:[#allocation5 + $0x4a8] ss:$16 sps:$4 sm:$0xff]  }
  0x8d   :  { %1485 = vmatpush2.bf16.msra.mxu0 %v6163_v57  ;;  %v644_v57 = vshrl.u32 %v7061_v34, 16  ;;  %v481_v6 = vcombine.high %v473_v48, %v473_v48  ;;  %v652_v13 = vshrl.u32 %v473_v48, 16  ;;  %v907_v33 = vcombine.low %v635_v55, %v643_v8 }
  0x8e   :  { %1643 = vmatprep.subr.bf16.mxu0 %v6169_v60  ;;  %v889_v60 = vrot.slane %v873_v46, %v6883_v38  ;;  %v7083_v24 = vcombine.low %v882_v56, %v896_v12  ;;  %v7085_v25 = vcombine.high %v882_v56, %v896_v12  ;;  %v6178_v46 = vld [vmem:[#allocation5 + $0x4ac] ss:$16 sps:$4 sm:$0xff]   ;;  %v7109_v61 = vrot.slane %v1776_v39, %v6883_v38  ;;  %v6215_v39 = vld [vmem:[#allocation5 + $0x2e0] ss:$16 sps:$4 sm:$0xff]  }
  0x8f   :  { %1593 = vmatpush1.bf16.msra.mxu1 %v6154_v63  ;;  %v665_v18 = vshll.u32 %v481_v6, 16  ;;  %v668_v19 = vshrl.u32 %v481_v6, 16  ;;  %v659_v28 = vsel %vm6914_vm14, %v652_v13, %v657_v14  ;;  %v916_v42 = vrot.slane %v907_v33, %v6883_v38  ;;  %v6203_v13 = vld [vmem:[#allocation5 + $0x528] ss:$16 sps:$4 sm:$0xff]   ;;  %v6211_v14 = vld [vmem:[#allocation5 + $0x50c] ss:$16 sps:$4 sm:$0xff]  }
  0x90   :  { %1487 = vmatmul.mubr.bf16.vlgmr.msra.gmra.mxu0 %v7013_v45  ;;  %1594 = vmatprep.subr.bf16.mxu1 %v6162_v36  ;;  %v7081_v23 = vcombine.low %v889_v60, %v903_v11  ;;  %v6193_v36 = vld [vmem:[#allocation5 + $0x56c] ss:$16 sps:$4 sm:$0xff]   ;;  %v6206_v33 = vld [vmem:[#allocation5 + $0x408] ss:$16 sps:$4 sm:$0xff]  }
  0x91   :  { %1644 = vmatpush1.bf16.msra.mxu0 %v6167_v1  ;;  %v6160_v1 = vld [vmem:[#allocation5 + $0x308] ss:$16 sps:$4 sm:$0xff]   ;;  %v667_v63 = vsel %vm6914_vm14, %v660_v17, %v665_v18  ;;  %1560 = vmatmul.mubr.bf16.gmra.mxu1 %v7085_v25  ;;  %v675_v41 = vsel %vm6914_vm14, %v668_v19, %v673_v32  ;;  %v6190_v11 = vld [vmem:[#allocation5 + $0x46c] ss:$16 sps:$4 sm:$0xff]   ;;  %v6214_v18 = vld [vmem:[#allocation5 + $0xe4] ss:$16 sps:$4 sm:$0xff]  }
  0x92   :  { %1645 = vmatprep.subr.bf16.mxu0 %v6175_v9  ;;  %v649_v9 = vshll.u32 %v473_v48, 16  ;;  %1496 = vmatprep.mubr.bf16.mxu0 %v7081_v23  ;;  %v6199_v48 = vld [vmem:[#allocation5 + $0x54c] ss:$16 sps:$4 sm:$0xff]   ;;  %v6209_v17 = vld [vmem:[#allocation5 + $0x508] ss:$16 sps:$4 sm:$0xff]  }
  0x93   :  { %1595 = vmatpush1.bf16.msra.mxu1 %v6160_v1  ;;  %1569 = vmatprep.mubr.bf16.mxu1 %v6806_v0  ;;  %v6197_v1 = vld [vmem:[#allocation5 + $0x548] ss:$16 sps:$4 sm:$0xff]   ;;  %v6226_v32 = vld [vmem:[#allocation5 + $0xa4] ss:$16 sps:$4 sm:$0xff]  }
  0x94   :  { %v651_v16 = vsel %vm6914_vm14, %v644_v57, %v649_v9  ;;  %1596 = vmatprep.subr.bf16.mxu1 %v6166_v10  ;;  %v6205_v9 = vld [vmem:[#allocation5 + $0x52c] ss:$16 sps:$4 sm:$0xff]   ;;  %v6182_v10 = vld [vmem:[#allocation5 + $0x488] ss:$16 sps:$4 sm:$0xff]  }
  0x95   :  { %1646 = vmatpush1.bf16.msra.mxu0 %v6173_v37  ;;  %v908_v35 = vcombine.low %v651_v16, %v659_v28  ;;  %v1775_v37 = vcombine.low %v7009_v53, %v7019_v58  ;;  %v909_v53 = vcombine.low %v667_v63, %v675_v41  ;;  %v6196_v16 = vld [vmem:[#allocation5 + $0x44c] ss:$16 sps:$4 sm:$0xff]   ;;  %v6194_v19 = vld [vmem:[#allocation5 + $0x448] ss:$16 sps:$4 sm:$0xff]   ;;  %v6220_v28 = vld [vmem:[#allocation5 + $0xc4] ss:$16 sps:$4 sm:$0xff]  }
  0x96   :  { %1647 = vmatprep.subr.bf16.mxu0 %v6181_v43  ;;  %v6208_v63 = vld [vmem:[#allocation5 + $0x40c] ss:$16 sps:$4 sm:$0xff]   ;;  %v6230_v41 = vld [vmem:[#allocation5 + $0x80] ss:$16 sps:$4 sm:$0xff]  }
  0x97   :  { %v923_v43 = vrot.slane %v908_v35, %v6883_v38  ;;  %v7106_v58 = vrot.slane %v1775_v37, %v6883_v38  ;;  %1597 = vmatpush2.bf16.msra.mxu1 %v6164_v15  ;;  %v930_v50 = vrot.slane %v909_v53, %v6883_v38  ;;  %v6188_v15 = vld [vmem:[#allocation5 + $0x468] ss:$16 sps:$4 sm:$0xff]   ;;  %v6217_v35 = vld [vmem:[#allocation5 + $0x2e4] ss:$16 sps:$4 sm:$0xff]   ;;  %v6227_v53 = vld [vmem:[#allocation5 + $0x2a0] ss:$16 sps:$4 sm:$0xff]  }
  0x98   :  { %1497 = vmatmul.mubr.bf16.gmra.mxu0 %v7083_v24  ;;  %1598 = vmatprep.subr.bf16.mxu1 %v6172_v20  ;;  %v6202_v20 = vld [vmem:[#allocation5 + $0x42c] ss:$16 sps:$4 sm:$0xff]   ;;  %v6232_v37 = vld [vmem:[#allocation5 + $0x84] ss:$16 sps:$4 sm:$0xff]  }
  0x99   :  { %1648 = vmatpush1.bf16.msra.mxu0 %v6179_v5  ;;  %v932_v62 = vcombine.high %v916_v42, %v923_v43  ;;  %v931_v47 = vcombine.low %v916_v42, %v923_v43  ;;  %v1808_v49 = vcombine.high %v7106_v58, %v7109_v61  ;;  %v1807_v55 = vcombine.low %v7106_v58, %v7109_v61  ;;  %v6184_v5 = vld [vmem:[#allocation5 + $0x48c] ss:$16 sps:$4 sm:$0xff]   ;;  %v6238_v42 = vld [vmem:[#allocation5 + $0x64] ss:$16 sps:$4 sm:$0xff]   ;;  %v6221_v43 = vld [vmem:[#allocation5 + $0x2c0] ss:$16 sps:$4 sm:$0xff]  }
  0x9a   :  { %1649 = vmatprep.subr.bf16.mxu0 %v6187_v27  ;;  %v933_v60 = vcombine.high %v930_v50, %v930_v50  ;;  %v954_v56 = vrot.slane %v930_v50, %v6883_v38  ;;  %v6212_v27 = vld [vmem:[#allocation5 + $0xe0] ss:$16 sps:$4 sm:$0xff]   ;;  %v6299_v58 = vld [vmem:[#allocation5 + $0x28] ss:$16 sps:$4 sm:$0xff]   ;;  %v6307_v61 = vld [vmem:[#allocation5 + $0xc] ss:$16 sps:$4 sm:$0xff]  }
  0x9b   :  { %v940_v57 = vrot.slane %v931_v47, %v6883_v38  ;;  %v947_v54 = vrot.slane %v932_v62, %v6883_v38  ;;  %1599 = vmatpush2.bf16.msra.mxu1 %v6170_v44  ;;  %v6229_v44 = vld [vmem:[#allocation5 + $0x2a4] ss:$16 sps:$4 sm:$0xff]   ;;  %v6248_v50 = vld [vmem:[#allocation5 + $0x20] ss:$16 sps:$4 sm:$0xff]  }
  0x9c   :  { %1600 = vmatprep.subr.bf16.mxu1 %v6178_v46  ;;  %v961_v6 = vrot.slane %v933_v60, %v6883_v38  ;;  %v6236_v46 = vld [vmem:[#allocation5 + $0x60] ss:$16 sps:$4 sm:$0xff]   ;;  %v6250_v62 = vld [vmem:[#allocation5 + $0x24] ss:$16 sps:$4 sm:$0xff]  }
  0x9d   :  { %1650 = vmatpush1.bf16.msra.mxu0 %v6185_v30  ;;  %v7120_v7 = vcombine.high %v940_v57, %v954_v56  ;;  %v7122_v8 = vcombine.low %v940_v57, %v954_v56  ;;  %v6200_v30 = vld [vmem:[#allocation5 + $0x428] ss:$16 sps:$4 sm:$0xff]   ;;  %v6241_v47 = vld [vmem:[#allocation5 + $0x264] ss:$16 sps:$4 sm:$0xff]  }
  0x9e   :  { %1651 = vmatprep.subr.bf16.mxu0 %v6193_v36  ;;  %v7124_v12 = vcombine.low %v947_v54, %v961_v6  ;;  %v6224_v36 = vld [vmem:[#allocation5 + $0xa0] ss:$16 sps:$4 sm:$0xff]   ;;  %v6247_v56 = vld [vmem:[#allocation5 + $0x244] ss:$16 sps:$4 sm:$0xff]  }
  0x9f   :  { %1570 = vmatmul.mubr.bf16.gmra.mxu1 %v7120_v7  ;;  %v5637_v57 = vld.sshfl [vmem:[#allocation2 + $0x18] sm:$0x5f pattern:$0x75316420] }
  0xa0   :  { %1601 = vmatpush2.bf16.msra.mxu1 %v6176_v52  ;;  %1506 = vmatprep.mubr.bf16.mxu0 %v7124_v12  ;;  %v5638_v52 = vld.sshfl [vmem:[#allocation2 + $0x20] sm:$0x13 pattern:$0x75316420]  ;;  %v6239_v54 = vld [vmem:[#allocation5 + $0x260] ss:$16 sps:$4 sm:$0xff]  }
  0xa1   :  { %1652 = vmatpush1.bf16.msra.mxu0 %v6191_v59  ;;  %1602 = vmatprep.subr.bf16.mxu1 %v6184_v5  ;;  %v6235_v59 = vld [vmem:[#allocation5 + $0x284] ss:$16 sps:$4 sm:$0xff]   ;;  %v203_v60 = vcombine.low %v5637_v57, %v5638_v52 }
  0xa2   :  { %1653 = vmatprep.subr.bf16.mxu0 %v6199_v48  ;;  %1507 = vmatmul.mubr.bf16.gmra.mxu0 %v7122_v8  ;;  %v6256_v48 = vld [vmem:[#allocation5 + $0x4] ss:$16 sps:$4 sm:$0xff]  }
  0xa3   :  { %1612 = vmatprep.mubr.bf16.mxu1 %v6982_v4  ;;  %1675 = vmatprep.mubr.bf16.mxu0 %v6806_v0  ;;  %v6218_v4 = vld [vmem:[#allocation5 + $0xc0] ss:$16 sps:$4 sm:$0xff]   ;;  %v211_v5 = vrot.slane %v203_v60, %v6883_v38  ;;  %v6262_v6 = vld [vmem:[#allocation5 + $0x1e4] ss:$16 sps:$4 sm:$0xff]   ;;  %v6289_v60 = vld [vmem:[#allocation5 + $0x6c] ss:$16 sps:$4 sm:$0xff]  }
  0xa4   :  { %1603 = vmatpush2.bf16.msra.mxu1 %v6182_v10  ;;  %v6260_v10 = vld [vmem:[#allocation5 + $0x1e0] ss:$16 sps:$4 sm:$0xff]  }
  0xa5   :  { %1654 = vmatpush1.bf16.msra.mxu0 %v6197_v1  ;;  %1604 = vmatprep.subr.bf16.mxu1 %v6190_v11  ;;  %v6254_v1 = vld [vmem:[#allocation5] ss:$16 sps:$4 sm:$0xff]  }
  0xa6   :  { %1655 = vmatprep.subr.bf16.mxu0 %v6205_v9  ;;  %v6253_v9 = vld [vmem:[#allocation5 + $0x224] ss:$16 sps:$4 sm:$0xff]  }
  0xa8   :  { %1605 = vmatpush2.bf16.msra.mxu1 %v6188_v15  ;;  %v5643_v15 = vld.sshfl [vmem:[#allocation2 + $0x3c] sm:$0x5f pattern:$0x75316420] }
  0xa9   :  { %1656 = vmatpush1.bf16.msra.mxu0 %v6203_v13  ;;  %1606 = vmatprep.subr.bf16.mxu1 %v6196_v16  ;;  %v6251_v13 = vld [vmem:[#allocation5 + $0x220] ss:$16 sps:$4 sm:$0xff]   ;;  %v5644_v16 = vld.sshfl [vmem:[#allocation2 + $0x44] sm:$0x13 pattern:$0x75316420] }
  0xaa   :  { %1657 = vmatprep.subr.bf16.mxu0 %v6211_v14  ;;  %v6268_v14 = vld [vmem:[#allocation5 + $0x1c4] ss:$16 sps:$4 sm:$0xff]  }
  0xac   :  { %1607 = vmatpush2.bf16.msra.mxu1 %v6194_v19 }
  0xad   :  { %1658 = vmatpush1.bf16.msra.mxu0 %v6209_v17  ;;  %1608 = vmatprep.subr.bf16.mxu1 %v6202_v20  ;;  %v6259_v17 = vld [vmem:[#allocation5 + $0x204] ss:$16 sps:$4 sm:$0xff]  }
  0xae   :  { %2387 = vmatprep.subr.bf16.mxu0 %v6214_v18  ;;  %v6274_v20 = vld [vmem:[#allocation5 + $0x1a4] ss:$16 sps:$4 sm:$0xff]  }
  0xb0   :  { %1676 = vmatmul.mubr.bf16.vlgmr.msra.gmra.mxu0 %v6980_v2  ;;  %1609 = vmatpush2.bf16.msra.mxu1 %v6200_v30  ;;  %v6223_v2 = vld [vmem:[#allocation5 + $0x2c4] ss:$16 sps:$4 sm:$0xff]   ;;  %v6265_v30 = vld [vmem:[#allocation5 + $0xec] ss:$16 sps:$4 sm:$0xff]  }
  0xb1   :  { %2388 = vmatpush1.bf16.msra.mxu0 %v6212_v27  ;;  %1685 = vmatprep.mubr.bf16.mxu0 %v6806_v0  ;;  %v298_v27 = vcombine.low %v5643_v15, %v5644_v16 }
  0xb2   :  { %2389 = vmatprep.subr.bf16.mxu0 %v6220_v28  ;;  %1610 = vmatprep.subr.bf16.mxu1 %v6208_v63  ;;  %v6257_v28 = vld [vmem:[#allocation5 + $0x200] ss:$16 sps:$4 sm:$0xff]  }
  0xb3   :  { %v6272_v63 = vld [vmem:[#allocation5 + $0x1a0] ss:$16 sps:$4 sm:$0xff]  }
  0xb4   :  { %1611 = vmatpush2.bf16.msra.mxu1 %v6206_v33  ;;  %v6280_v33 = vld [vmem:[#allocation5 + $0x184] ss:$16 sps:$4 sm:$0xff]  }
  0xb5   :  { %2390 = vmatpush1.bf16.msra.mxu0 %v6218_v4  ;;  %2450 = vmatprep.subr.bf16.mxu1 %v6217_v35  ;;  %v299_v35 = vcombine.high %v5643_v15, %v5644_v16  ;;  %v6301_v15 = vld [vmem:[#allocation5 + $0x2c] ss:$16 sps:$4 sm:$0xff]   ;;  %v6311_v16 = vld [vmem:[#allocation5 + $0x2e8] ss:$16 sps:$4 sm:$0xff]  }
  0xb6   :  { %2391 = vmatprep.subr.bf16.mxu0 %v6226_v32 }
  0xb7   :  { %1613 = vmatmul.mubr.bf16.vlgmr.msra.gmra.mxu1 %v7013_v45  ;;  %v6242_v45 = vld [vmem:[#allocation5 + $0x40] ss:$16 sps:$4 sm:$0xff]  }
  0xb8   :  { %1686 = vmatmul.mubr.bf16.gmra.mxu0 %v7085_v25  ;;  %2451 = vmatpush1.bf16.msra.mxu1 %v6215_v39  ;;  %v6244_v25 = vld [vmem:[#allocation5 + $0x44] ss:$16 sps:$4 sm:$0xff]   ;;  %v6278_v39 = vld [vmem:[#allocation5 + $0x180] ss:$16 sps:$4 sm:$0xff]  }
  0xb9   :  { %2392 = vmatpush1.bf16.msra.mxu0 %v6224_v36  ;;  %1695 = vmatprep.mubr.bf16.mxu0 %v6806_v0  ;;  %v6263_v36 = vld [vmem:[#allocation5 + $0xe8] ss:$16 sps:$4 sm:$0xff]  }
  0xba   :  { %2393 = vmatprep.subr.bf16.mxu0 %v6232_v37  ;;  %1622 = vmatprep.mubr.bf16.mxu1 %v7081_v23  ;;  %v6233_v23 = vld [vmem:[#allocation5 + $0x280] ss:$16 sps:$4 sm:$0xff]   ;;  %v6271_v37 = vld [vmem:[#allocation5 + $0xcc] ss:$16 sps:$4 sm:$0xff]  }
  0xbb   :  { %2452 = vmatprep.subr.bf16.mxu1 %v6223_v2 }
  0xbc   :  { %2453 = vmatpush1.bf16.msra.mxu1 %v6221_v43  ;;  %v313_v43 = vrot.slane %v299_v35, %v6883_v38  ;;  %v6308_v35 = vld [vmem:[#allocation5 + $0x1e8] ss:$16 sps:$4 sm:$0xff]  }
  0xbd   :  { %2394 = vmatpush1.bf16.msra.mxu0 %v6230_v41  ;;  %2454 = vmatprep.subr.bf16.mxu1 %v6229_v44 }
  0xbe   :  { %2395 = vmatprep.subr.bf16.mxu0 %v6238_v42  ;;  %v6286_v42 = vld [vmem:[#allocation5 + $0x164] ss:$16 sps:$4 sm:$0xff]  }
  0xbf   :  { %1623 = vmatmul.mubr.bf16.gmra.mxu1 %v7083_v24  ;;  %v204_v24 = vcombine.high %v5637_v57, %v5638_v52  ;;  %v6281_v52 = vld [vmem:[#allocation5 + $0x88] ss:$16 sps:$4 sm:$0xff]  }
  0xc0   :  { %1696 = vmatmul.mubr.bf16.gmra.mxu0 %v7120_v7  ;;  %2455 = vmatpush1.bf16.msra.mxu1 %v6227_v53  ;;  %v6245_v7 = vld [vmem:[#allocation5 + $0x240] ss:$16 sps:$4 sm:$0xff]   ;;  %v6277_v53 = vld [vmem:[#allocation5 + $0xac] ss:$16 sps:$4 sm:$0xff]  }
  0xc1   :  { %2419 = vmatprep.mubr.bf16.mxu0 %v6999_v26  ;;  %2396 = vmatpush1.bf16.msra.mxu0 %v6236_v46  ;;  %v218_v11 = vrot.slane %v204_v24, %v6883_v38  ;;  %v6269_v46 = vld [vmem:[#allocation5 + $0xc8] ss:$16 sps:$4 sm:$0xff]   ;;  %v6304_v24 = vld [vmem:[#allocation5 + $0x104] ss:$16 sps:$4 sm:$0xff]  }
  0xc2   :  { %2397 = vmatprep.subr.bf16.mxu0 %v6244_v25  ;;  %1632 = vmatprep.mubr.bf16.mxu1 %v7124_v12  ;;  %v219_v12 = vcombine.high %v211_v5, %v211_v5  ;;  %v7163_v25 = vrot.slane %v1840_v40, %v6883_v38 }
  0xc3   :  { %2456 = vmatprep.subr.bf16.mxu1 %v6235_v59  ;;  %v1773_v18 = vcombine.low %v211_v5, %v218_v11  ;;  %v6313_v11 = vld [vmem:[#allocation5 + $0x2ec] ss:$16 sps:$4 sm:$0xff]  }
  0xc4   :  { %2457 = vmatpush1.bf16.msra.mxu1 %v6233_v23  ;;  %v1774_v19 = vcombine.low %v219_v12, %v7006_v51  ;;  %v306_v51 = vrot.slane %v298_v27, %v6883_v38  ;;  %v6275_v23 = vld [vmem:[#allocation5 + $0xa8] ss:$16 sps:$4 sm:$0xff]  }
  0xc5   :  { %2398 = vmatpush1.bf16.msra.mxu0 %v6242_v45  ;;  %2458 = vmatprep.subr.bf16.mxu1 %v6241_v47  ;;  %v7147_v4 = vrot.slane %v1773_v18, %v6883_v38  ;;  %v7172_v45 = vrot.slane %v1807_v55, %v6883_v38  ;;  %v6283_v47 = vld [vmem:[#allocation5 + $0x8c] ss:$16 sps:$4 sm:$0xff]  }
  0xc6   :  { %2399 = vmatprep.subr.bf16.mxu0 %v6250_v62  ;;  %v7150_v32 = vrot.slane %v1774_v19, %v6883_v38  ;;  %v1841_v41 = vcombine.low %v7061_v34, %v306_v51  ;;  %v314_v44 = vcombine.high %v306_v51, %v306_v51  ;;  %v6284_v34 = vld [vmem:[#allocation5 + $0x160] ss:$16 sps:$4 sm:$0xff]   ;;  %v6316_v51 = vld [vmem:[#allocation5 + $0x1cc] ss:$16 sps:$4 sm:$0xff]  }
  0xc7   :  { %1633 = vmatmul.mubr.bf16.gmra.mxu1 %v7122_v8  ;;  %v6266_v8 = vld [vmem:[#allocation5 + $0x1c0] ss:$16 sps:$4 sm:$0xff]  }
  0xc8   :  { %2459 = vmatpush1.bf16.msra.mxu1 %v6239_v54  ;;  %2482 = vmatprep.mubr.bf16.mxu1 %v6806_v0  ;;  %v1805_v2 = vcombine.low %v7147_v4, %v7150_v32  ;;  %v7175_v62 = vrot.slane %v1841_v41, %v6883_v38  ;;  %v1842_v40 = vcombine.low %v313_v43, %v314_v44  ;;  %v6296_v54 = vld [vmem:[#allocation5 + $0x120] ss:$16 sps:$4 sm:$0xff]   ;;  %v6343_v43 = vld [vmem:[#allocation5 + $0x24c] ss:$16 sps:$4 sm:$0xff]   ;;  %v6320_v44 = vld [vmem:[#allocation5 + $0x1a8] ss:$16 sps:$4 sm:$0xff]  }
  0xc9   :  { %2400 = vmatpush1.bf16.msra.mxu0 %v6248_v50  ;;  %2460 = vmatprep.subr.bf16.mxu1 %v6247_v56  ;;  %v6290_v50 = vld [vmem:[#allocation5 + $0x140] ss:$16 sps:$4 sm:$0xff]   ;;  %v1806_v5 = vcombine.high %v7147_v4, %v7150_v32  ;;  %v6323_v4 = vld [vmem:[#allocation5 + $0x2a8] ss:$16 sps:$4 sm:$0xff]   ;;  %v6331_v32 = vld [vmem:[#allocation5 + $0x28c] ss:$16 sps:$4 sm:$0xff]  }
  0xca   :  { %2401 = vmatprep.subr.bf16.mxu0 %v6256_v48  ;;  %v7166_v59 = vrot.slane %v1805_v2, %v6883_v38  ;;  %v1864_v55 = vcombine.low %v7163_v25, %v7175_v62  ;;  %v6298_v48 = vld [vmem:[#allocation5 + $0x124] ss:$16 sps:$4 sm:$0xff]   ;;  %v1863_v57 = vrot.slane %v1842_v40, %v6883_v38  ;;  %v1865_v18 = vcombine.high %v7163_v25, %v7175_v62  ;;  %v6322_v2 = vld [vmem:[#allocation5 + $0x1ac] ss:$16 sps:$4 sm:$0xff]  }
  0xcb   :  { %v1822_v12 = vrot.slane %v1806_v5, %v6883_v38  ;;  %v6328_v25 = vld [vmem:[#allocation5 + $0x18c] ss:$16 sps:$4 sm:$0xff]  }
  0xcc   :  { %2461 = vmatpush1.bf16.msra.mxu1 %v6245_v7  ;;  %v7179_v31 = vcombine.high %v7166_v59, %v7172_v45  ;;  %v7187_v56 = vrot.slane %v1864_v55, %v6883_v38  ;;  %v6287_v7 = vld [vmem:[#allocation5 + $0x68] ss:$16 sps:$4 sm:$0xff]   ;;  %v1866_v19 = vcombine.high %v1863_v57, %v1863_v57  ;;  %v6349_v62 = vld [vmem:[#allocation5 + $0x22c] ss:$16 sps:$4 sm:$0xff]  }
  0xcd   :  { %2402 = vmatpush1.bf16.msra.mxu0 %v6254_v1  ;;  %2462 = vmatprep.subr.bf16.mxu1 %v6253_v9  ;;  %v7190_v1 = vrot.slane %v1863_v57, %v6883_v38  ;;  %v6295_v9 = vld [vmem:[#allocation5 + $0x4c] ss:$16 sps:$4 sm:$0xff]  }
  0xce   :  { %2403 = vmatprep.subr.bf16.mxu0 %v6262_v6  ;;  %v1894_v27 = vrot.slane %v1866_v19, %v6883_v38  ;;  %v6334_v40 = vld [vmem:[#allocation5 + $0x16c] ss:$16 sps:$4 sm:$0xff]   ;;  %v6356_v19 = vld [vmem:[#allocation5 + $0x6e0] ss:$16 sps:$4 sm:$0xff]  }
  0xcf   :  { %v7196_v6 = vcombine.high %v7187_v56, %v7190_v1  ;;  %v7223_v41 = vcombine.low %v7187_v56, %v7190_v1  ;;  %v6332_v56 = vld [vmem:[#allocation5 + $0x168] ss:$16 sps:$4 sm:$0xff]   ;;  %v6340_v1 = vld [vmem:[#allocation5 + $0x14c] ss:$16 sps:$4 sm:$0xff]  }
  0xd0   :  { %2463 = vmatpush1.bf16.msra.mxu1 %v6251_v13  ;;  %v1836_v13 = vrot.slane %v1808_v49, %v6883_v38  ;;  %v6325_v49 = vld [vmem:[#allocation5 + $0x2ac] ss:$16 sps:$4 sm:$0xff]  }
  0xd1   :  { %2404 = vmatpush2.bf16.msra.mxu0 %v6260_v10  ;;  %2464 = vmatprep.subr.bf16.mxu1 %v6259_v17  ;;  %v6302_v10 = vld [vmem:[#allocation5 + $0x100] ss:$16 sps:$4 sm:$0xff]   ;;  %v6319_v17 = vld [vmem:[#allocation5 + $0x2cc] ss:$16 sps:$4 sm:$0xff]  }
  0xd2   :  { %2405 = vmatprep.subr.bf16.mxu0 %v6268_v14  ;;  %v6293_v14 = vld [vmem:[#allocation5 + $0x48] ss:$16 sps:$4 sm:$0xff]  }
  0xd4   :  { %2465 = vmatpush1.bf16.msra.mxu1 %v6257_v28  ;;  %v6305_v28 = vld [vmem:[#allocation5 + $0x8] ss:$16 sps:$4 sm:$0xff]  }
  0xd5   :  { %2406 = vmatpush2.bf16.msra.mxu0 %v6266_v8  ;;  %2513 = vmatprep.subr.bf16.mxu1 %v6265_v30  ;;  %v7205_v8 = vcombine.low %v1822_v12, %v1836_v13  ;;  %v6310_v30 = vld [vmem:[#allocation5 + $0x1ec] ss:$16 sps:$4 sm:$0xff]   ;;  %v6338_v13 = vld [vmem:[#allocation5 + $0x148] ss:$16 sps:$4 sm:$0xff]  }
  0xd6   :  { %2407 = vmatprep.subr.bf16.mxu0 %v6274_v20  ;;  %v1880_v20 = vrot.slane %v1865_v18, %v6883_v38  ;;  %v6346_v18 = vld [vmem:[#allocation5 + $0x12c] ss:$16 sps:$4 sm:$0xff]  }
  0xd7   :  { %2483 = vmatmul.mubr.bf16.vlgmr.msra.gmra.mxu1 %v6995_v21 }
  0xd8   :  { %2514 = vmatpush1.bf16.msra.mxu1 %v6263_v36  ;;  %2492 = vmatprep.mubr.bf16.mxu1 %v6806_v0  ;;  %v6329_v36 = vld [vmem:[#allocation5 + $0x288] ss:$16 sps:$4 sm:$0xff]  }
  0xd9   :  { %2408 = vmatpush2.bf16.msra.mxu0 %v6272_v63  ;;  %2515 = vmatprep.subr.bf16.mxu1 %v6271_v37  ;;  %v7215_v63 = vcombine.low %v7166_v59, %v7172_v45  ;;  %v6337_v37 = vld [vmem:[#allocation5 + $0x26c] ss:$16 sps:$4 sm:$0xff]   ;;  %v5867_v59 = vld.sshfl [vmem:[#allocation2 + $0xc] sm:$0xff pattern:$0x75316420] }
  0xda   :  { %2409 = vmatprep.subr.bf16.mxu0 %v6280_v33  ;;  %v7217_v33 = vcombine.low %v1880_v20, %v1894_v27  ;;  %v5868_v45 = vld.sshfl [vmem:[#allocation2 + $0x14] sm:$0x33 pattern:$0x75316420] }
  0xdb   :  { %v2710_v57 = vcombine.high %v5867_v59, %v5868_v45 }
  0xdc   :  { %2516 = vmatpush1.bf16.msra.mxu1 %v6269_v46  ;;  %v5865_v46 = vld.sshfl [vmem:[#allocation2] sm:$0xfa pattern:$0x75316420] }
  0xdd   :  { %2410 = vmatpush2.bf16.msra.mxu0 %v6278_v39  ;;  %2517 = vmatprep.subr.bf16.mxu1 %v6277_v53  ;;  %v6314_v39 = vld [vmem:[#allocation5 + $0x1c8] ss:$16 sps:$4 sm:$0xff]   ;;  %v5866_v53 = vld.sshfl [vmem:[#allocation2 + $0x8] sm:$0x32 pattern:$0x75316420] }
  0xde   :  { %2411 = vmatprep.subr.bf16.mxu0 %v6286_v42  ;;  %v6335_v42 = vld [vmem:[#allocation5 + $0x268] ss:$16 sps:$4 sm:$0xff]   ;;  %v2678_v55 = vcombine.high %v5865_v46, %v5866_v53 }
  0xdf   :  { %2493 = vmatmul.mubr.bf16.gmra.mxu1 %v7179_v31 }
  0xe0   :  { %2518 = vmatpush1.bf16.msra.mxu1 %v6275_v23  ;;  %2502 = vmatprep.mubr.bf16.mxu1 %v6806_v0  ;;  %v2677_v23 = vcombine.low %v5865_v46, %v5866_v53  ;;  %v6367_v46 = vld [vmem:[#allocation5 + $0x8c4] ss:$16 sps:$4 sm:$0xff]  }
  0xe1   :  { %2412 = vmatpush2.bf16.msra.mxu0 %v6284_v34  ;;  %2519 = vmatprep.subr.bf16.mxu1 %v6283_v47  ;;  %v6341_v34 = vld [vmem:[#allocation5 + $0x248] ss:$16 sps:$4 sm:$0xff]   ;;  %v6382_v53 = vld [vmem:[#allocation5 + $0x664] ss:$16 sps:$4 sm:$0xff]  }
  0xe2   :  { %2413 = vmatprep.subr.bf16.mxu0 %v6292_v3  ;;  %v6326_v3 = vld [vmem:[#allocation5 + $0x188] ss:$16 sps:$4 sm:$0xff]  }
  0xe3   :  { %v6347_v47 = vld [vmem:[#allocation5 + $0x228] ss:$16 sps:$4 sm:$0xff]  }
  0xe4   :  { %2520 = vmatpush1.bf16.msra.mxu1 %v6281_v52  ;;  %v7229_v52 = vld.sshfl [vmem:[#allocation2 + $0x20] sm:$0x33 pattern:$0x75316420] }
  0xe5   :  { %2414 = vmatpush2.bf16.msra.mxu0 %v6290_v50  ;;  %2521 = vmatprep.subr.bf16.mxu1 %v6289_v60  ;;  %v7227_v50 = vld.sshfl [vmem:[#allocation2 + $0x18] sm:$0xff pattern:$0x75316420]  ;;  %v6355_v60 = vld [vmem:[#allocation5 + $0x20c] ss:$16 sps:$4 sm:$0xff]  }
  0xe6   :  { %2415 = vmatprep.subr.bf16.mxu0 %v6298_v48  ;;  %v2709_v48 = vcombine.low %v5867_v59, %v5868_v45  ;;  %v6365_v45 = vld [vmem:[#allocation5 + $0x8c0] ss:$16 sps:$4 sm:$0xff]  }
  0xe7   :  { %2503 = vmatmul.mubr.bf16.gmra.mxu1 %v7196_v6 }
  0xe8   :  { %2522 = vmatpush1.bf16.msra.mxu1 %v6287_v7  ;;  %2545 = vmatprep.mubr.bf16.mxu1 %v6999_v26  ;;  %v6317_v26 = vld [vmem:[#allocation5 + $0x2c8] ss:$16 sps:$4 sm:$0xff]   ;;  %v2717_v5 = vrot.slane %v2709_v48, %v6883_v38  ;;  %v2724_v7 = vrot.slane %v2710_v57, %v6883_v38  ;;  %v6394_v48 = vld [vmem:[#allocation5 + $0x624] ss:$16 sps:$4 sm:$0xff]  }
  0xe9   :  { %2416 = vmatpush2.bf16.msra.mxu0 %v6296_v54  ;;  %2523 = vmatprep.subr.bf16.mxu1 %v6295_v9  ;;  %v2685_v54 = vrot.slane %v2677_v23, %v6883_v38  ;;  %v2741_v9 = vcombine.low %v7227_v50, %v7229_v52  ;;  %v5872_v57 = vld.sshfl [vmem:[#allocation2 + $0x2c] sm:$0x32 pattern:$0x75316420] }
  0xea   :  { %2417 = vmatprep.subr.bf16.mxu0 %v6304_v24  ;;  %v2692_v24 = vrot.slane %v2678_v55, %v6883_v38  ;;  %v6386_v55 = vld [vmem:[#allocation5 + $0x640] ss:$16 sps:$4 sm:$0xff]  }
  0xeb   :  { %v2693_v12 = vcombine.high %v2685_v54, %v2685_v54  ;;  %v5874_v54 = vld.sshfl [vmem:[#allocation2 + $0x38] sm:$0x33 pattern:$0x75316420] }
  0xec   :  { %2524 = vmatpush1.bf16.msra.mxu1 %v6293_v14  ;;  %v2694_v14 = vcombine.high %v2692_v24, %v2692_v24 }
  0xed   :  { %2418 = vmatpush2.bf16.msra.mxu0 %v6302_v10  ;;  %2525 = vmatprep.subr.bf16.mxu1 %v6301_v15  ;;  %v6353_v10 = vld [vmem:[#allocation5 + $0x208] ss:$16 sps:$4 sm:$0xff]   ;;  %v2725_v15 = vcombine.high %v2717_v5, %v2717_v5 }
  0xee   :  { %2576 = vmatprep.subr.bf16.mxu0 %v6313_v11  ;;  %v6358_v11 = vld [vmem:[#allocation5 + $0x6e4] ss:$16 sps:$4 sm:$0xff]  }
  0xef   :  { %v2954_v20 = vcombine.low %v2724_v7, %v2725_v15 }
  0xf0   :  { %2420 = vmatmul.mubr.bf16.vlgmr.msra.gmra.mxu0 %v6997_v22  ;;  %2526 = vmatpush1.bf16.msra.mxu1 %v6299_v58  ;;  %v6364_v58 = vld [vmem:[#allocation5 + $0x6c4] ss:$16 sps:$4 sm:$0xff]  }
  0xf1   :  { %2577 = vmatpush1.bf16.msra.mxu0 %v6311_v16  ;;  %2429 = vmatprep.mubr.bf16.mxu0 %v7205_v8  ;;  %v2726_v16 = vcombine.high %v2724_v7, %v2724_v7 }
  0xf2   :  { %2578 = vmatprep.subr.bf16.mxu0 %v6319_v17  ;;  %2527 = vmatprep.subr.bf16.mxu1 %v6307_v61  ;;  %v7238_v17 = vrot.slane %v2741_v9, %v6883_v38  ;;  %v2952_v61 = vcombine.low %v2692_v24, %v2693_v12  ;;  %v6392_v24 = vld [vmem:[#allocation5 + $0x620] ss:$16 sps:$4 sm:$0xff]  }
  0xf4   :  { %2528 = vmatpush1.bf16.msra.mxu1 %v6305_v28  ;;  %v2955_v27 = vcombine.low %v2726_v16, %v7238_v17  ;;  %v6352_v28 = vld [vmem:[#allocation5 + $0x10c] ss:$16 sps:$4 sm:$0xff]   ;;  %v5875_v16 = vld.sshfl [vmem:[#allocation2 + $0x3c] sm:$0xff pattern:$0x75316420] }
  0xf5   :  { %2579 = vmatpush1.bf16.msra.mxu0 %v6317_v26  ;;  %2529 = vmatprep.subr.bf16.mxu1 %v6310_v30  ;;  %v6344_v26 = vld [vmem:[#allocation5 + $0x128] ss:$16 sps:$4 sm:$0xff]   ;;  %v6362_v30 = vld [vmem:[#allocation5 + $0x6c0] ss:$16 sps:$4 sm:$0xff]  }
  0xf6   :  { %2580 = vmatprep.subr.bf16.mxu0 %v6325_v49  ;;  %v2953_v49 = vcombine.low %v2694_v14, %v2717_v5  ;;  %v6383_v5 = vld [vmem:[#allocation5 + $0x860] ss:$16 sps:$4 sm:$0xff]  }
  0xf8   :  { %2430 = vmatmul.mubr.bf16.gmra.mxu0 %v7215_v63  ;;  %2530 = vmatpush2.bf16.msra.mxu1 %v6308_v35  ;;  %v6361_v35 = vld [vmem:[#allocation5 + $0x8e4] ss:$16 sps:$4 sm:$0xff]  }
  0xf9   :  { %2581 = vmatpush1.bf16.msra.mxu0 %v6323_v4  ;;  %2439 = vmatprep.mubr.bf16.mxu0 %v7217_v33  ;;  %v6370_v4 = vld [vmem:[#allocation5 + $0x6a4] ss:$16 sps:$4 sm:$0xff]  }
  0xfa   :  { %2582 = vmatprep.subr.bf16.mxu0 %v6331_v32  ;;  %2531 = vmatprep.subr.bf16.mxu1 %v6316_v51  ;;  %v6350_v32 = vld [vmem:[#allocation5 + $0x108] ss:$16 sps:$4 sm:$0xff]   ;;  %v7244_v51 = vrot.slane %v2952_v61, %v6883_v38 }
  0xfc   :  { %2532 = vmatpush2.bf16.msra.mxu1 %v6314_v39  ;;  %v6368_v39 = vld [vmem:[#allocation5 + $0x6a0] ss:$16 sps:$4 sm:$0xff]  }
  0xfd   :  { %2583 = vmatpush1.bf16.msra.mxu0 %v6329_v36  ;;  %2533 = vmatprep.subr.bf16.mxu1 %v6322_v2  ;;  %v7250_v36 = vrot.slane %v2954_v20, %v6883_v38  ;;  %v6376_v2 = vld [vmem:[#allocation5 + $0x684] ss:$16 sps:$4 sm:$0xff]  }
  0xfe   :  { %2584 = vmatprep.subr.bf16.mxu0 %v6337_v37  ;;  %v7253_v37 = vrot.slane %v2955_v27, %v6883_v38  ;;  %v6412_v20 = vld [vmem:[#allocation5 + $0x7c4] ss:$16 sps:$4 sm:$0xff]  }
 0x100   :  { %2440 = vmatmul.mubr.bf16.gmra.mxu0 %v7223_v41  ;;  %2534 = vmatpush2.bf16.msra.mxu1 %v6320_v44  ;;  %v6359_v44 = vld [vmem:[#allocation5 + $0x8e0] ss:$16 sps:$4 sm:$0xff]  }
 0x101   :  { %2585 = vmatpush1.bf16.msra.mxu0 %v6335_v42  ;;  %2608 = vmatprep.mubr.bf16.mxu0 %v6806_v0 }
 0x102   :  { %2586 = vmatprep.subr.bf16.mxu0 %v6343_v43  ;;  %2535 = vmatprep.subr.bf16.mxu1 %v6328_v25  ;;  %v2987_v43 = vcombine.high %v7250_v36, %v7253_v37  ;;  %v6374_v25 = vld [vmem:[#allocation5 + $0x680] ss:$16 sps:$4 sm:$0xff]  }
 0x104   :  { %2536 = vmatpush2.bf16.msra.mxu1 %v6326_v3  ;;  %v3015_v59 = vrot.slane %v2987_v43, %v6883_v38  ;;  %v6380_v3 = vld [vmem:[#allocation5 + $0x660] ss:$16 sps:$4 sm:$0xff]  }
 0x105   :  { %2587 = vmatpush1.bf16.msra.mxu0 %v6341_v34  ;;  %2537 = vmatprep.subr.bf16.mxu1 %v6334_v40  ;;  %v6371_v40 = vld [vmem:[#allocation5 + $0x8a0] ss:$16 sps:$4 sm:$0xff]  }
 0x106   :  { %2588 = vmatprep.subr.bf16.mxu0 %v6349_v62  ;;  %v6373_v62 = vld [vmem:[#allocation5 + $0x8a4] ss:$16 sps:$4 sm:$0xff]  }
 0x108   :  { %2538 = vmatpush2.bf16.msra.mxu1 %v6332_v56  ;;  %v2742_v56 = vcombine.high %v7227_v50, %v7229_v52  ;;  %v6389_v52 = vld [vmem:[#allocation5 + $0x840] ss:$16 sps:$4 sm:$0xff]  }
 0x109   :  { %2589 = vmatpush1.bf16.msra.mxu0 %v6347_v47  ;;  %2539 = vmatprep.subr.bf16.mxu1 %v6340_v1  ;;  %v6379_v47 = vld [vmem:[#allocation5 + $0x884] ss:$16 sps:$4 sm:$0xff]  }
 0x10a   :  { %2590 = vmatprep.subr.bf16.mxu0 %v6355_v60  ;;  %v6377_v60 = vld [vmem:[#allocation5 + $0x880] ss:$16 sps:$4 sm:$0xff]   ;;  %v6385_v1 = vld [vmem:[#allocation5 + $0x864] ss:$16 sps:$4 sm:$0xff]   ;;  %v2756_v7 = vrot.slane %v2742_v56, %v6883_v38 }
 0x10c   :  { %2540 = vmatpush2.bf16.msra.mxu1 %v6338_v13  ;;  %v2758_v14 = vcombine.high %v2756_v7, %v2756_v7 }
 0x10d   :  { %2591 = vmatpush1.bf16.msra.mxu0 %v6353_v10  ;;  %2541 = vmatprep.subr.bf16.mxu1 %v6346_v18  ;;  %v6391_v10 = vld [vmem:[#allocation5 + $0x844] ss:$16 sps:$4 sm:$0xff]   ;;  %v5876_v18 = vld.sshfl [vmem:[#allocation2 + $0x44] sm:$0x33 pattern:$0x75316420] }
 0x10e   :  { %3633 = vmatprep.subr.bf16.mxu0 %v6358_v11  ;;  %v6398_v11 = vld [vmem:[#allocation5 + $0x600] ss:$16 sps:$4 sm:$0xff]  }
 0x110   :  { %2609 = vmatmul.mubr.bf16.vlgmr.msra.gmra.mxu0 %v6995_v21  ;;  %2542 = vmatpush2.bf16.msra.mxu1 %v6344_v26  ;;  %v7247_v21 = vrot.slane %v2953_v49, %v6883_v38 }
 0x111   :  { %3634 = vmatpush1.bf16.msra.mxu0 %v6356_v19  ;;  %2618 = vmatprep.mubr.bf16.mxu0 %v6806_v0  ;;  %v6397_v19 = vld [vmem:[#allocation5 + $0x824] ss:$16 sps:$4 sm:$0xff]  }
 0x112   :  { %3635 = vmatprep.subr.bf16.mxu0 %v6364_v58  ;;  %2543 = vmatprep.subr.bf16.mxu1 %v6352_v28  ;;  %v2985_v42 = vcombine.high %v7244_v51, %v7247_v21  ;;  %v6404_v58 = vld [vmem:[#allocation5 + $0x7e0] ss:$16 sps:$4 sm:$0xff]   ;;  %v2984_v27 = vcombine.low %v7244_v51, %v7247_v21  ;;  %v6418_v51 = vld [vmem:[#allocation5 + $0x7a4] ss:$16 sps:$4 sm:$0xff]  }
 0x114   :  { %2544 = vmatpush2.bf16.msra.mxu1 %v6350_v32  ;;  %v3001_v34 = vrot.slane %v2985_v42, %v6883_v38  ;;  %v6410_v32 = vld [vmem:[#allocation5 + $0x7c0] ss:$16 sps:$4 sm:$0xff]   ;;  %v2838_v42 = vcombine.high %v5875_v16, %v5876_v18  ;;  %v7287_v43 = vrot.slane %v2984_v27, %v6883_v38 }
 0x115   :  { %3636 = vmatpush1.bf16.msra.mxu0 %v6362_v30  ;;  %3696 = vmatprep.subr.bf16.mxu1 %v6361_v35  ;;  %v6446_v27 = vld [vmem:[#allocation5 + $0x700] ss:$16 sps:$4 sm:$0xff]  }
 0x116   :  { %3637 = vmatprep.subr.bf16.mxu0 %v6370_v4  ;;  %v7265_v23 = vcombine.low %v3001_v34, %v3015_v59  ;;  %v6403_v4 = vld [vmem:[#allocation5 + $0x804] ss:$16 sps:$4 sm:$0xff]   ;;  %v6401_v34 = vld [vmem:[#allocation5 + $0x800] ss:$16 sps:$4 sm:$0xff]   ;;  %v6409_v59 = vld [vmem:[#allocation5 + $0x6ec] ss:$16 sps:$4 sm:$0xff]  }
 0x117   :  { %2546 = vmatmul.mubr.bf16.vlgmr.msra.gmra.mxu1 %v6997_v22  ;;  %v5871_v22 = vld.sshfl [vmem:[#allocation2 + $0x24] sm:$0xfa pattern:$0x75316420] }
 0x118   :  { %2619 = vmatmul.mubr.bf16.gmra.mxu0 %v7179_v31  ;;  %3697 = vmatpush1.bf16.msra.mxu1 %v6359_v44  ;;  %v6388_v31 = vld [vmem:[#allocation5 + $0x644] ss:$16 sps:$4 sm:$0xff]   ;;  %v2774_v9 = vcombine.high %v5871_v22, %v5872_v57  ;;  %v2773_v12 = vcombine.low %v5871_v22, %v5872_v57  ;;  %v6415_v22 = vld [vmem:[#allocation5 + $0x6cc] ss:$16 sps:$4 sm:$0xff]   ;;  %v6422_v57 = vld [vmem:[#allocation5 + $0x780] ss:$16 sps:$4 sm:$0xff]  }
 0x119   :  { %3638 = vmatpush1.bf16.msra.mxu0 %v6368_v39  ;;  %2628 = vmatprep.mubr.bf16.mxu0 %v6806_v0 }
 0x11a   :  { %3639 = vmatprep.subr.bf16.mxu0 %v6376_v2  ;;  %2555 = vmatprep.mubr.bf16.mxu1 %v7205_v8  ;;  %v5873_v8 = vld.sshfl [vmem:[#allocation2 + $0x30] sm:$0xff pattern:$0x75316420]  ;;  %v2788_v15 = vrot.slane %v2774_v9, %v6883_v38  ;;  %v2781_v61 = vrot.slane %v2773_v12, %v6883_v38  ;;  %v2837_v2 = vcombine.low %v5875_v16, %v5876_v18  ;;  %v6436_v9 = vld [vmem:[#allocation5 + $0x744] ss:$16 sps:$4 sm:$0xff]  }
 0x11b   :  { %3698 = vmatprep.subr.bf16.mxu1 %v6367_v46  ;;  %v2805_v13 = vcombine.low %v5873_v8, %v5874_v54  ;;  %v2806_v50 = vcombine.high %v5873_v8, %v5874_v54  ;;  %v6419_v12 = vld [vmem:[#allocation5 + $0x6a8] ss:$16 sps:$4 sm:$0xff]   ;;  %v6433_v16 = vld [vmem:[#allocation5 + $0x66c] ss:$16 sps:$4 sm:$0xff]   ;;  %v6440_v18 = vld [vmem:[#allocation5 + $0x720] ss:$16 sps:$4 sm:$0xff]  }
 0x11c   :  { %3699 = vmatpush1.bf16.msra.mxu1 %v6365_v45  ;;  %v3020_v30 = vcombine.low %v2758_v14, %v2788_v15  ;;  %v5877_v35 = vcombine.high %v2781_v61, %v2788_v15  ;;  %v6416_v45 = vld [vmem:[#allocation5 + $0x7a0] ss:$16 sps:$4 sm:$0xff]   ;;  %v6425_v15 = vld [vmem:[#allocation5 + $0x688] ss:$16 sps:$4 sm:$0xff]  }
 0x11d   :  { %3640 = vmatpush1.bf16.msra.mxu0 %v6374_v25  ;;  %3700 = vmatprep.subr.bf16.mxu1 %v6373_v62  ;;  %v2813_v26 = vrot.slane %v2805_v13, %v6883_v38  ;;  %v2820_v49 = vrot.slane %v2806_v50, %v6883_v38  ;;  %v2845_v25 = vrot.slane %v2837_v2, %v6883_v38  ;;  %v6427_v13 = vld [vmem:[#allocation5 + $0x68c] ss:$16 sps:$4 sm:$0xff]   ;;  %v6434_v50 = vld [vmem:[#allocation5 + $0x740] ss:$16 sps:$4 sm:$0xff]   ;;  %v6455_v2 = vld [vmem:[#allocation5 + $0x8e8] ss:$16 sps:$4 sm:$0xff]  }
 0x11e   :  { %3641 = vmatprep.subr.bf16.mxu0 %v6382_v53  ;;  %v2852_v53 = vrot.slane %v2838_v42, %v6883_v38  ;;  %v6463_v42 = vld [vmem:[#allocation5 + $0x8cc] ss:$16 sps:$4 sm:$0xff]  }
 0x11f   :  { %2556 = vmatmul.mubr.bf16.gmra.mxu1 %v7215_v63  ;;  %v6406_v63 = vld [vmem:[#allocation5 + $0x7e4] ss:$16 sps:$4 sm:$0xff]   ;;  %v3022_v39 = vcombine.low %v2813_v26, %v2820_v49 }
 0x120   :  { %2629 = vmatmul.mubr.bf16.gmra.mxu0 %v7196_v6  ;;  %3701 = vmatpush1.bf16.msra.mxu1 %v6371_v40  ;;  %v6400_v6 = vld [vmem:[#allocation5 + $0x604] ss:$16 sps:$4 sm:$0xff]  }
 0x121   :  { %3642 = vmatpush1.bf16.msra.mxu0 %v6380_v3  ;;  %3665 = vmatprep.mubr.bf16.mxu0 %v7265_v23  ;;  %v7302_v46 = vrot.slane %v3022_v39, %v6883_v38  ;;  %v6424_v3 = vld [vmem:[#allocation5 + $0x784] ss:$16 sps:$4 sm:$0xff]   ;;  %v6445_v39 = vld [vmem:[#allocation5 + $0x62c] ss:$16 sps:$4 sm:$0xff]  }
 0x122   :  { %3643 = vmatprep.subr.bf16.mxu0 %v6388_v31  ;;  %2565 = vmatprep.mubr.bf16.mxu1 %v7217_v33  ;;  %v2757_v33 = vcombine.high %v7238_v17, %v7238_v17  ;;  %v6395_v17 = vld [vmem:[#allocation5 + $0x820] ss:$16 sps:$4 sm:$0xff]  }
 0x123   :  { %3702 = vmatprep.subr.bf16.mxu1 %v6379_v47  ;;  %v5878_v47 = vcombine.high %v2813_v26, %v2820_v49  ;;  %v6431_v49 = vld [vmem:[#allocation5 + $0x668] ss:$16 sps:$4 sm:$0xff]  }
 0x124   :  { %3703 = vmatpush1.bf16.msra.mxu1 %v6377_v60  ;;  %v3019_v28 = vcombine.low %v2756_v7, %v2757_v33  ;;  %v6430_v60 = vld [vmem:[#allocation5 + $0x764] ss:$16 sps:$4 sm:$0xff]   ;;  %v5879_v7 = vcombine.high %v2845_v25, %v2852_v53 }
 0x125   :  { %3644 = vmatpush1.bf16.msra.mxu0 %v6386_v55  ;;  %3704 = vmatprep.subr.bf16.mxu1 %v6385_v1  ;;  %v3087_v55 = vcombine.low %v2845_v25, %v2852_v53  ;;  %v7322_v56 = vrot.slane %v5878_v47, %v6883_v38  ;;  %v6461_v53 = vld [vmem:[#allocation5 + $0x8c8] ss:$16 sps:$4 sm:$0xff]  }
 0x126   :  { %3645 = vmatprep.subr.bf16.mxu0 %v6394_v48  ;;  %v7293_v21 = vrot.slane %v3019_v28, %v6883_v38  ;;  %v6407_v48 = vld [vmem:[#allocation5 + $0x6e8] ss:$16 sps:$4 sm:$0xff]  }
 0x127   :  { %2566 = vmatmul.mubr.bf16.gmra.mxu1 %v7223_v41  ;;  %v2986_v41 = vcombine.low %v7250_v36, %v7253_v37  ;;  %v7296_v36 = vrot.slane %v3020_v30, %v6883_v38  ;;  %v7299_v37 = vrot.slane %v5877_v35, %v6883_v38  ;;  %v7325_v1 = vrot.slane %v3087_v55, %v6883_v38 }
 0x128   :  { %3705 = vmatpush1.bf16.msra.mxu1 %v6383_v5  ;;  %3728 = vmatprep.mubr.bf16.mxu1 %v6806_v0  ;;  %v6428_v5 = vld [vmem:[#allocation5 + $0x760] ss:$16 sps:$4 sm:$0xff]  }
 0x129   :  { %3646 = vmatpush1.bf16.msra.mxu0 %v6392_v24  ;;  %3706 = vmatprep.subr.bf16.mxu1 %v6391_v10  ;;  %v7290_v44 = vrot.slane %v2986_v41, %v6883_v38  ;;  %v3051_v31 = vcombine.low %v7293_v21, %v7296_v36  ;;  %v3053_v40 = vcombine.low %v7299_v37, %v7302_v46  ;;  %v6413_v24 = vld [vmem:[#allocation5 + $0x6c8] ss:$16 sps:$4 sm:$0xff]   ;;  %v6457_v41 = vld [vmem:[#allocation5 + $0x8ec] ss:$16 sps:$4 sm:$0xff]  }
 0x12a   :  { %3647 = vmatprep.subr.bf16.mxu0 %v6400_v6  ;;  %v6421_v6 = vld [vmem:[#allocation5 + $0x6ac] ss:$16 sps:$4 sm:$0xff]   ;;  %v3054_v61 = vcombine.high %v7299_v37, %v7302_v46  ;;  %v6443_v46 = vld [vmem:[#allocation5 + $0x628] ss:$16 sps:$4 sm:$0xff]  }
 0x12b   :  { %v7308_v62 = vcombine.high %v7287_v43, %v7290_v44  ;;  %v7316_v8 = vrot.slane %v3051_v31, %v6883_v38  ;;  %v7319_v54 = vrot.slane %v3053_v40, %v6883_v38  ;;  %v6449_v40 = vld [vmem:[#allocation5 + $0x608] ss:$16 sps:$4 sm:$0xff]  }
 0x12c   :  { %3707 = vmatpush1.bf16.msra.mxu1 %v6389_v52  ;;  %v6442_v52 = vld [vmem:[#allocation5 + $0x724] ss:$16 sps:$4 sm:$0xff]   ;;  %v3082_v30 = vrot.slane %v3054_v61, %v6883_v38  ;;  %v6464_v61 = vld [vmem:[#allocation5 + $0x7a8] ss:$16 sps:$4 sm:$0xff]  }
 0x12d   :  { %3648 = vmatpush1.bf16.msra.mxu0 %v6398_v11  ;;  %3708 = vmatprep.subr.bf16.mxu1 %v6397_v19  ;;  %v7330_v10 = vcombine.high %v7316_v8, %v7319_v54  ;;  %v3110_v11 = vcombine.low %v7322_v56, %v7325_v1  ;;  %v6448_v19 = vld [vmem:[#allocation5 + $0x704] ss:$16 sps:$4 sm:$0xff]   ;;  %v7375_v55 = vcombine.low %v7316_v8, %v7319_v54  ;;  %v6473_v8 = vld [vmem:[#allocation5 + $0x888] ss:$16 sps:$4 sm:$0xff]  }
 0x12e   :  { %3649 = vmatprep.subr.bf16.mxu0 %v6406_v63  ;;  %v3109_v63 = vrot.slane %v5879_v7, %v6883_v38  ;;  %v6481_v7 = vld [vmem:[#allocation5 + $0x86c] ss:$16 sps:$4 sm:$0xff]  }
 0x12f   :  { %v7337_v33 = vrot.slane %v3110_v11, %v6883_v38  ;;  %v6458_v11 = vld [vmem:[#allocation5 + $0x7c8] ss:$16 sps:$4 sm:$0xff]  }
 0x130   :  { %3709 = vmatpush1.bf16.msra.mxu1 %v6395_v17  ;;  %v7340_v14 = vrot.slane %v3109_v63, %v6883_v38  ;;  %v6439_v17 = vld [vmem:[#allocation5 + $0x64c] ss:$16 sps:$4 sm:$0xff]  }
 0x131   :  { %3650 = vmatpush2.bf16.msra.mxu0 %v6404_v58  ;;  %3710 = vmatprep.subr.bf16.mxu1 %v6403_v4  ;;  %v3052_v58 = vcombine.high %v7293_v21, %v7296_v36  ;;  %v6437_v4 = vld [vmem:[#allocation5 + $0x648] ss:$16 sps:$4 sm:$0xff]   ;;  %v3111_v21 = vcombine.high %v7322_v56, %v7325_v1  ;;  %v3112_v36 = vcombine.high %v3109_v63, %v3109_v63  ;;  %v6475_v1 = vld [vmem:[#allocation5 + $0x88c] ss:$16 sps:$4 sm:$0xff]  }
 0x132   :  { %3651 = vmatprep.subr.bf16.mxu0 %v6412_v20  ;;  %v7349_v26 = vcombine.high %v7337_v33, %v7340_v14  ;;  %v6466_v63 = vld [vmem:[#allocation5 + $0x7ac] ss:$16 sps:$4 sm:$0xff]  }
 0x133   :  { %v3068_v28 = vrot.slane %v3052_v58, %v6883_v38 }
 0x134   :  { %3711 = vmatpush1.bf16.msra.mxu1 %v6401_v34 }
 0x135   :  { %3652 = vmatpush2.bf16.msra.mxu0 %v6410_v32  ;;  %3759 = vmatprep.subr.bf16.mxu1 %v6409_v59  ;;  %v7356_v32 = vcombine.low %v7287_v43, %v7290_v44  ;;  %v6451_v44 = vld [vmem:[#allocation5 + $0x60c] ss:$16 sps:$4 sm:$0xff]  }
 0x136   :  { %3653 = vmatprep.subr.bf16.mxu0 %v6418_v51  ;;  %v1551_v20 = vpop.f32.mrf.mxu1  ;;  %v7359_v51 = vcombine.low %v3068_v28, %v3082_v30  ;;  %v6469_v59 = vld [vmem:[#allocation5 + $0x8ac] ss:$16 sps:$4 sm:$0xff]   ;;  %v6470_v28 = vld [vmem:[#allocation5 + $0x788] ss:$16 sps:$4 sm:$0xff]  }
 0x137   :  { %3729 = vmatmul.mubr.bf16.vlgmr.msra.gmra.mxu1 %v7308_v62  ;;  %v6478_v30 = vld [vmem:[#allocation5 + $0x76c] ss:$16 sps:$4 sm:$0xff]  }
 0x138   :  { %3760 = vmatpush1.bf16.msra.mxu1 %v6407_v48  ;;  %3738 = vmatprep.mubr.bf16.mxu1 %v6806_v0  ;;  %v1553_v35 = vpop.f32.mrf.mxu1 }
 0x139   :  { %3654 = vmatpush2.bf16.msra.mxu0 %v6416_v45  ;;  %3761 = vmatprep.subr.bf16.mxu1 %v6415_v22  ;;  %v3126_v45 = vrot.slane %v3111_v21, %v6883_v38  ;;  %v6454_v22 = vld [vmem:[#allocation5 + $0x7ec] ss:$16 sps:$4 sm:$0xff]  }
 0x13a   :  { %3655 = vmatprep.subr.bf16.mxu0 %v6424_v3  ;;  %v3140_v3 = vrot.slane %v3112_v36, %v6883_v38  ;;  %v6476_v36 = vld [vmem:[#allocation5 + $0x768] ss:$16 sps:$4 sm:$0xff]  }
 0x13c   :  { %3762 = vmatpush1.bf16.msra.mxu1 %v6413_v24  ;;  %v7379_v38 = vcombine.low %v3126_v45, %v3140_v3  ;;  %v6452_v24 = vld [vmem:[#allocation5 + $0x7e8] ss:$16 sps:$4 sm:$0xff]  }
 0x13d   :  { %3656 = vmatpush2.bf16.msra.mxu0 %v6422_v57  ;;  %3763 = vmatprep.subr.bf16.mxu1 %v6421_v6  ;;  %v6460_v6 = vld [vmem:[#allocation5 + $0x7cc] ss:$16 sps:$4 sm:$0xff]   ;;  %v6502_v45 = vld [vmem:[#allocation8 + $0x74] ss:$8 sps:$4 sm:$0xff]  }
 0x13e   :  { %3657 = vmatprep.subr.bf16.mxu0 %v6430_v60  ;;  %v6467_v60 = vld [vmem:[#allocation5 + $0x8a8] ss:$16 sps:$4 sm:$0xff]  }
 0x13f   :  { %3739 = vmatmul.mubr.bf16.gmra.mxu1 %v7330_v10  ;;  %v6482_v3 = vld [vmem:[#allocation5 + $0x748] ss:$16 sps:$4 sm:$0xff]  }
 0x140   :  { %3764 = vmatpush1.bf16.msra.mxu1 %v6419_v12  ;;  %3748 = vmatprep.mubr.bf16.mxu1 %v6806_v0 }
 0x141   :  { %3658 = vmatpush2.bf16.msra.mxu0 %v6428_v5  ;;  %3765 = vmatprep.subr.bf16.mxu1 %v6427_v13 }
 0x142   :  { %3659 = vmatprep.subr.bf16.mxu0 %v6436_v9 }
 0x144   :  { %3766 = vmatpush1.bf16.msra.mxu1 %v6425_v15  ;;  %v6479_v15 = vld [vmem:[#allocation5 + $0x868] ss:$16 sps:$4 sm:$0xff]  }
 0x145   :  { %3660 = vmatpush2.bf16.msra.mxu0 %v6434_v50  ;;  %3767 = vmatprep.subr.bf16.mxu1 %v6433_v16  ;;  %v7387_v50 = vcombine.low %v7337_v33, %v7340_v14  ;;  %v6472_v33 = vld [vmem:[#allocation5 + $0x78c] ss:$16 sps:$4 sm:$0xff]  }
 0x146   :  { %3661 = vmatprep.subr.bf16.mxu0 %v6442_v52 }
 0x147   :  { %3749 = vmatmul.mubr.bf16.gmra.mxu1 %v7349_v26 }
 0x148   :  { %3768 = vmatpush1.bf16.msra.mxu1 %v6431_v49  ;;  %3791 = vmatprep.mubr.bf16.mxu1 %v7265_v23  ;;  %v1555_v23 = vpop.f32.mrf.mxu1 }
 0x149   :  { %3662 = vmatpush2.bf16.msra.mxu0 %v6440_v18  ;;  %3769 = vmatprep.subr.bf16.mxu1 %v6439_v17  ;;  %v6485_v17 = vld [vmem:[#allocation5 + $0x848] ss:$16 sps:$4 sm:$0xff]  }
 0x14a   :  { %3663 = vmatprep.subr.bf16.mxu0 %v6448_v19  ;;  %v1557_v48 = vpop.f32.mrf.mxu1  ;;  %v6487_v19 = vld [vmem:[#allocation5 + $0x84c] ss:$16 sps:$4 sm:$0xff]  }
 0x14c   :  { %3770 = vmatpush1.bf16.msra.mxu1 %v6437_v4 }
 0x14d   :  { %3664 = vmatpush2.bf16.msra.mxu0 %v6446_v27  ;;  %3771 = vmatprep.subr.bf16.mxu1 %v6445_v39  ;;  %v6493_v27 = vld [vmem:[#allocation5 + $0x82c] ss:$16 sps:$4 sm:$0xff]  }
 0x14e   :  { %3822 = vmatprep.subr.bf16.mxu0 %v6457_v41 }
 0x150   :  { %v1488_v37 = vpop.f32.mrf.mxu0  ;;  %3666 = vmatmul.mubr.bf16.vlgmr.msra.gmra.mxu0 %v7356_v32  ;;  %3772 = vmatpush1.bf16.msra.mxu1 %v6443_v46  ;;  %v6484_v46 = vld [vmem:[#allocation5 + $0x74c] ss:$16 sps:$4 sm:$0xff]  }
 0x151   :  { %v7363_v43 = vadd.f32 %v1551_v20, %v1488_v37  ;;  %3823 = vmatpush1.bf16.msra.mxu0 %v6455_v2  ;;  %3675 = vmatprep.mubr.bf16.mxu0 %v7359_v51  ;;  %v1561_v5 = vpop.f32.mrf.mxu1  ;;  %v6499_v2 = vld [vmem:[#allocation5 + $0x80c] ss:$16 sps:$4 sm:$0xff]  }
 0x152   :  { %v1490_v25 = vpop.f32.mrf.mxu0  ;;  %3824 = vmatprep.subr.bf16.mxu0 %v6463_v42  ;;  %3773 = vmatprep.subr.bf16.mxu1 %v6451_v44  ;;  %v6497_v44 = vld [vmem:[#allocation5 + $0x808] ss:$16 sps:$4 sm:$0xff]  }
 0x153   :  { %v7366_v34 = vadd.f32 %v1553_v35, %v1490_v25  ;;  %v1563_v13 = vpop.f32.mrf.mxu1  ;;  %v6491_v35 = vld [vmem:[#allocation5 + $0x828] ss:$16 sps:$4 sm:$0xff]  }
 0x154   :  { %v1492_v31 = vpop.f32.mrf.mxu0  ;;  %3774 = vmatpush1.bf16.msra.mxu1 %v6449_v40  ;;  %v6490_v40 = vld [vmem:[#allocation5 + $0x72c] ss:$16 sps:$4 sm:$0xff]  }
 0x155   :  { %v7371_v47 = vadd.f32 %v1555_v23, %v1492_v31  ;;  %3825 = vmatpush1.bf16.msra.mxu0 %v6461_v53  ;;  %3775 = vmatprep.subr.bf16.mxu1 %v6454_v22  ;;  %v1565_v18 = vpop.f32.mrf.mxu1  ;;  %v6500_v22 = vld [vmem:[#allocation8 + $0x70] ss:$8 sps:$4 sm:$0xff]  }
 0x156   :  { %v1494_v57 = vpop.f32.mrf.mxu0  ;;  %3826 = vmatprep.subr.bf16.mxu0 %v6469_v59 }
 0x157   :  { %v7377_v56 = vadd.f32 %v1557_v48, %v1494_v57  ;;  %v1567_v20 = vpop.f32.mrf.mxu1 }
 0x158   :  { %3676 = vmatmul.mubr.bf16.gmra.mxu0 %v7375_v55  ;;  %v1498_v54 = vpop.f32.mrf.mxu0  ;;  %3776 = vmatpush2.bf16.msra.mxu1 %v6452_v24  ;;  %v6496_v24 = vld [vmem:[#allocation5 + $0x70c] ss:$16 sps:$4 sm:$0xff]  }
 0x159   :  { %3827 = vmatpush1.bf16.msra.mxu0 %v6467_v60  ;;  %3685 = vmatprep.mubr.bf16.mxu0 %v7379_v38  ;;  %v7383_v9 = vadd.f32 %v1561_v5, %v1498_v54  ;;  %v6505_v60 = vld [vmem:[#allocation8 + $0x64] ss:$8 sps:$4 sm:$0xff]   ;;  %v6508_v5 = vld [vmem:[#allocation8 + $0x54] ss:$8 sps:$4 sm:$0xff]  }
 0x15a   :  { %3828 = vmatprep.subr.bf16.mxu0 %v6475_v1  ;;  %v1500_v12 = vpop.f32.mrf.mxu0  ;;  %3777 = vmatprep.subr.bf16.mxu1 %v6460_v6  ;;  %v6488_v1 = vld [vmem:[#allocation5 + $0x728] ss:$16 sps:$4 sm:$0xff]  }
 0x15b   :  { %v7389_v52 = vadd.f32 %v1563_v13, %v1500_v12  ;;  %v6506_v12 = vld [vmem:[#allocation8 + $0x50] ss:$8 sps:$4 sm:$0xff]  }
 0x15c   :  { %v1502_v16 = vpop.f32.mrf.mxu0  ;;  %3778 = vmatpush2.bf16.msra.mxu1 %v6458_v11 }
 0x15d   :  { %3829 = vmatpush1.bf16.msra.mxu0 %v6473_v8  ;;  %v7391_v58 = vadd.f32 %v1565_v18, %v1502_v16  ;;  %3779 = vmatprep.subr.bf16.mxu1 %v6466_v63  ;;  %v6503_v8 = vld [vmem:[#allocation8 + $0x60] ss:$8 sps:$4 sm:$0xff]   ;;  %v6511_v63 = vld [vmem:[#allocation8 + $0x44] ss:$8 sps:$4 sm:$0xff]  }
 0x15e   :  { %3830 = vmatprep.subr.bf16.mxu0 %v6481_v7  ;;  %v1504_v49 = vpop.f32.mrf.mxu0  ;;  %v6494_v7 = vld [vmem:[#allocation5 + $0x708] ss:$16 sps:$4 sm:$0xff]  }
 0x15f   :  { %v7394_v14 = vadd.f32 %v1567_v20, %v1504_v49  ;;  %v1571_v41 = vpop.f32.mrf.mxu1 }
 0x160   :  { %3686 = vmatmul.mubr.bf16.gmra.mxu0 %v7387_v50  ;;  %3780 = vmatpush2.bf16.msra.mxu1 %v6464_v61 }
 0x161   :  { %3831 = vmatpush1.bf16.msra.mxu0 %v6479_v15  ;;  %3854 = vmatprep.mubr.bf16.mxu0 %v6806_v0  ;;  %v1573_v4 = vpop.f32.mrf.mxu1  ;;  %v6509_v15 = vld [vmem:[#allocation8 + $0x40] ss:$8 sps:$4 sm:$0xff]  }
 0x162   :  { %3832 = vmatprep.subr.bf16.mxu0 %v6487_v19  ;;  %3781 = vmatprep.subr.bf16.mxu1 %v6472_v33  ;;  %v1508_v39 = vpop.f32.mrf.mxu0  ;;  %v6514_v19 = vld [vmem:[#allocation8 + $0x34] ss:$8 sps:$4 sm:$0xff]  }
 0x163   :  { %v7397_v42 = vadd.f32 %v1571_v41, %v1508_v39  ;;  %v1575_v21 = vpop.f32.mrf.mxu1  ;;  %v6529_v39 = vld [vmem:[#allocation8 + $0x174] ss:$8 sps:$4 sm:$0xff]  }
 0x164   :  { %3782 = vmatpush2.bf16.msra.mxu1 %v6470_v28  ;;  %v1510_v37 = vpop.f32.mrf.mxu0  ;;  %v6515_v28 = vld [vmem:[#allocation8 + $0x20] ss:$8 sps:$4 sm:$0xff]  }
 0x165   :  { %3833 = vmatpush1.bf16.msra.mxu0 %v6485_v17  ;;  %3783 = vmatprep.subr.bf16.mxu1 %v6478_v30  ;;  %v7399_v23 = vadd.f32 %v1573_v4, %v1510_v37  ;;  %v1577_v53 = vpop.f32.mrf.mxu1  ;;  %v6520_v4 = vld [vmem:[#allocation8 + $0x14] ss:$8 sps:$4 sm:$0xff]   ;;  %v6518_v37 = vld [vmem:[#allocation8 + $0x10] ss:$8 sps:$4 sm:$0xff]  }
 0x166   :  { %3834 = vmatprep.subr.bf16.mxu0 %v6493_v27  ;;  %v1512_v25 = vpop.f32.mrf.mxu0 }
 0x167   :  { %v7401_v59 = vadd.f32 %v1575_v21, %v1512_v25  ;;  %v6535_v21 = vld [vmem:[#allocation8 + $0x164] ss:$8 sps:$4 sm:$0xff]  }
 0x168   :  { %3784 = vmatpush2.bf16.msra.mxu1 %v6476_v36  ;;  %v1514_v31 = vpop.f32.mrf.mxu0  ;;  %v6523_v25 = vld [vmem:[#allocation8 + $0x4] ss:$8 sps:$4 sm:$0xff]  }
 0x169   :  { %3835 = vmatpush1.bf16.msra.mxu0 %v6491_v35  ;;  %3785 = vmatprep.subr.bf16.mxu1 %v6484_v46  ;;  %v7403_v48 = vadd.f32 %v1577_v53, %v1514_v31  ;;  %v6527_v35 = vld [vmem:[#allocation8 + $0x170] ss:$8 sps:$4 sm:$0xff]   ;;  %v6533_v46 = vld [vmem:[#allocation8 + $0x160] ss:$8 sps:$4 sm:$0xff]  }
 0x16a   :  { %3836 = vmatprep.subr.bf16.mxu0 %v6499_v2 }
 0x16b   :  { %8065 = vst [vmem:[#allocation19_spill] sm:$0xff] %v7403_v48 }
 0x16c   :  { %3786 = vmatpush2.bf16.msra.mxu1 %v6482_v3 }
 0x16d   :  { %3837 = vmatpush1.bf16.msra.mxu0 %v6497_v44  ;;  %3787 = vmatprep.subr.bf16.mxu1 %v6490_v40  ;;  %v6539_v40 = vld [vmem:[#allocation8 + $0x150] ss:$8 sps:$4 sm:$0xff]  }
 0x16e   :  { %4375 = vmatprep.subr.bf16.mxu0 %v6502_v45  ;;  %v6541_v45 = vld [vmem:[#allocation8 + $0x154] ss:$8 sps:$4 sm:$0xff]  }
 0x170   :  { %v1677_v57 = vpop.f32.mrf.mxu0  ;;  %3855 = vmatmul.mubr.bf16.vlgmr.msra.gmra.mxu0 %v7308_v62  ;;  %3788 = vmatpush2.bf16.msra.mxu1 %v6488_v1  ;;  %v6547_v1 = vld [vmem:[#allocation8 + $0x144] ss:$8 sps:$4 sm:$0xff]  }
 0x171   :  { %3864 = vmatprep.mubr.bf16.mxu0 %v6806_v0  ;;  %4376 = vmatpush1.bf16.msra.mxu0 %v6500_v22 }
 0x172   :  { %v1679_v6 = vpop.f32.mrf.mxu0  ;;  %4377 = vmatprep.subr.bf16.mxu0 %v6505_v60  ;;  %3789 = vmatprep.subr.bf16.mxu1 %v6496_v24  ;;  %v6526_v60 = vld [vmem:[#allocation8 + $0xf4] ss:$8 sps:$4 sm:$0xff]  }
 0x174   :  { %v1681_v54 = vpop.f32.mrf.mxu0  ;;  %3790 = vmatpush2.bf16.msra.mxu1 %v6494_v7 }
 0x175   :  { %4378 = vmatpush1.bf16.msra.mxu0 %v6503_v8  ;;  %4438 = vmatprep.subr.bf16.mxu1 %v6529_v39  ;;  %v6560_v39 = vld [vmem:[#allocation8 + $0x90] ss:$8 sps:$4 sm:$0xff]  }
 0x176   :  { %v1683_v11 = vpop.f32.mrf.mxu0  ;;  %4379 = vmatprep.subr.bf16.mxu0 %v6508_v5  ;;  %v6545_v5 = vld [vmem:[#allocation8 + $0x140] ss:$8 sps:$4 sm:$0xff]  }
 0x177   :  { %v1614_v16 = vpop.f32.mrf.mxu1  ;;  %3792 = vmatmul.mubr.bf16.vlgmr.msra.gmra.mxu1 %v7356_v32 }
 0x178   :  { %v1687_v13 = vpop.f32.mrf.mxu0  ;;  %3865 = vmatmul.mubr.bf16.gmra.mxu0 %v7330_v10  ;;  %v7410_v61 = vadd.f32 %v1677_v57, %v1614_v16  ;;  %3801 = vmatprep.mubr.bf16.mxu1 %v7359_v51  ;;  %v6512_v10 = vld [vmem:[#allocation8 + $0x30] ss:$8 sps:$4 sm:$0xff]  }
 0x179   :  { %3874 = vmatprep.mubr.bf16.mxu0 %v6806_v0  ;;  %4380 = vmatpush1.bf16.msra.mxu0 %v6506_v12  ;;  %v1616_v49 = vpop.f32.mrf.mxu1  ;;  %v6517_v0 = vld [vmem:[#allocation8 + $0x24] ss:$8 sps:$4 sm:$0xff]   ;;  %v6536_v16 = vld [vmem:[#allocation8 + $0xd0] ss:$8 sps:$4 sm:$0xff]  }
 0x17a   :  { %v1689_v62 = vpop.f32.mrf.mxu0  ;;  %4381 = vmatprep.subr.bf16.mxu0 %v6511_v63  ;;  %v7413_v20 = vadd.f32 %v1679_v6, %v1616_v49  ;;  %4439 = vmatpush1.bf16.msra.mxu1 %v6527_v35  ;;  %v6532_v12 = vld [vmem:[#allocation8 + $0xe4] ss:$8 sps:$4 sm:$0xff]   ;;  %v6550_v49 = vld [vmem:[#allocation8 + $0xb4] ss:$8 sps:$4 sm:$0xff]   ;;  %v6563_v35 = vld [vmem:[#allocation8 + $0x110] ss:$8 sps:$4 sm:$0xff]  }
 0x17b   :  { %v1618_v33 = vpop.f32.mrf.mxu1  ;;  %4440 = vmatprep.subr.bf16.mxu1 %v6535_v21  ;;  %v6568_v21 = vld [vmem:[#allocation8 + $0x84] ss:$8 sps:$4 sm:$0xff]  }
 0x17c   :  { %v1691_v18 = vpop.f32.mrf.mxu0  ;;  %v7415_v27 = vadd.f32 %v1681_v54, %v1618_v33  ;;  %v6524_v54 = vld [vmem:[#allocation8 + $0xf0] ss:$8 sps:$4 sm:$0xff]  }
 0x17d   :  { %4382 = vmatpush1.bf16.msra.mxu0 %v6509_v15  ;;  %v1620_v32 = vpop.f32.mrf.mxu1  ;;  %v6538_v15 = vld [vmem:[#allocation8 + $0xd4] ss:$8 sps:$4 sm:$0xff]   ;;  %v6551_v33 = vld [vmem:[#allocation8 + $0x130] ss:$8 sps:$4 sm:$0xff]  }
 0x17e   :  { %v1693_v17 = vpop.f32.mrf.mxu0  ;;  %4383 = vmatprep.subr.bf16.mxu0 %v6514_v19  ;;  %v7418_v41 = vadd.f32 %v1683_v11, %v1620_v32  ;;  %4441 = vmatpush1.bf16.msra.mxu1 %v6533_v46  ;;  %v6542_v19 = vld [vmem:[#allocation8 + $0xc0] ss:$8 sps:$4 sm:$0xff]   ;;  %v6559_v32 = vld [vmem:[#allocation8 + $0x124] ss:$8 sps:$4 sm:$0xff]  }
 0x17f   :  { %3802 = vmatmul.mubr.bf16.gmra.mxu1 %v7375_v55  ;;  %v1624_v51 = vpop.f32.mrf.mxu1  ;;  %4442 = vmatprep.subr.bf16.mxu1 %v6541_v45  ;;  %v6566_v46 = vld [vmem:[#allocation8 + $0x80] ss:$8 sps:$4 sm:$0xff]   ;;  %v6577_v45 = vld [vmem:[#allocation8 + $0x1e4] ss:$8 sps:$4 sm:$0xff]  }
 0x180   :  { %3875 = vmatmul.mubr.bf16.gmra.mxu0 %v7349_v26  ;;  %v1697_v30 = vpop.f32.mrf.mxu0  ;;  %v7421_v2 = vadd.f32 %v1687_v13, %v1624_v51  ;;  %3811 = vmatprep.mubr.bf16.mxu1 %v7379_v38  ;;  %v6521_v38 = vld [vmem:[#allocation8] ss:$8 sps:$4 sm:$0xff]  }
 0x181   :  { %4384 = vmatpush1.bf16.msra.mxu0 %v6512_v10  ;;  %v1626_v36 = vpop.f32.mrf.mxu1  ;;  %v6553_v10 = vld [vmem:[#allocation8 + $0x134] ss:$8 sps:$4 sm:$0xff]   ;;  %v6554_v51 = vld [vmem:[#allocation8 + $0xa0] ss:$8 sps:$4 sm:$0xff]  }
 0x182   :  { %4385 = vmatprep.subr.bf16.mxu0 %v6517_v0  ;;  %v7424_v26 = vadd.f32 %v1689_v62, %v1626_v36  ;;  %v1699_v44 = vpop.f32.mrf.mxu0  ;;  %4443 = vmatpush1.bf16.msra.mxu1 %v6539_v40  ;;  %v6530_v62 = vld [vmem:[#allocation8 + $0xe0] ss:$8 sps:$4 sm:$0xff]   ;;  %v6556_v0 = vld [vmem:[#allocation8 + $0xa4] ss:$8 sps:$4 sm:$0xff]   ;;  %v6580_v40 = vld [vmem:[#allocation8 + $0x1d4] ss:$8 sps:$4 sm:$0xff]  }
 0x183   :  { %v1628_v55 = vpop.f32.mrf.mxu1  ;;  %4444 = vmatprep.subr.bf16.mxu1 %v6547_v1  ;;  %v6571_v36 = vld [vmem:[#allocation8 + $0x104] ss:$8 sps:$4 sm:$0xff]  }
 0x184   :  { %v7426_v53 = vadd.f32 %v1691_v18, %v1628_v55  ;;  %v1701_v57 = vpop.f32.mrf.mxu0  ;;  %v6544_v18 = vld [vmem:[#allocation8 + $0xc4] ss:$8 sps:$4 sm:$0xff]   ;;  %v6574_v55 = vld [vmem:[#allocation8 + $0x1f4] ss:$8 sps:$4 sm:$0xff]  }
 0x185   :  { %4386 = vmatpush1.bf16.msra.mxu0 %v6515_v28  ;;  %v1630_v3 = vpop.f32.mrf.mxu1  ;;  %v6557_v28 = vld [vmem:[#allocation8 + $0x120] ss:$8 sps:$4 sm:$0xff]   ;;  %v6583_v1 = vld [vmem:[#allocation8 + $0x1c4] ss:$8 sps:$4 sm:$0xff]  }
 0x186   :  { %4387 = vmatprep.subr.bf16.mxu0 %v6520_v4  ;;  %v7428_v31 = vadd.f32 %v1693_v17, %v1630_v3  ;;  %v1703_v11 = vpop.f32.mrf.mxu0  ;;  %4445 = vmatpush1.bf16.msra.mxu1 %v6545_v5  ;;  %v6548_v17 = vld [vmem:[#allocation8 + $0xb0] ss:$8 sps:$4 sm:$0xff]   ;;  %v6565_v4 = vld [vmem:[#allocation8 + $0x114] ss:$8 sps:$4 sm:$0xff]   ;;  %v6581_v5 = vld [vmem:[#allocation8 + $0x1c0] ss:$8 sps:$4 sm:$0xff]  }
 0x187   :  { %3812 = vmatmul.mubr.bf16.gmra.mxu1 %v7387_v50  ;;  %v1634_v22 = vpop.f32.mrf.mxu1  ;;  %4446 = vmatprep.subr.bf16.mxu1 %v6553_v10  ;;  %v6587_v10 = vld [vmem:[#allocation8 + $0x1a0] ss:$8 sps:$4 sm:$0xff]  }
 0x188   :  { %v7431_v24 = vadd.f32 %v1697_v30, %v1634_v22  ;;  %v6562_v30 = vld [vmem:[#allocation8 + $0x94] ss:$8 sps:$4 sm:$0xff]  }
 0x189   :  { %4388 = vmatpush1.bf16.msra.mxu0 %v6518_v37  ;;  %v1636_v6 = vpop.f32.mrf.mxu1  ;;  %v6569_v37 = vld [vmem:[#allocation8 + $0x100] ss:$8 sps:$4 sm:$0xff]  }
 0x18a   :  { %4389 = vmatprep.subr.bf16.mxu0 %v6523_v25  ;;  %v7433_v8 = vadd.f32 %v1699_v44, %v1636_v6  ;;  %4447 = vmatpush1.bf16.msra.mxu1 %v6551_v33  ;;  %v6572_v44 = vld [vmem:[#allocation8 + $0x1f0] ss:$8 sps:$4 sm:$0xff]  }
 0x18b   :  { %v1638_v7 = vpop.f32.mrf.mxu1  ;;  %4448 = vmatprep.subr.bf16.mxu1 %v6559_v32  ;;  %v6592_v32 = vld [vmem:[#allocation8 + $0x194] ss:$8 sps:$4 sm:$0xff]  }
 0x18c   :  { %v7435_v50 = vadd.f32 %v1701_v57, %v1638_v7  ;;  %v6578_v57 = vld [vmem:[#allocation8 + $0x1d0] ss:$8 sps:$4 sm:$0xff]  }
 0x18d   :  { %4390 = vmatpush1.bf16.msra.mxu0 %v6521_v38  ;;  %v1640_v13 = vpop.f32.mrf.mxu1  ;;  %v6575_v38 = vld [vmem:[#allocation8 + $0x1e0] ss:$8 sps:$4 sm:$0xff]  }
 0x18e   :  { %4391 = vmatprep.subr.bf16.mxu0 %v6526_v60  ;;  %v7437_v63 = vadd.f32 %v1703_v11, %v1640_v13  ;;  %4449 = vmatpush1.bf16.msra.mxu1 %v6557_v28 }
 0x18f   :  { %4450 = vmatprep.subr.bf16.mxu1 %v6565_v4 }
 0x191   :  { %4392 = vmatpush2.bf16.msra.mxu0 %v6524_v54 }
 0x192   :  { %4393 = vmatprep.subr.bf16.mxu0 %v6532_v12  ;;  %4451 = vmatpush1.bf16.msra.mxu1 %v6563_v35  ;;  %v6595_v35 = vld [vmem:[#allocation8 + $0x184] ss:$8 sps:$4 sm:$0xff]  }
 0x193   :  { %4452 = vmatprep.subr.bf16.mxu1 %v6571_v36 }
 0x195   :  { %4394 = vmatpush2.bf16.msra.mxu0 %v6530_v62  ;;  %v6586_v62 = vld [vmem:[#allocation8 + $0x1b4] ss:$8 sps:$4 sm:$0xff]  }
 0x196   :  { %4395 = vmatprep.subr.bf16.mxu0 %v6538_v15  ;;  %4453 = vmatpush1.bf16.msra.mxu1 %v6569_v37 }
 0x197   :  { %4454 = vmatprep.subr.bf16.mxu1 %v6574_v55  ;;  %v7439_v25 = vpop.f32.mrf.mxu1 }
 0x199   :  { %4396 = vmatpush2.bf16.msra.mxu0 %v6536_v16  ;;  %v7445_v60 = vpop.f32.mrf.mxu1  ;;  %v6584_v16 = vld [vmem:[#allocation8 + $0x1b0] ss:$8 sps:$4 sm:$0xff]  }
 0x19a   :  { %4397 = vmatprep.subr.bf16.mxu0 %v6544_v18  ;;  %4455 = vmatpush2.bf16.msra.mxu1 %v6572_v44 }
 0x19b   :  { %4456 = vmatprep.subr.bf16.mxu1 %v6577_v45  ;;  %v7451_v7 = vpop.f32.mrf.mxu1 }
 0x19d   :  { %4398 = vmatpush2.bf16.msra.mxu0 %v6542_v19  ;;  %v7457_v13 = vpop.f32.mrf.mxu1 }
 0x19e   :  { %4399 = vmatprep.subr.bf16.mxu0 %v6550_v49  ;;  %4457 = vmatpush2.bf16.msra.mxu1 %v6575_v38  ;;  %v6589_v49 = vld [vmem:[#allocation8 + $0x1a4] ss:$8 sps:$4 sm:$0xff]  }
 0x19f   :  { %4458 = vmatprep.subr.bf16.mxu1 %v6580_v40  ;;  %v7461_v18 = vpop.f32.mrf.mxu1 }
 0x1a1   :  { %4400 = vmatpush2.bf16.msra.mxu0 %v6548_v17  ;;  %v7465_v33 = vpop.f32.mrf.mxu1 }
 0x1a2   :  { %4401 = vmatprep.subr.bf16.mxu0 %v6556_v0  ;;  %4459 = vmatpush2.bf16.msra.mxu1 %v6578_v57 }
 0x1a3   :  { %4460 = vmatprep.subr.bf16.mxu1 %v6583_v1  ;;  %v7469_v0 = vpop.f32.mrf.mxu1 }
 0x1a5   :  { %4402 = vmatpush2.bf16.msra.mxu0 %v6554_v51  ;;  %v6590_v51 = vld [vmem:[#allocation8 + $0x190] ss:$8 sps:$4 sm:$0xff]  }
 0x1a6   :  { %4403 = vmatprep.subr.bf16.mxu0 %v6562_v30  ;;  %4461 = vmatpush2.bf16.msra.mxu1 %v6581_v5  ;;  %v7473_v30 = vpop.f32.mrf.mxu1 }
 0x1a7   :  { %4462 = vmatprep.subr.bf16.mxu1 %v6586_v62 }
 0x1a9   :  { %4404 = vmatpush2.bf16.msra.mxu0 %v6560_v39  ;;  %v6593_v39 = vld [vmem:[#allocation8 + $0x180] ss:$8 sps:$4 sm:$0xff]  }
 0x1aa   :  { %4405 = vmatprep.subr.bf16.mxu0 %v6568_v21  ;;  %4463 = vmatpush2.bf16.msra.mxu1 %v6584_v16  ;;  %v7477_v21 = vpop.f32.mrf.mxu1 }
 0x1ab   :  { %4464 = vmatprep.subr.bf16.mxu1 %v6589_v49 }
 0x1ad   :  { %4406 = vmatpush2.bf16.msra.mxu0 %v6566_v46  ;;  %v7481_v46 = vpop.f32.mrf.mxu1 }
 0x1ae   :  { %4465 = vmatpush2.bf16.msra.mxu1 %v6587_v10  ;;  %8068 = vst [vmem:[#allocation22_spill] sm:$0xff] %v7481_v46 }
 0x1af   :  { %4466 = vmatprep.subr.bf16.mxu1 %v6592_v32  ;;  %v7483_v45 = vpop.f32.mrf.mxu1 }
 0x1b0   :  { %v7441_v3 = vpop.f32.mrf.mxu0  ;;  %8069 = vst [vmem:[#allocation23_spill] sm:$0xff] %v7483_v45 }
 0x1b1   :  { %v7485_v57 = vpop.f32.mrf.mxu1 }
 0x1b2   :  { %v7443_v22 = vpop.f32.mrf.mxu0  ;;  %4467 = vmatpush2.bf16.msra.mxu1 %v6590_v51  ;;  %8070 = vst [vmem:[#allocation24_spill] sm:$0xff] %v7485_v57 }
 0x1b3   :  { %4468 = vmatprep.subr.bf16.mxu1 %v6595_v35 }
 0x1b4   :  { %v7447_v6 = vpop.f32.mrf.mxu0 }
 0x1b6   :  { %v7449_v54 = vpop.f32.mrf.mxu0  ;;  %4469 = vmatpush2.bf16.msra.mxu1 %v6593_v39 }
 0x1b8   :  { %v7453_v11 = vpop.f32.mrf.mxu0 }
 0x1ba   :  { %v7455_v12 = vpop.f32.mrf.mxu0 }
 0x1bc   :  { %v7459_v15 = vpop.f32.mrf.mxu0 }
 0x1be   :  { %v7463_v19 = vpop.f32.mrf.mxu0 }
 0x1c0   :  { %v7467_v17 = vpop.f32.mrf.mxu0 }
 0x1c2   :  { %v7471_v28 = vpop.f32.mrf.mxu0 }
 0x1c4   :  { %v7475_v4 = vpop.f32.mrf.mxu0 }
 0x1c5   :  { %8066 = vst [vmem:[#allocation20_spill] sm:$0xff] %v7475_v4 }
 0x1c6   :  { %v7479_v36 = vpop.f32.mrf.mxu0 }
 0x1c7   :  { %8067 = vst [vmem:[#allocation21_spill] sm:$0xff] %v7479_v36 }
 0x1d0   :  { %v2610_v37 = vpop.f32.mrf.mxu0 }
 0x1d2   :  { %v2612_v55 = vpop.f32.mrf.mxu0 }
 0x1d4   :  { %v2614_v44 = vpop.f32.mrf.mxu0 }
 0x1d6   :  { %v2616_v38 = vpop.f32.mrf.mxu0 }
 0x1d7   :  { %v2547_v5 = vpop.f32.mrf.mxu1 }
 0x1d8   :  { %v2620_v40 = vpop.f32.mrf.mxu0  ;;  %v2548_v62 = vadd.f32 %v2547_v5, %v7410_v61 }
 0x1d9   :  { %v2549_v16 = vpop.f32.mrf.mxu1 }
 0x1da   :  { %v2622_v1 = vpop.f32.mrf.mxu0  ;;  %v7488_v10 = vadd.f32 %v2610_v37, %v2548_v62  ;;  %v2550_v32 = vadd.f32 %v2549_v16, %v7413_v20 }
 0x1db   :  { %v2551_v51 = vpop.f32.mrf.mxu1 }
 0x1dc   :  { %v2624_v49 = vpop.f32.mrf.mxu0  ;;  %v7491_v35 = vadd.f32 %v2612_v55, %v2550_v32  ;;  %v2552_v39 = vadd.f32 %v2551_v51, %v7415_v27 }
 0x1dd   :  { %v2553_v45 = vpop.f32.mrf.mxu1 }
 0x1de   :  { %v2626_v36 = vpop.f32.mrf.mxu0  ;;  %v7494_v48 = vadd.f32 %v2614_v44, %v2552_v39  ;;  %v2554_v57 = vadd.f32 %v2553_v45, %v7418_v41 }
 0x1df   :  { %v2557_v46 = vpop.f32.mrf.mxu1 }
 0x1e0   :  { %v7497_v4 = vadd.f32 %v2616_v38, %v2554_v57  ;;  %v2558_v61 = vadd.f32 %v2557_v46, %v7421_v2  ;;  %v2630_v5 = vpop.f32.mrf.mxu0 }
 0x1e1   :  { %v2559_v37 = vpop.f32.mrf.mxu1 }
 0x1e2   :  { %v2560_v20 = vadd.f32 %v2559_v37, %v7424_v26  ;;  %v7501_v62 = vadd.f32 %v2620_v40, %v2558_v61  ;;  %v2632_v32 = vpop.f32.mrf.mxu0 }
 0x1e3   :  { %v2561_v55 = vpop.f32.mrf.mxu1 }
 0x1e4   :  { %v2562_v27 = vadd.f32 %v2561_v55, %v7426_v53  ;;  %v7504_v16 = vadd.f32 %v2622_v1, %v2560_v20  ;;  %v2634_v26 = vpop.f32.mrf.mxu0 }
 0x1e5   :  { %v2563_v44 = vpop.f32.mrf.mxu1 }
 0x1e6   :  { %v2564_v41 = vadd.f32 %v2563_v44, %v7428_v31  ;;  %v7507_v45 = vadd.f32 %v2624_v49, %v2562_v27  ;;  %v2636_v31 = vpop.f32.mrf.mxu0  ;;  %v2422_v44 = vadd.f32 %v7441_v3, %v7363_v43  ;;  %v2426_v43 = vadd.f32 %v7447_v6, %v7371_v47 }
 0x1e7   :  { %v2567_v38 = vpop.f32.mrf.mxu1  ;;  %v2432_v47 = vadd.f32 %v7453_v11, %v7383_v9  ;;  %v2442_v9 = vadd.f32 %v7467_v17, %v7397_v42 }
 0x1e8   :  { %v2568_v2 = vadd.f32 %v2567_v38, %v7431_v24  ;;  %v7510_v46 = vadd.f32 %v2626_v36, %v2564_v41  ;;  %v2424_v41 = vadd.f32 %v7443_v22, %v7366_v34  ;;  %v2428_v22 = vadd.f32 %v7449_v54, %v7377_v56 }
 0x1e9   :  { %v2569_v57 = vpop.f32.mrf.mxu1  ;;  %v2436_v56 = vadd.f32 %v7459_v15, %v7391_v58  ;;  %v2438_v54 = vadd.f32 %v7463_v19, %v7394_v14 }
 0x1ea   :  { %v2570_v40 = vadd.f32 %v2569_v57, %v7433_v8  ;;  %v7513_v51 = vadd.f32 %v2630_v5, %v2568_v2  ;;  %v6808_v2 = vmov 1983009808   ;;  %v2487_v34 = vadd.f32 %v7445_v60, %v2424_v41 }
 0x1eb   :  { %v2571_v53 = vpop.f32.mrf.mxu1  ;;  %v4516_v57 = vunpack.c.l.s4 %v6808_v2  ;;  %v2434_v60 = vadd.f32 %v7455_v12, %v7389_v52  ;;  %v2444_v52 = vadd.f32 %v7471_v28, %v7399_v23  ;;  %v2505_v23 = vadd.f32 %v7477_v21, %v2442_v9 }
 0x1ec   :  { %v2572_v1 = vadd.f32 %v2571_v53, %v7435_v50  ;;  %v7516_v39 = vadd.f32 %v2632_v32, %v2570_v40  ;;  %v7526_v50 = vsub.s32 0, %v6876_v29  ;;  %v7528_v32 = vld [vmem:[#allocation7] sm:$0xf]  ;;  %v2485_v40 = vadd.f32 %v7439_v25, %v2422_v44 }
 0x1ed   :  { %v2573_v61 = vpop.f32.mrf.mxu1  ;;  %v4517_v6 = vunpack.c.0.s8 %v4516_v57  ;;  %v2489_v44 = vadd.f32 %v7451_v7, %v2426_v43 }
 0x1ee   :  { %v2574_v49 = vadd.f32 %v2573_v61, %v7437_v63  ;;  %v7519_v37 = vadd.f32 %v2634_v26, %v2572_v1  ;;  %v7531_v63 = vsub.s32 1, %v6876_v29  ;;  %v7540_v53 = vrot.slane %v7528_v32, %v7526_v50 }
 0x1ef   :  { %v7569_v58 = vsub.s32 %v4517_v6, %v6876_v29 }
 0x1f0   :  { %v7521_v24 = vadd.f32 %v2636_v31, %v2574_v49  ;;  %8071 = vst [vmem:[#allocation25_spill] sm:$0xff] %v7531_v63  ;;  %v7544_v61 = vrot.slane %v7528_v32, %v7531_v63 }
 0x1f7   :  { %v3730_v36 = vpop.f32.mrf.mxu1 }
 0x1f9   :  { %v3732_v20 = vpop.f32.mrf.mxu1 }
 0x1fb   :  { %v3734_v55 = vpop.f32.mrf.mxu1 }
 0x1fd   :  { %v3736_v27 = vpop.f32.mrf.mxu1 }
 0x1ff   :  { %v3740_v8 = vpop.f32.mrf.mxu1 }
 0x201   :  { %v3742_v5 = vpop.f32.mrf.mxu1 }
 0x203   :  { %v3744_v26 = vpop.f32.mrf.mxu1 }
 0x210   :  { %v3667_v38 = vpop.f32.mrf.mxu0 }
 0x211   :  { %v3731_v3 = vadd.f32 %v3730_v36, %v3667_v38  ;;  %v3746_v36 = vpop.f32.mrf.mxu1 }
 0x212   :  { %v3669_v1 = vpop.f32.mrf.mxu0 }
 0x213   :  { %v3885_v31 = vadd.f32 %v3731_v3, %v2485_v40  ;;  %v3733_v25 = vadd.f32 %v3732_v20, %v3669_v1  ;;  %v2491_v20 = vadd.f32 %v7457_v13, %v2428_v22  ;;  %v3750_v15 = vpop.f32.mrf.mxu1 }
 0x214   :  { %v3671_v49 = vpop.f32.mrf.mxu0 }
 0x215   :  { %v3931_v38 = vadd.f32 %v7540_v53, %v3885_v31  ;;  %v3886_v2 = vadd.f32 %v3733_v25, %v2487_v34  ;;  %v3735_v63 = vadd.f32 %v3734_v55, %v3671_v49  ;;  %v2495_v55 = vadd.f32 %v7461_v18, %v2432_v47  ;;  %v8072_v34 = vld [vmem:[#allocation20_spill] sm:$0xff]  ;;  %v3752_v47 = vpop.f32.mrf.mxu1 }
 0x216   :  { %v3673_v11 = vpop.f32.mrf.mxu0  ;;  %v2501_v18 = vadd.f32 %v7473_v30, %v2438_v54  ;;  %v2446_v22 = vadd.f32 %v8072_v34, %v7401_v59 }
 0x217   :  { %v3932_v7 = vadd.f32 %v7544_v61, %v3886_v2  ;;  %v3889_v41 = vadd.f32 %v3735_v63, %v2489_v44  ;;  %v3737_v57 = vadd.f32 %v3736_v27, %v3673_v11  ;;  %v7566_v12 = vmax.f32 %v3931_v38, 0.0  ;;  %v8074_v44 = vld [vmem:[#allocation19_spill] sm:$0xff]  ;;  %v8075_v38 = vld [vmem:[#allocation21_spill] sm:$0xff] }
 0x218   :  { %v3677_v14 = vpop.f32.mrf.mxu0  ;;  %v2497_v63 = vadd.f32 %v7465_v33, %v2434_v60  ;;  %v2499_v27 = vadd.f32 %v7469_v0, %v2436_v56  ;;  %v2448_v2 = vadd.f32 %v8075_v38, %v8074_v44  ;;  %v8077_v44 = vld [vmem:[#allocation24_spill] sm:$0xff] }
 0x219   :  { %v3956_v42 = vmax.f32 %v3932_v7, 0.0  ;;  %v3935_v19 = vadd.f32 %v7540_v53, %v3889_v41  ;;  %v3890_v13 = vadd.f32 %v3737_v57, %v2491_v20  ;;  %v3741_v17 = vadd.f32 %v3740_v8, %v3677_v14  ;;  %v8073_v8 = vld [vmem:[#allocation22_spill] sm:$0xff] }
 0x21a   :  { %v3679_v28 = vpop.f32.mrf.mxu0  ;;  %v2507_v31 = vadd.f32 %v8073_v8, %v2444_v52  ;;  %v2511_v38 = vadd.f32 %v8077_v44, %v2448_v2 }
 0x21b   :  { %v5026_v40 = vcombine.low %v7566_v12, %v3956_v42  ;;  %v5027_v43 = vcombine.high %v7566_v12, %v3956_v42  ;;  %v3959_v3 = vmax.f32 %v3935_v19, 0.0  ;;  %v3936_v1 = vadd.f32 %v7544_v61, %v3890_v13 }
 0x21c   :  { %v3893_v33 = vadd.f32 %v3741_v17, %v2495_v55  ;;  %v3743_v25 = vadd.f32 %v3742_v5, %v3679_v28  ;;  %v3681_v0 = vpop.f32.mrf.mxu0 }
 0x21d   :  { %v5036_v30 = vrot.slane %v5026_v40, %v7569_v58  ;;  %v5043_v21 = vrot.slane %v5027_v43, %v7569_v58  ;;  %v3979_v6 = vpack.c.bf16 %v3959_v3, %v7566_v12  ;;  %v3960_v49 = vmax.f32 %v3936_v1, 0.0  ;;  %v3754_v12 = vpop.f32.mrf.mxu1 }
 0x21e   :  { %v3939_v60 = vadd.f32 %v7540_v53, %v3893_v33  ;;  %v3894_v56 = vadd.f32 %v3743_v25, %v2497_v63  ;;  %v3745_v59 = vadd.f32 %v3744_v26, %v3681_v0  ;;  %v3683_v54 = vpop.f32.mrf.mxu0 }
 0x21f   :  { %v7589_v9 = vrot.slane %v5036_v30, %v7569_v58  ;;  %v7592_v5 = vrot.slane %v5043_v21, %v7569_v58  ;;  %v5062_v11 = vcombine.low %v3959_v3, %v3960_v49  ;;  %v5063_v20 = vcombine.high %v3959_v3, %v3960_v49  ;;  %v3756_v25 = vpop.f32.mrf.mxu1  ;;  %v8076_v21 = vld [vmem:[#allocation23_spill] sm:$0xff] }
 0x220   :  { %v7594_v7 = vmax.f32 %v3939_v60, 0.0  ;;  %v3940_v41 = vadd.f32 %v7544_v61, %v3894_v56  ;;  %v3897_v57 = vadd.f32 %v3745_v59, %v2499_v27  ;;  %v3747_v55 = vadd.f32 %v3746_v36, %v3683_v54  ;;  %v3687_v52 = vpop.f32.mrf.mxu0 }
 0x221   :  { %v5256_v26 = vcombine.low %v7589_v9, %v7592_v5  ;;  %v5257_v14 = vcombine.high %v7589_v9, %v7592_v5  ;;  %v5072_v19 = vrot.slane %v5062_v11, %v7569_v58  ;;  %v5079_v13 = vrot.slane %v5063_v20, %v7569_v58 }
 0x222   :  { %v7603_v17 = vmax.f32 %v3940_v41, 0.0  ;;  %v3943_v63 = vadd.f32 %v7540_v53, %v3897_v57  ;;  %v3898_v28 = vadd.f32 %v3747_v55, %v2501_v18  ;;  %v3751_v40 = vadd.f32 %v3750_v15, %v3687_v52  ;;  %v3689_v27 = vpop.f32.mrf.mxu0 }
 0x223   :  { %v7607_v36 = vrot.slane %v5072_v19, %v7569_v58  ;;  %v7610_v43 = vrot.slane %v5079_v13, %v7569_v58  ;;  %v3980_v3 = vpack.c.bf16 %v3960_v49, %v3956_v42  ;;  %v3753_v1 = vadd.f32 %v3752_v47, %v3689_v27 }
 0x224   :  { %v5098_v34 = vcombine.low %v7594_v7, %v7603_v17  ;;  %v5099_v8 = vcombine.high %v7594_v7, %v7603_v17  ;;  %v7616_v33 = vmax.f32 %v3943_v63, 0.0  ;;  %v3944_v18 = vadd.f32 %v7544_v61, %v3898_v28  ;;  %v3691_v15 = vpop.f32.mrf.mxu0 }
 0x225   :  { %v3901_v42 = vadd.f32 %v3751_v40, %v2505_v23  ;;  %4407 = vmatprep.mubr.bf16.mxu0 %v3980_v3  ;;  %v3902_v47 = vadd.f32 %v3753_v1, %v2507_v31  ;;  %v2509_v49 = vadd.f32 %v8076_v21, %v2446_v22  ;;  %v3755_v56 = vadd.f32 %v3754_v12, %v3691_v15 }
 0x226   :  { %v7625_v60 = vmax.f32 %v3944_v18, 0.0  ;;  %4408 = vmatmul.mubr.bf16.vlgmr.msra.gmra.mxu0 %v3979_v6  ;;  %v3693_v59 = vpop.f32.mrf.mxu0  ;;  %v3983_v41 = vpack.c.bf16 %v7616_v33, %v7594_v7 }
 0x227   :  { %v3947_v54 = vadd.f32 %v7540_v53, %v3901_v42  ;;  %v3948_v11 = vadd.f32 %v7544_v61, %v3902_v47  ;;  %v3757_v20 = vadd.f32 %v3756_v25, %v3693_v59  ;;  %v3905_v31 = vadd.f32 %v3755_v56, %v2509_v49 }
 0x228   :  { %v5134_v23 = vcombine.low %v7616_v33, %v7625_v60  ;;  %v5135_v22 = vcombine.high %v7616_v33, %v7625_v60  ;;  %v3984_v55 = vpack.c.bf16 %v7625_v60, %v7603_v17  ;;  %v3921_v25 = vsub.s32 2, %v6876_v29 }
 0x229   :  { %v3971_v2 = vmax.f32 %v3947_v54, 0.0  ;;  %v3972_v57 = vmax.f32 %v3948_v11, 0.0  ;;  %v3906_v6 = vadd.f32 %v3757_v20, %v2511_v38  ;;  %v3951_v52 = vadd.f32 %v7540_v53, %v3905_v31 }
 0x22a   :  { %4417 = vmatprep.mubr.bf16.mxu0 %v3984_v55  ;;  %v3925_v42 = vsub.s32 3, %v6876_v29  ;;  %v7642_v49 = vrot.slane %v7528_v32, %v3921_v25 }
 0x22b   :  { %v5170_v12 = vcombine.low %v3971_v2, %v3972_v57  ;;  %v5171_v19 = vcombine.high %v3971_v2, %v3972_v57  ;;  %v3952_v13 = vadd.f32 %v7544_v61, %v3906_v6  ;;  %v3975_v63 = vmax.f32 %v3951_v52, 0.0 }
 0x22c   :  { %v7646_v59 = vrot.slane %v7528_v32, %v3925_v42 }
 0x22d   :  { %v3976_v28 = vmax.f32 %v3952_v13, 0.0  ;;  %v3987_v40 = vpack.c.bf16 %v3975_v63, %v3971_v2  ;;  %v5108_v2 = vrot.slane %v5098_v34, %v7569_v58  ;;  %v7676_v7 = vrot.slane %v5170_v12, %v7569_v58 }
 0x22e   :  { %4418 = vmatmul.mubr.bf16.gmra.mxu0 %v3983_v41  ;;  %v7679_v17 = vrot.slane %v5171_v19, %v7569_v58 }
 0x22f   :  { %v5206_v27 = vcombine.low %v3975_v63, %v3976_v28  ;;  %v3988_v3 = vpack.c.bf16 %v3976_v28, %v3972_v57  ;;  %v7664_v34 = vrot.slane %v5108_v2, %v7569_v58 }
 0x230   :  { %v3856_v1 = vpop.f32.mrf.mxu0 }
 0x231   :  { %4427 = vmatprep.mubr.bf16.mxu0 %v3988_v3 }
 0x232   :  { %v3858_v33 = vpop.f32.mrf.mxu0 }
 0x234   :  { %v3860_v18 = vpop.f32.mrf.mxu0 }
 0x236   :  { %4428 = vmatmul.mubr.bf16.gmra.mxu0 %v3987_v40  ;;  %v3862_v15 = vpop.f32.mrf.mxu0 }
 0x237   :  { %v3793_v61 = vpop.f32.mrf.mxu1 }
 0x238   :  { %v3866_v53 = vpop.f32.mrf.mxu0  ;;  %v3857_v21 = vadd.f32 %v3856_v1, %v3793_v61  ;;  %v7670_v1 = vrot.slane %v5135_v22, %v7569_v58 }
 0x239   :  { %v3795_v38 = vpop.f32.mrf.mxu1 }
 0x23a   :  { %v3868_v47 = vpop.f32.mrf.mxu0  ;;  %v3887_v60 = vadd.f32 %v3857_v21, %v7488_v10  ;;  %v3859_v56 = vadd.f32 %v3858_v33, %v3795_v38 }
 0x23b   :  { %v3797_v54 = vpop.f32.mrf.mxu1 }
 0x23c   :  { %v3870_v44 = vpop.f32.mrf.mxu0  ;;  %v3933_v20 = vadd.f32 %v7642_v49, %v3887_v60  ;;  %v3888_v41 = vadd.f32 %v3859_v56, %v7491_v35  ;;  %v3861_v31 = vadd.f32 %v3860_v18, %v3797_v54  ;;  %v7661_v35 = vrot.slane %v5099_v8, %v7569_v58 }
 0x23d   :  { %v3799_v57 = vpop.f32.mrf.mxu1  ;;  %v7686_v60 = vrot.slane %v5206_v27, %v7569_v58 }
 0x23e   :  { %v3872_v11 = vpop.f32.mrf.mxu0  ;;  %v3934_v6 = vadd.f32 %v7646_v59, %v3888_v41  ;;  %v3891_v55 = vadd.f32 %v3861_v31, %v7494_v48  ;;  %v3863_v52 = vadd.f32 %v3862_v15, %v3799_v57  ;;  %v7653_v10 = vmax.f32 %v3933_v20, 0.0 }
 0x23f   :  { %v3803_v13 = vpop.f32.mrf.mxu1  ;;  %v7667_v48 = vrot.slane %v5134_v23, %v7569_v58 }
 0x240   :  { %v3876_v32 = vpop.f32.mrf.mxu0  ;;  %v3958_v63 = vmax.f32 %v3934_v6, 0.0  ;;  %v3937_v28 = vadd.f32 %v7642_v49, %v3891_v55  ;;  %v3892_v40 = vadd.f32 %v3863_v52, %v7497_v4  ;;  %v3867_v3 = vadd.f32 %v3866_v53, %v3803_v13 }
 0x241   :  { %v3805_v33 = vpop.f32.mrf.mxu1 }
 0x242   :  { %v5028_v18 = vcombine.low %v7653_v10, %v3958_v63  ;;  %v5029_v4 = vcombine.high %v7653_v10, %v3958_v63  ;;  %v3961_v15 = vmax.f32 %v3937_v28, 0.0  ;;  %v3938_v25 = vadd.f32 %v7646_v59, %v3892_v40  ;;  %v3878_v22 = vpop.f32.mrf.mxu0 }
 0x243   :  { %v3895_v8 = vadd.f32 %v3867_v3, %v7501_v62  ;;  %v3869_v23 = vadd.f32 %v3868_v47, %v3805_v33  ;;  %v3807_v53 = vpop.f32.mrf.mxu1 }
 0x244   :  { %v5050_v42 = vrot.slane %v5028_v18, %v7569_v58  ;;  %v5057_v61 = vrot.slane %v5029_v4, %v7569_v58  ;;  %v3981_v21 = vpack.c.bf16 %v3961_v15, %v7653_v10  ;;  %v3962_v38 = vmax.f32 %v3938_v25, 0.0  ;;  %v3880_v55 = vpop.f32.mrf.mxu0 }
 0x245   :  { %v3941_v12 = vadd.f32 %v7642_v49, %v3895_v8  ;;  %v3896_v19 = vadd.f32 %v3869_v23, %v7504_v16  ;;  %v3871_v56 = vadd.f32 %v3870_v44, %v3807_v53  ;;  %v3809_v54 = vpop.f32.mrf.mxu1 }
 0x246   :  { %v7691_v62 = vrot.slane %v5050_v42, %v7569_v58  ;;  %v7694_v47 = vrot.slane %v5057_v61, %v7569_v58  ;;  %v5064_v20 = vcombine.low %v3961_v15, %v3962_v38  ;;  %v5065_v41 = vcombine.high %v3961_v15, %v3962_v38  ;;  %v3882_v23 = vpop.f32.mrf.mxu0 }
 0x247   :  { %v7696_v31 = vmax.f32 %v3941_v12, 0.0  ;;  %v3942_v2 = vadd.f32 %v7646_v59, %v3896_v19  ;;  %v3899_v27 = vadd.f32 %v3871_v56, %v7507_v45  ;;  %v3873_v57 = vadd.f32 %v3872_v11, %v3809_v54  ;;  %v3813_v6 = vpop.f32.mrf.mxu1 }
 0x248   :  { %v5258_v16 = vcombine.low %v7691_v62, %v7694_v47  ;;  %v5259_v44 = vcombine.high %v7691_v62, %v7694_v47  ;;  %v5086_v52 = vrot.slane %v5064_v20, %v7569_v58  ;;  %v5093_v10 = vrot.slane %v5065_v41, %v7569_v58 }
 0x249   :  { %v7706_v13 = vmax.f32 %v3942_v2, 0.0  ;;  %v3945_v28 = vadd.f32 %v7642_v49, %v3899_v27  ;;  %v3900_v40 = vadd.f32 %v3873_v57, %v7510_v46  ;;  %v3877_v45 = vadd.f32 %v3876_v32, %v3813_v6  ;;  %v3815_v11 = vpop.f32.mrf.mxu1 }
 0x24a   :  { %v7711_v3 = vrot.slane %v5086_v52, %v7569_v58  ;;  %v7714_v33 = vrot.slane %v5093_v10, %v7569_v58  ;;  %v3982_v18 = vpack.c.bf16 %v3962_v38, %v3958_v63  ;;  %v3879_v4 = vadd.f32 %v3878_v22, %v3815_v11 }
 0x24b   :  { %v5100_v15 = vcombine.low %v7696_v31, %v7706_v13  ;;  %v5101_v25 = vcombine.high %v7696_v31, %v7706_v13  ;;  %v7720_v8 = vmax.f32 %v3945_v28, 0.0  ;;  %v3946_v46 = vadd.f32 %v7646_v59, %v3900_v40  ;;  %v3817_v32 = vpop.f32.mrf.mxu1 }
 0x24c   :  { %v3903_v63 = vadd.f32 %v3877_v45, %v7513_v51  ;;  %4470 = vmatprep.mubr.bf16.mxu1 %v3982_v18  ;;  %v3904_v22 = vadd.f32 %v3879_v4, %v7516_v39  ;;  %v3881_v19 = vadd.f32 %v3880_v55, %v3817_v32  ;;  %v8081_v9 = vcombine.low %v7711_v3, %v7714_v33 }
 0x24d   :  { %v5122_v61 = vrot.slane %v5100_v15, %v7569_v58  ;;  %v5129_v38 = vrot.slane %v5101_v25, %v7569_v58  ;;  %v7731_v12 = vmax.f32 %v3946_v46, 0.0  ;;  %4471 = vmatmul.mubr.bf16.vlgmr.msra.gmra.mxu1 %v3981_v21  ;;  %v3819_v56 = vpop.f32.mrf.mxu1  ;;  %v3985_v51 = vpack.c.bf16 %v7720_v8, %v7696_v31  ;;  %v4710_v25 = vld [vmem:[#allocation11] sm:$0x3] }
 0x24e   :  { %v3949_v54 = vadd.f32 %v7642_v49, %v3903_v63  ;;  %v3950_v20 = vadd.f32 %v7646_v59, %v3904_v22  ;;  %v3883_v41 = vadd.f32 %v3882_v23, %v3819_v56  ;;  %v3907_v40 = vadd.f32 %v3881_v19, %v7519_v37 }
 0x24f   :  { %v5132_v2 = vcombine.low %v7661_v35, %v5129_v38  ;;  %v5133_v39 = vcombine.high %v7661_v35, %v5129_v38  ;;  %v6040_v27 = vcombine.low %v5129_v38, %v5129_v38  ;;  %v7740_v57 = vrot.slane %v5122_v61, %v7569_v58 }
 0x250   :  { %v5136_v21 = vcombine.low %v7720_v8, %v7731_v12  ;;  %v5137_v6 = vcombine.high %v7720_v8, %v7731_v12  ;;  %v3973_v55 = vmax.f32 %v3949_v54, 0.0  ;;  %v3974_v52 = vmax.f32 %v3950_v20, 0.0 }
 0x251   :  { %v7747_v10 = vrot.slane %v5132_v2, %v7569_v58  ;;  %v7750_v28 = vrot.slane %v6040_v27, %v7569_v58  ;;  %v6041_v35 = vcombine.low %v5133_v39, %v7667_v48  ;;  %v3953_v54 = vadd.f32 %v7642_v49, %v3907_v40 }
 0x252   :  { %v5158_v45 = vrot.slane %v5136_v21, %v7569_v58  ;;  %v5165_v11 = vrot.slane %v5137_v6, %v7569_v58  ;;  %v5172_v18 = vcombine.low %v3973_v55, %v3974_v52  ;;  %v5173_v4 = vcombine.high %v3973_v55, %v3974_v52 }
 0x253   :  { %v7765_v37 = vrot.slane %v6041_v35, %v7569_v58  ;;  %v3908_v27 = vadd.f32 %v3883_v41, %v7521_v24  ;;  %v8083_v62 = vcombine.low %v7664_v34, %v7747_v10 }
 0x254   :  { %v5166_v23 = vcombine.low %v7667_v48, %v5158_v45  ;;  %v5167_v63 = vcombine.high %v7667_v48, %v5158_v45  ;;  %v5168_v22 = vcombine.low %v7670_v1, %v5165_v11  ;;  %v5169_v61 = vcombine.high %v7670_v1, %v5165_v11 }
 0x255   :  { %v5194_v19 = vrot.slane %v5172_v18, %v7569_v58  ;;  %v5201_v56 = vrot.slane %v5173_v4, %v7569_v58 }
 0x256   :  { %v6042_v20 = vcombine.high %v5129_v38, %v5166_v23  ;;  %v6043_v2 = vcombine.low %v5167_v63, %v7670_v1  ;;  %v6044_v39 = vcombine.high %v5158_v45, %v5168_v22  ;;  %v6045_v21 = vcombine.low %v5169_v61, %v7676_v7 }
 0x257   :  { %v5202_v48 = vcombine.low %v7676_v7, %v5194_v19  ;;  %v5203_v6 = vcombine.high %v7676_v7, %v5194_v19  ;;  %v5204_v35 = vcombine.low %v7679_v17, %v5201_v56  ;;  %v5205_v1 = vcombine.high %v7679_v17, %v5201_v56 }
 0x258   :  { %v7781_v18 = vrot.slane %v6042_v20, %v7569_v58  ;;  %v7784_v4 = vrot.slane %v6043_v2, %v7569_v58  ;;  %v7787_v49 = vrot.slane %v6044_v39, %v7569_v58  ;;  %v7791_v24 = vrot.slane %v6045_v21, %v7569_v58 }
 0x259   :  { %v6046_v38 = vcombine.high %v5165_v11, %v5202_v48  ;;  %v6047_v41 = vcombine.low %v5203_v6, %v7679_v17  ;;  %v6048_v7 = vcombine.high %v5194_v19, %v5204_v35  ;;  %v6049_v61 = vcombine.low %v5205_v1, %v7686_v60 }
 0x25a   :  { %v3977_v19 = vmax.f32 %v3953_v54, 0.0  ;;  %v3954_v20 = vadd.f32 %v7646_v59, %v3908_v27  ;;  %v3986_v2 = vpack.c.bf16 %v7731_v12, %v7706_v13 }
 0x25b   :  { %v7803_v22 = vrot.slane %v6046_v38, %v7569_v58  ;;  %v7806_v11 = vrot.slane %v6047_v41, %v7569_v58  ;;  %v7809_v17 = vrot.slane %v6048_v7, %v7569_v58  ;;  %v7830_v7 = vrot.slane %v6049_v61, %v7569_v58 }
 0x25c   :  { %v3978_v35 = vmax.f32 %v3954_v20, 0.0  ;;  %4480 = vmatprep.mubr.bf16.mxu1 %v3986_v2  ;;  %v3989_v54 = vpack.c.bf16 %v3977_v19, %v3973_v55 }
 0x25d   :  { %4481 = vmatmul.mubr.bf16.gmra.mxu1 %v3985_v51 }
 0x25e   :  { %v5207_v59 = vcombine.low %v3977_v19, %v3978_v35  ;;  %v3990_v13 = vpack.c.bf16 %v3978_v35, %v3974_v52 }
 0x260   :  { %v5221_v12 = vrot.slane %v5207_v59, %v7569_v58  ;;  %4490 = vmatprep.mubr.bf16.mxu1 %v3990_v13 }
 0x262   :  { %v5222_v27 = vcombine.low %v7686_v60, %v5221_v12  ;;  %v5223_v1 = vcombine.high %v7686_v60, %v5221_v12  ;;  %v6051_v38 = vcombine.high %v5221_v12, %v5221_v12 }
 0x264   :  { %v6050_v41 = vcombine.high %v5201_v56, %v5222_v27  ;;  %v7833_v55 = vrot.slane %v5223_v1, %v7569_v58  ;;  %v7839_v8 = vrot.slane %v6051_v38, %v7569_v58  ;;  %v8078_v56 = vld [vmem:[#allocation25_spill] sm:$0xff] }
 0x265   :  { %4491 = vmatmul.mubr.bf16.gmra.mxu1 %v3989_v54 }
 0x266   :  { %v7836_v31 = vrot.slane %v6050_v41, %v7569_v58  ;;  %v4634_v41 = vld [vmem:[#allocation10] sm:$0x3] }
 0x267   :  { %v4639_v52 = vrot.slane %v4634_v41, %v7526_v50  ;;  %v4643_v60 = vrot.slane %v4634_v41, %v8078_v56 }
 0x269   :  { %v4644_v51 = vcombine.low %v4639_v52, %v4643_v60  ;;  %v4645_v6 = vcombine.high %v4639_v52, %v4643_v60 }
 0x26b   :  { %v7860_v39 = vrot.slane %v4644_v51, %v7569_v58  ;;  %v7863_v45 = vrot.slane %v4645_v6, %v7569_v58 }
 0x26d   :  { %v7867_v32 = vcombine.high %v7860_v39, %v7860_v39  ;;  %v7873_v51 = vcombine.high %v7863_v45, %v7863_v45 }
 0x2e6   :  { %v4409_v61 = vpop.f32.mrf.mxu0 }
 0x2e8   :  { %v4411_v19 = vpop.f32.mrf.mxu0 }
 0x2ea   :  { %v4413_v20 = vpop.f32.mrf.mxu0 }
 0x2ec   :  { %v4415_v2 = vpop.f32.mrf.mxu0 }
 0x2ee   :  { %v4419_v35 = vpop.f32.mrf.mxu0 }
 0x2f0   :  { %v4421_v54 = vpop.f32.mrf.mxu0 }
 0x2f2   :  { %v7849_v59 = vpop.f32.mrf.mxu0 }
 0x2f4   :  { %v7851_v13 = vpop.f32.mrf.mxu0 }
 0x2f6   :  { %v7853_v12 = vpop.f32.mrf.mxu0 }
 0x2f8   :  { %v7855_v27 = vpop.f32.mrf.mxu0 }
 0x2fa   :  { %v4433_v1 = vpop.f32.mrf.mxu0 }
 0x2fc   :  { %v4435_v38 = vpop.f32.mrf.mxu0 }
 0x30d   :  { %v4472_v48 = vpop.f32.mrf.mxu1 }
 0x30e   :  { %v4473_v63 = vadd.f32 %v4472_v48, %v4409_v61 }
 0x30f   :  { %v4474_v21 = vpop.f32.mrf.mxu1 }
 0x310   :  { %v4475_v23 = vadd.f32 %v4474_v21, %v4411_v19 }
 0x311   :  { %v4476_v40 = vpop.f32.mrf.mxu1 }
 0x312   :  { %v4513_v1 = vcombine.low %v4473_v63, %v4475_v23  ;;  %v4514_v38 = vcombine.high %v4473_v63, %v4475_v23  ;;  %v4477_v48 = vadd.f32 %v4476_v40, %v4413_v20  ;;  %v4715_v40 = vrot.slane %v4710_v25, %v7526_v50 }
 0x313   :  { %v4478_v41 = vpop.f32.mrf.mxu1  ;;  %v4719_v20 = vrot.slane %v4710_v25, %v8078_v56 }
 0x314   :  { %v4521_v60 = vrot.slane %v4513_v1, %v7569_v58  ;;  %v4528_v52 = vrot.slane %v4514_v38, %v7569_v58  ;;  %v4479_v21 = vadd.f32 %v4478_v41, %v4415_v2 }
 0x316   :  { %v4529_v6 = vcombine.high %v4521_v60, %v4521_v60  ;;  %v4530_v61 = vcombine.high %v4528_v52, %v4528_v52  ;;  %v4666_v19 = vadd.f32 %v7860_v39, %v4521_v60  ;;  %v4668_v23 = vadd.f32 %v7863_v45, %v4528_v52 }
 0x317   :  { %v4531_v63 = vcombine.low %v4477_v48, %v4479_v21  ;;  %v4532_v46 = vcombine.high %v4477_v48, %v4479_v21 }
 0x318   :  { %v4667_v15 = vadd.f32 %v7867_v32, %v4529_v6  ;;  %v4669_v1 = vadd.f32 %v7873_v51, %v4530_v61  ;;  %6596 = vtanh.f32 %v4666_v19  ;;  %v4720_v61 = vcombine.low %v4715_v40, %v4719_v20 }
 0x319   :  { %6598 = vtanh.f32 %v4668_v23  ;;  %v4539_v38 = vrot.slane %v4531_v63, %v7569_v58  ;;  %v4546_v2 = vrot.slane %v4532_v46, %v7569_v58  ;;  %v4721_v46 = vcombine.high %v4715_v40, %v4719_v20 }
 0x31a   :  { %6600 = vtanh.f32 %v4667_v15  ;;  %v7888_v19 = vrot.slane %v4720_v61, %v7569_v58 }
 0x31b   :  { %6602 = vtanh.f32 %v4669_v1  ;;  %v4547_v41 = vcombine.high %v4539_v38, %v4539_v38  ;;  %v4548_v60 = vcombine.high %v4546_v2, %v4546_v2  ;;  %v4670_v52 = vadd.f32 %v7860_v39, %v4539_v38 }
 0x31c   :  { %v4672_v21 = vadd.f32 %v7863_v45, %v4546_v2  ;;  %v7891_v63 = vrot.slane %v4721_v46, %v7569_v58 }
 0x31d   :  { %v4671_v48 = vadd.f32 %v7867_v32, %v4547_v41  ;;  %v4673_v6 = vadd.f32 %v7873_v51, %v4548_v60  ;;  %6604 = vtanh.f32 %v4670_v52  ;;  %v4482_v15 = vpop.f32.mrf.mxu1 }
 0x31e   :  { %6606 = vtanh.f32 %v4672_v21  ;;  %v4483_v25 = vadd.f32 %v4482_v15, %v4419_v35  ;;  %v7898_v35 = vcombine.high %v7888_v19, %v7888_v19  ;;  %v7902_v21 = vcombine.high %v7891_v63, %v7891_v63 }
 0x31f   :  { %6608 = vtanh.f32 %v4671_v48  ;;  %v4484_v50 = vpop.f32.mrf.mxu1 }
 0x320   :  { %6610 = vtanh.f32 %v4673_v6  ;;  %v4485_v56 = vadd.f32 %v4484_v50, %v4421_v54 }
 0x321   :  { %v4486_v23 = vpop.f32.mrf.mxu1 }
 0x322   :  { %v4550_v1 = vcombine.high %v4483_v25, %v4485_v56  ;;  %v4487_v52 = vadd.f32 %v4486_v23, %v7849_v59 }
 0x323   :  { %v4488_v2 = vpop.f32.mrf.mxu1 }
 0x324   :  { %v4564_v60 = vrot.slane %v4550_v1, %v7569_v58  ;;  %v4489_v40 = vadd.f32 %v4488_v2, %v7851_v13 }
 0x325   :  { %v6597_v38 = vpop.eup %6596  ;;  %v4492_v20 = vpop.f32.mrf.mxu1 }
 0x326   :  { %v6599_v41 = vpop.eup %6598  ;;  %v4566_v6 = vcombine.high %v4564_v60, %v4564_v60  ;;  %v4567_v61 = vcombine.low %v4487_v52, %v4489_v40  ;;  %v4568_v15 = vcombine.high %v4487_v52, %v4489_v40  ;;  %v4742_v50 = vmul.f32 %v6597_v38, %v7888_v19 }
 0x327   :  { %v6601_v54 = vpop.eup %6600  ;;  %v4494_v46 = vpop.f32.mrf.mxu1  ;;  %v4493_v42 = vadd.f32 %v4492_v20, %v7853_v12  ;;  %v4744_v52 = vmul.f32 %v6599_v41, %v7891_v63 }
 0x328   :  { %v6603_v48 = vpop.eup %6602  ;;  %v4575_v13 = vrot.slane %v4567_v61, %v7569_v58  ;;  %v4582_v25 = vrot.slane %v4568_v15, %v7569_v58  ;;  %v4495_v56 = vadd.f32 %v4494_v46, %v7855_v27  ;;  %v4743_v23 = vmul.f32 %v6601_v54, %v7898_v35 }
 0x329   :  { %v4677_v2 = vadd.f32 %v7860_v39, %v4566_v6  ;;  %v4496_v60 = vpop.f32.mrf.mxu1  ;;  %v4745_v40 = vmul.f32 %v6603_v48, %v7902_v21 }
 0x32a   :  { %v6605_v59 = vpop.eup %6604  ;;  %v4583_v53 = vcombine.high %v4575_v13, %v4575_v13  ;;  %v4584_v30 = vcombine.high %v4582_v25, %v4582_v25  ;;  %v4678_v61 = vadd.f32 %v7867_v32, %v4575_v13  ;;  %v4680_v54 = vadd.f32 %v7873_v51, %v4582_v25 }
 0x32b   :  { %v6607_v1 = vpop.eup %6606  ;;  %v4746_v15 = vmul.f32 %v6605_v59, %v7888_v19  ;;  %v4585_v46 = vcombine.low %v4493_v42, %v4495_v56  ;;  %v4586_v0 = vcombine.high %v4493_v42, %v4495_v56  ;;  %v4498_v6 = vpop.f32.mrf.mxu1  ;;  %v4786_v48 = vcombine.low %v4742_v50, %v4743_v23 }
 0x32c   :  { %v6609_v38 = vpop.eup %6608  ;;  %v4679_v20 = vadd.f32 %v7863_v45, %v4583_v53  ;;  %v4681_v41 = vadd.f32 %v7860_v39, %v4584_v30  ;;  %6612 = vtanh.f32 %v4678_v61  ;;  %v4748_v25 = vmul.f32 %v6607_v1, %v7891_v63 }
 0x32d   :  { %v6611_v27 = vpop.eup %6610  ;;  %v4747_v12 = vmul.f32 %v6609_v38, %v7898_v35  ;;  %6614 = vtanh.f32 %v4680_v54  ;;  %v4593_v60 = vrot.slane %v4585_v46, %v7569_v58  ;;  %v4600_v13 = vrot.slane %v4586_v0, %v7569_v58 }
 0x32e   :  { %v4749_v59 = vmul.f32 %v6611_v27, %v7902_v21  ;;  %6616 = vtanh.f32 %v4679_v20  ;;  %v4787_v56 = vcombine.low %v4744_v52, %v4745_v40  ;;  %v4794_v1 = vrot.slane %v4786_v48, %v7569_v58 }
 0x32f   :  { %v4804_v42 = vcombine.low %v4746_v15, %v4747_v12  ;;  %6618 = vtanh.f32 %v4681_v41  ;;  %v4601_v38 = vcombine.high %v4593_v60, %v4593_v60  ;;  %v4682_v53 = vadd.f32 %v7867_v32, %v4593_v60 }
 0x330   :  { %v4684_v30 = vadd.f32 %v7873_v51, %v4600_v13  ;;  %6620 = vtanh.f32 %v4677_v2  ;;  %v4805_v39 = vcombine.low %v4748_v25, %v4749_v59  ;;  %v4801_v52 = vrot.slane %v4787_v56, %v7569_v58 }
 0x331   :  { %v4812_v50 = vrot.slane %v4804_v42, %v7569_v58  ;;  %v4683_v23 = vadd.f32 %v7863_v45, %v4601_v38  ;;  %6622 = vtanh.f32 %v4682_v53 }
 0x332   :  { %6624 = vtanh.f32 %v4684_v30  ;;  %v4819_v0 = vrot.slane %v4805_v39, %v7569_v58  ;;  %v4802_v15 = vcombine.low %v4794_v1, %v4801_v52  ;;  %v4803_v51 = vcombine.high %v4794_v1, %v4801_v52 }
 0x333   :  { %6626 = vtanh.f32 %v4683_v23 }
 0x334   :  { %v4820_v40 = vcombine.low %v4812_v50, %v4819_v0  ;;  %v4821_v61 = vcombine.high %v4812_v50, %v4819_v0  ;;  %v4904_v54 = vadd.f32 %v4803_v51, %v4802_v15 }
 0x336   :  { %v4907_v32 = vadd.f32 %v4821_v61, %v4820_v40 }
 0x338   :  { %4908 = vadd.xlane.f32.xlu1 %v4907_v32 }
 0x339   :  { %v6613_v2 = vpop.eup %6612 }
 0x33a   :  { %v6615_v27 = vpop.eup %6614  ;;  %v4754_v13 = vmul.f32 %v6613_v2, %v7898_v35 }
 0x33b   :  { %v6617_v46 = vpop.eup %6616  ;;  %v4756_v59 = vmul.f32 %v6615_v27, %v7902_v21 }
 0x33c   :  { %v6619_v45 = vpop.eup %6618  ;;  %4905 = vadd.xlane.f32.xlu1 %v4904_v54  ;;  %v4755_v12 = vmul.f32 %v6617_v46, %v7891_v63 }
 0x33d   :  { %v6621_v6 = vpop.eup %6620  ;;  %v4757_v48 = vmul.f32 %v6619_v45, %v7888_v19 }
 0x33e   :  { %v6623_v20 = vpop.eup %6622  ;;  %v4753_v42 = vmul.f32 %v6621_v6, %v7888_v19  ;;  %v4840_v30 = vcombine.low %v4755_v12, %v4756_v59 }
 0x33f   :  { %v6625_v41 = vpop.eup %6624  ;;  %v4758_v60 = vmul.f32 %v6623_v20, %v7898_v35 }
 0x340   :  { %v6627_v25 = vpop.eup %6626  ;;  %v4760_v38 = vmul.f32 %v6625_v41, %v7902_v21  ;;  %v4839_v50 = vcombine.low %v4753_v42, %v4754_v13  ;;  %v4854_v1 = vrot.slane %v4840_v30, %v7569_v58  ;;  %v4929_v21 = vadd.s32 8, %v6876_v29 }
 0x341   :  { %v4759_v56 = vmul.f32 %v6627_v25, %v7891_v63  ;;  %v4857_v53 = vcombine.low %v4757_v48, %v4758_v60 }
 0x342   :  { %v4847_v40 = vrot.slane %v4839_v50, %v7569_v58  ;;  %vm4932_vm15 = vcmp.lt.s32.totalorder %v4929_v21, 14 }
 0x343   :  { %v4858_v39 = vcombine.low %v4759_v56, %v4760_v38  ;;  %v4865_v23 = vrot.slane %v4857_v53, %v7569_v58 }
 0x344   :  { %v4855_v19 = vcombine.low %v4847_v40, %v4854_v1  ;;  %v4856_v32 = vcombine.high %v4847_v40, %v4854_v1 }
 0x345   :  { %v4872_v0 = vrot.slane %v4858_v39, %v7569_v58 }
 0x346   :  { %v4916_v63 = vadd.f32 %v4856_v32, %v4855_v19 }
 0x347   :  { %v4873_v35 = vcombine.low %v4865_v23, %v4872_v0  ;;  %v4874_v52 = vcombine.high %v4865_v23, %v4872_v0 }
 0x349   :  { %v4919_v61 = vadd.f32 %v4874_v52, %v4873_v35 }
 0x34b   :  { %4920 = vadd.xlane.f32.xlu0 %v4919_v61 }
 0x34f   :  { %4917 = vadd.xlane.f32.xlu0 %v4916_v63 }
 0x3c1   :  { %v4909_v15 = vpop.xlane.xlu1 %4908 }
 0x3c2   :  { %v4935_v51 = vsel %vm4932_vm15, %v4909_v15, -inf }
 0x3c5   :  { %v4906_v2 = vpop.xlane.xlu1 %4905 }
 0x3c6   :  { %v4942_v27 = vmax.f32 %v4906_v2, %v4935_v51 }
 0x3c8   :  { %v4943_v54 = vrot.slane %v4942_v27, 4 }
 0x3ca   :  { %v4944_v46 = vmax.f32 %v4942_v27, %v4943_v54 }
 0x3cc   :  { %v4945_v45 = vrot.slane %v4944_v46, 2 }
 0x3ce   :  { %v4946_v6 = vmax.f32 %v4944_v46, %v4945_v45 }
 0x3d0   :  { %v4947_v12 = vrot.slane %v4946_v6, 1 }
 0x3d2   :  { %v4948_v20 = vmax.f32 %v4946_v6, %v4947_v12 }
 0x3d4   :  { %v4958_v41 = vsub.f32 %v4906_v2, %v4948_v20  ;;  %v4959_v48 = vsub.f32 %v4935_v51, %v4948_v20  ;;  %v4960_v60 = vsub.f32 -inf, %v4948_v20  ;;  %v4921_v13 = vpop.xlane.xlu0 %4920 }
 0x3d5   :  { %v4938_v29 = vsel %vm4932_vm15, %v4921_v13, -inf }
 0x3d6   :  { %v4964_v59 = vmul.f32 1.442695, %v4958_v41  ;;  %v4966_v25 = vmul.f32 1.442695, %v4959_v48  ;;  %v4968_v42 = vmul.f32 1.442695, %v4960_v60 }
 0x3d8   :  { %6628 = vpow2.f32 %v4964_v59  ;;  %v4918_v56 = vpop.xlane.xlu0 %4917 }
 0x3d9   :  { %6630 = vpow2.f32 %v4966_v25  ;;  %v4951_v38 = vmax.f32 %v4918_v56, %v4938_v29 }
 0x3da   :  { %6632 = vpow2.f32 %v4968_v42 }
 0x3db   :  { %v4952_v53 = vrot.slane %v4951_v38, 4 }
 0x3dd   :  { %v4953_v30 = vmax.f32 %v4951_v38, %v4952_v53 }
 0x3df   :  { %v4954_v39 = vrot.slane %v4953_v30, 2 }
 0x3e1   :  { %v4955_v50 = vmax.f32 %v4953_v30, %v4954_v39 }
 0x3e3   :  { %v4956_v23 = vrot.slane %v4955_v50, 1 }
 0x3e5   :  { %v6629_v0 = vpop.eup %6628  ;;  %v4957_v1 = vmax.f32 %v4955_v50, %v4956_v23 }
 0x3e6   :  { %v6631_v35 = vpop.eup %6630 }
 0x3e7   :  { %v6633_v52 = vpop.eup %6632  ;;  %v4976_v40 = vadd.f32 %v6631_v35, %v6629_v0  ;;  %v4961_v61 = vsub.f32 %v4918_v56, %v4957_v1  ;;  %v4962_v19 = vsub.f32 %v4938_v29, %v4957_v1  ;;  %v4963_v32 = vsub.f32 -inf, %v4957_v1 }
 0x3e8   :  { %v4977_v63 = vsel %vm4910_vm0, %v6633_v52, 0.0 }
 0x3e9   :  { %v4978_v21 = vadd.f32 %v4977_v63, %v4976_v40  ;;  %v4970_v15 = vmul.f32 1.442695, %v4961_v61  ;;  %v4972_v51 = vmul.f32 1.442695, %v4962_v19  ;;  %v4974_v2 = vmul.f32 1.442695, %v4963_v32 }
 0x3eb   :  { %v4979_v27 = vrot.slane %v4978_v21, 4  ;;  %6634 = vpow2.f32 %v4970_v15 }
 0x3ec   :  { %6636 = vpow2.f32 %v4972_v51 }
 0x3ed   :  { %v4980_v54 = vadd.f32 %v4979_v27, %v4978_v21  ;;  %6638 = vpow2.f32 %v4974_v2 }
 0x3ef   :  { %v4981_v46 = vrot.slane %v4980_v54, 2 }
 0x3f1   :  { %v4982_v45 = vadd.f32 %v4981_v46, %v4980_v54 }
 0x3f3   :  { %v4983_v6 = vrot.slane %v4982_v45, 1 }
 0x3f5   :  { %v4984_v12 = vadd.f32 %v4983_v6, %v4982_v45 }
 0x3f7   :  { %6640 = vrcp.f32 %v4984_v12 }
 0x3f8   :  { %v7946_v20 = vpop.eup %6634 }
 0x3f9   :  { %v7948_v41 = vpop.eup %6636 }
 0x3fa   :  { %v7950_v48 = vpop.eup %6638  ;;  %v4985_v60 = vadd.f32 %v7948_v41, %v7946_v20 }
 0x3fb   :  { %v4986_v13 = vsel %vm4910_vm0, %v7950_v48, 0.0 }
 0x3fc   :  { %v4987_v59 = vadd.f32 %v4986_v13, %v4985_v60 }
 0x3fe   :  { %v4988_v25 = vrot.slane %v4987_v59, 4 }
 0x400   :  { %v4989_v42 = vadd.f32 %v4988_v25, %v4987_v59 }
 0x402   :  { %v4990_v29 = vrot.slane %v4989_v42, 2 }
 0x404   :  { %v6641_v56 = vpop.eup %6640  ;;  %v4991_v38 = vadd.f32 %v4990_v29, %v4989_v42 }
 0x405   :  { %v4995_v53 = vmul.f32 %v6641_v56, %v6629_v0  ;;  %v4996_v30 = vmul.f32 %v6641_v56, %v6631_v35  ;;  %v4997_v39 = vmul.f32 %v6641_v56, %v6633_v52  ;;  %v8079_v0 = vcombine.low %v7607_v36, %v7610_v43 }
 0x406   :  { %v4992_v50 = vrot.slane %v4991_v38, 1  ;;  %v8080_v52 = vcombine.high %v7607_v36, %v7610_v43  ;;  %v8085_v36 = vcombine.low %v7740_v57, %v7750_v28 }
 0x407   :  { %v5462_v23 = vmul.f32 %v5256_v26, %v4995_v53  ;;  %v5463_v1 = vmul.f32 %v5257_v14, %v4995_v53  ;;  %v5464_v40 = vmul.f32 %v5258_v16, %v4995_v53  ;;  %v5465_v61 = vmul.f32 %v5259_v44, %v4995_v53 }
 0x408   :  { %v5466_v35 = vmul.f32 %v8079_v0, %v4996_v30  ;;  %v5467_v26 = vmul.f32 %v8080_v52, %v4996_v30  ;;  %v5468_v5 = vmul.f32 %v8081_v9, %v4996_v30  ;;  %v8082_v14 = vcombine.high %v7711_v3, %v7714_v33 }
 0x409   :  { %v4993_v19 = vadd.f32 %v4992_v50, %v4991_v38  ;;  %v5470_v47 = vmul.f32 %v8083_v62, %v4997_v39  ;;  %v8084_v44 = vcombine.high %v7664_v34, %v7747_v10  ;;  %v5472_v43 = vmul.f32 %v8085_v36, %v4997_v39 }
 0x40a   :  { %v5469_v16 = vmul.f32 %v8082_v14, %v4996_v30  ;;  %v5486_v63 = vadd.f32 %v5466_v35, %v5462_v23  ;;  %v5495_v21 = vadd.f32 %v5467_v26, %v5463_v1  ;;  %v5504_v15 = vadd.f32 %v5468_v5, %v5464_v40 }
 0x40b   :  { %v5471_v32 = vmul.f32 %v8084_v44, %v4997_v39  ;;  %6642 = vrcp.f32 %v4993_v19  ;;  %v8086_v3 = vcombine.high %v7740_v57, %v7750_v28  ;;  %v5487_v2 = vsel %vm4910_vm0, %v5470_v47, 0.0 }
 0x40c   :  { %v5513_v51 = vadd.f32 %v5469_v16, %v5465_v61  ;;  %v5488_v54 = vadd.f32 %v5487_v2, %v5486_v63  ;;  %v5505_v10 = vsel %vm4910_vm0, %v5472_v43, 0.0  ;;  %v8087_v47 = vcombine.low %v7765_v37, %v7784_v4 }
 0x40d   :  { %v5473_v33 = vmul.f32 %v8086_v3, %v4997_v39  ;;  %v5496_v27 = vsel %vm4910_vm0, %v5471_v32, 0.0  ;;  %v5506_v46 = vadd.f32 %v5505_v10, %v5504_v15  ;;  %v8088_v32 = vcombine.high %v7765_v37, %v7784_v4 }
 0x40e   :  { %v5497_v34 = vadd.f32 %v5496_v27, %v5495_v21  ;;  %v5489_v6 = vrot.slane %v5488_v54, 4  ;;  %v8089_v43 = vcombine.low %v7781_v18, %v7787_v49  ;;  %v8092_v15 = vcombine.high %v7791_v24, %v7806_v11 }
 0x40f   :  { %v5514_v45 = vsel %vm4910_vm0, %v5473_v33, 0.0  ;;  %v5507_v13 = vrot.slane %v5506_v46, 4  ;;  %v8093_v37 = vcombine.low %v7803_v22, %v7809_v17  ;;  %v8094_v3 = vcombine.high %v7803_v22, %v7809_v17 }
 0x410   :  { %v5498_v12 = vrot.slane %v5497_v34, 4  ;;  %v5515_v60 = vadd.f32 %v5514_v45, %v5513_v51  ;;  %v5490_v59 = vadd.f32 %v5489_v6, %v5488_v54  ;;  %v8096_v2 = vcombine.high %v7830_v7, %v7833_v55 }
 0x411   :  { %v5508_v57 = vadd.f32 %v5507_v13, %v5506_v46  ;;  %v8098_v54 = vcombine.high %v7836_v31, %v7839_v8 }
 0x412   :  { %v5499_v25 = vadd.f32 %v5498_v12, %v5497_v34  ;;  %v5516_v42 = vrot.slane %v5515_v60, 4  ;;  %v5491_v28 = vrot.slane %v5490_v59, 2 }
 0x413   :  { %v5509_v38 = vrot.slane %v5508_v57, 2 }
 0x414   :  { %v5500_v29 = vrot.slane %v5499_v25, 2  ;;  %v5517_v56 = vadd.f32 %v5516_v42, %v5515_v60  ;;  %v5492_v53 = vadd.f32 %v5491_v28, %v5490_v59 }
 0x415   :  { %v5510_v50 = vadd.f32 %v5509_v38, %v5508_v57 }
 0x416   :  { %v5501_v30 = vadd.f32 %v5500_v29, %v5499_v25  ;;  %v5518_v39 = vrot.slane %v5517_v56, 2  ;;  %v5493_v23 = vrot.slane %v5492_v53, 1 }
 0x417   :  { %v5511_v61 = vrot.slane %v5510_v50, 1 }
 0x418   :  { %v5502_v1 = vrot.slane %v5501_v30, 1  ;;  %v5519_v40 = vadd.f32 %v5518_v39, %v5517_v56  ;;  %v6643_v0 = vpop.eup %6642  ;;  %v5494_v35 = vadd.f32 %v5493_v23, %v5492_v53 }
 0x419   :  { %v4999_v9 = vmul.f32 %v6643_v0, %v7946_v20  ;;  %v5000_v5 = vmul.f32 %v6643_v0, %v7948_v41  ;;  %v5001_v14 = vmul.f32 %v6643_v0, %v7950_v48  ;;  %v5512_v16 = vadd.f32 %v5511_v61, %v5510_v50 }
 0x41a   :  { %v5503_v52 = vadd.f32 %v5502_v1, %v5501_v30  ;;  %v5520_v26 = vrot.slane %v5519_v40, 1  ;;  %v8090_v20 = vcombine.high %v7781_v18, %v7787_v49  ;;  %v8091_v48 = vcombine.low %v7791_v24, %v7806_v11 }
 0x41b   :  { %v5474_v44 = vmul.f32 %v8087_v47, %v4999_v9  ;;  %v5475_v36 = vmul.f32 %v8088_v32, %v4999_v9  ;;  %v5476_v63 = vmul.f32 %v8089_v43, %v4999_v9  ;;  %v5479_v51 = vmul.f32 %v8092_v15, %v5000_v5 }
 0x41c   :  { %v5521_v19 = vadd.f32 %v5520_v26, %v5519_v40  ;;  %v5566_v62 = vcombine.low %v5494_v35, %v5503_v52  ;;  %v5477_v41 = vmul.f32 %v8090_v20, %v4999_v9  ;;  %v5478_v21 = vmul.f32 %v8091_v48, %v5000_v5 }
 0x41d   :  { %v5480_v4 = vmul.f32 %v8093_v37, %v5000_v5  ;;  %v5481_v33 = vmul.f32 %v8094_v3, %v5000_v5  ;;  %v8095_v18 = vcombine.low %v7830_v7, %v7833_v55  ;;  %v5483_v27 = vmul.f32 %v8096_v2, %v5001_v14 }
 0x41e   :  { %v8097_v24 = vcombine.low %v7836_v31, %v7839_v8  ;;  %v5485_v34 = vmul.f32 %v8098_v54, %v5001_v14  ;;  %v5522_v10 = vadd.f32 %v5478_v21, %v5474_v44  ;;  %v5531_v46 = vadd.f32 %v5479_v51, %v5475_v36 }
 0x41f   :  { %v5482_v49 = vmul.f32 %v8095_v18, %v5001_v14  ;;  %v5540_v22 = vadd.f32 %v5480_v4, %v5476_v63  ;;  %v5549_v17 = vadd.f32 %v5481_v33, %v5477_v41  ;;  %v5532_v6 = vsel %vm4910_vm0, %v5483_v27, 0.0 }
 0x420   :  { %v5484_v11 = vmul.f32 %v8097_v24, %v5001_v14  ;;  %v5550_v7 = vsel %vm4910_vm0, %v5485_v34, 0.0  ;;  %v5533_v60 = vadd.f32 %v5532_v6, %v5531_v46  ;;  %v5567_v25 = vcombine.low %v5512_v16, %v5521_v19 }
 0x421   :  { %v5523_v45 = vsel %vm4910_vm0, %v5482_v49, 0.0  ;;  %v5551_v59 = vadd.f32 %v5550_v7, %v5549_v17  ;;  %v5574_v31 = vrot.slane %v5566_v62, %v7569_v58 }
 0x422   :  { %v5541_v12 = vsel %vm4910_vm0, %v5484_v11, 0.0  ;;  %v5524_v55 = vadd.f32 %v5523_v45, %v5522_v10  ;;  %v5534_v42 = vrot.slane %v5533_v60, 4  ;;  %v5581_v29 = vrot.slane %v5567_v25, %v7569_v58 }
 0x423   :  { %v5542_v13 = vadd.f32 %v5541_v12, %v5540_v22  ;;  %v5552_v28 = vrot.slane %v5551_v59, 4 }
 0x424   :  { %v5525_v8 = vrot.slane %v5524_v55, 4  ;;  %v5535_v38 = vadd.f32 %v5534_v42, %v5533_v60  ;;  %v5582_v39 = vcombine.low %v5574_v31, %v5581_v29 }
 0x425   :  { %v5543_v57 = vrot.slane %v5542_v13, 4  ;;  %v5553_v30 = vadd.f32 %v5552_v28, %v5551_v59 }
 0x426   :  { %v5526_v56 = vadd.f32 %v5525_v8, %v5524_v55  ;;  %v5536_v23 = vrot.slane %v5535_v38, 2 }
 0x427   :  { %v5544_v53 = vadd.f32 %v5543_v57, %v5542_v13  ;;  %v5554_v40 = vrot.slane %v5553_v30, 2 }
 0x428   :  { %v5527_v50 = vrot.slane %v5526_v56, 2  ;;  %v5537_v0 = vadd.f32 %v5536_v23, %v5535_v38 }
 0x429   :  { %v5545_v1 = vrot.slane %v5544_v53, 2  ;;  %v5555_v52 = vadd.f32 %v5554_v40, %v5553_v30 }
 0x42a   :  { %v5528_v61 = vadd.f32 %v5527_v50, %v5526_v56  ;;  %v5538_v9 = vrot.slane %v5537_v0, 1 }
 0x42b   :  { %v5546_v35 = vadd.f32 %v5545_v1, %v5544_v53  ;;  %v5556_v14 = vrot.slane %v5555_v52, 1 }
 0x42c   :  { %v5529_v26 = vrot.slane %v5528_v61, 1  ;;  %v5539_v19 = vadd.f32 %v5538_v9, %v5537_v0 }
 0x42d   :  { %v5547_v5 = vrot.slane %v5546_v35, 1  ;;  %v5557_v47 = vadd.f32 %v5556_v14, %v5555_v52 }
 0x42e   :  { %v5530_v16 = vadd.f32 %v5529_v26, %v5528_v61 }
 0x42f   :  { %v5548_v62 = vadd.f32 %v5547_v5, %v5546_v35 }
 0x430   :  { %v5583_v44 = vcombine.low %v5530_v16, %v5539_v19 }
 0x431   :  { %v5584_v32 = vcombine.low %v5548_v62, %v5557_v47 }
 0x432   :  { %v5591_v36 = vrot.slane %v5583_v44, %v7569_v58 }
 0x433   :  { %v5598_v43 = vrot.slane %v5584_v32, %v7569_v58 }
 0x435   :  { %v5599_v63 = vcombine.low %v5591_v36, %v5598_v43 }
 0x437   :  { %v5604_v20 = vrot.slane %v5599_v63, 7 }
 0x439   :  { %v5606_v41 = vsel %vm5605_vm1, %v5604_v20, %v5582_v39 }
 0x43a   :  { %v5608_v48 = vsel %vm5607_vm2, %v5604_v20, %v5606_v41 }
 0x43b   :  { %v5610_v21 = vsel %vm5609_vm3, %v5604_v20, %v5608_v48 }
 0x43c   :  { %v5612_v15 = vsel %vm5611_vm4, %v5604_v20, %v5610_v21 }
 0x43d   :  { %5614 = vst [vmem:[#allocation13] sm:$0xff] %v5612_v15 }
 0x43e   :  { %6775 = shalt.err (!%p6772_p6)
}
 0x43f   :  { %5624 = dma.vmem_to_hbm [thread:$0]  %s5622_s5, 128, %s8052_s6, [#allocation4]  }
 0x440   :  { %6792 = dma.done.wait [#allocation4], 128  }
 0x441   :  { %6793 = vsyncadd [#allocation4], 4294967168 }
 0x442   :  { %5628 = vsyncpa [#allocation3], 1 }
 0x443   :  { %5629 = vsyncpa [#allocation6], 1 }
 0x444   :  { %5630 = vsyncpa [#allocation9], 1 }
 0x445   :  { %5631 = vsyncpa [#allocation12], 1 }
 0x446   :  { %5632 = vsyncpa [#allocation4], 1 }

</bundles_post_ra>
